<compile_context>
chip_gen: v7x
topology: tpu7x:2x2x1
jax: 0.10.0
libtpu: 0.0.40
codegen_flags: <defaults>
</compile_context>

<pallas_src>
import functools

import jax
import jax.numpy as jnp
from jax import lax
from jax.experimental import pallas as pl
from jax.experimental.pallas import tpu as pltpu


# MXU operand dtype: bf16 on TPU (f32 accumulation); f32 elsewhere because the
# CPU interpreter cannot execute bf16 x bf16 -> f32 dots (DotThunk UNIMPLEMENTED).
_ON_TPU = jax.default_backend() == "tpu"
_MXU_DTYPE = jnp.bfloat16 if _ON_TPU else jnp.float32
_POOL_CHUNK = 512            # max lanes per pooling-matmul chunk


# ----------------------------- small helpers ------------------------------- #

def _sigmoid(x):
    # sigmoid expressed via tanh: a single EUP op on the LSTM critical path.
    return 0.5 * jnp.tanh(0.5 * x) + 0.5


def _elu(x):
    # ELU(alpha=1); clamp the exp argument so the unselected branch stays finite.
    return jnp.where(x > 0, x, jnp.exp(jnp.minimum(x, 0.0)) - 1.0)


def _pool_pair_matrix(n):
    # (n, n//2) with 0.5 where col == row // 2  ->  y @ M == AvgPool1d(k=2, s=2).
    m = jnp.arange(n)[:, None] // 2 == jnp.arange(n // 2)[None, :]
    return jnp.where(m, 0.5, 0.0).astype(_MXU_DTYPE)


def _choose_pool_chunk(T):
    """Largest lane chunk <= _POOL_CHUNK that divides T (prefer 128-multiples)."""
    if T <= _POOL_CHUNK:
        return T
    for p in range(_POOL_CHUNK, 127, -128):
        if T % p == 0:
            return p
    for p in range(_POOL_CHUNK, 1, -2):
        if T % p == 0:
            return p
    return T


def _choose_tile(N, max_t):
    """Largest 128-multiple divisor of N that is <= max_t (or N if N <= max_t)."""
    if N <= max_t:
        return N
    for t in range(max_t, 0, -128):
        if N % t == 0:
            return t
    return N   # fallback: whole dim in one block (fine at small sizes)


def _avg_pool2(y, pool_mat, chunk):
    """AvgPool1d(k=2, s=2) over the lane axis of a (C, T) tile via small matmuls."""
    T = y.shape[1]
    yd = y.astype(pool_mat.dtype)
    if T <= chunk:
        return jnp.dot(yd, pool_mat, preferred_element_type=jnp.float32)
    outs = [jnp.dot(yd[:, c:c + chunk], pool_mat, preferred_element_type=jnp.float32)
            for c in range(0, T, chunk)]
    return jnp.concatenate(outs, axis=1)


# ------------------------------ Pallas kernels ------------------------------ #

def _conv_bn_elu_kernel(x_ref, w_ref, scale_ref, shift_ref, *rest,
                        K, Ci, T, pool_chunk):
    # x_ref:     (1, Ci, T + K - 1)  "same"-padded input
    # w_ref:     (Co, K*Ci)          im2col weight matrix (bf16 on TPU when Ci > 1)
    # scale/shift: (Co, 1)           folded conv bias + BatchNorm (eval)
    # pool_ref:  (pc, pc//2)         pooling matrix (only when pooling)
    # out_ref:   (1, Co, T//2) if pooling else (1, Co, T)
    if pool_chunk is None:
        (out_ref,) = rest
        pool_ref = None
    else:
        pool_ref, out_ref = rest

    if Ci == 1:
        # block1: each tap is a rank-1 outer product -> pure VPU broadcast FMA.
        x = x_ref[0]                                      # (1, Tp) f32
        w = w_ref[...]                                    # (Co, K) f32
        y = jnp.zeros((w.shape[0], T), jnp.float32)
        for k in range(K):                                # unrolled, 13 taps
            y = y + w[:, k:k + 1] * x[:, k:k + T]
    else:
        # im2col: one deep-contraction MXU matmul (K*Ci = 208 / 416).
        x = x_ref[0].astype(_MXU_DTYPE)                   # (Ci, Tp)
        x_stack = jnp.concatenate([x[:, k:k + T] for k in range(K)], axis=0)
        y = jnp.dot(w_ref[...], x_stack, preferred_element_type=jnp.float32)

    y = _elu(y * scale_ref[...] + shift_ref[...])
    if pool_ref is not None:
        y = _avg_pool2(y, pool_ref[...], pool_chunk)
    out_ref[0] = y


def _dw_bn_elu_pool_kernel(x_ref, w_ref, scale_ref, shift_ref, pool_ref, out_ref,
                           *, H, T, pool_chunk):
    # depthwise Conv2d(16,16,(Ch,1),groups=16): weighted sum over the Ch axis.
    # x_ref: (1, H, C, T)  w_ref: (H, C, 1)  scale/shift: (C, 1)  out: (1, C, T//2)
    C = x_ref.shape[2]
    acc = jnp.zeros((C, T), jnp.float32)
    for h in range(H):
        acc = acc + w_ref[h] * x_ref[0, h]                # (C,1) * (C,T)
    y = _elu(acc * scale_ref[...] + shift_ref[...])
    out_ref[0] = _avg_pool2(y, pool_ref[...], pool_chunk)


def _lstm2_kernel(xg_ref, whh0_ref, w1_ref, b1_ref, out_ref,
                  h0_scr, c0_scr, h1_scr, c1_scr, *, S, Hd):
    # Fused 2-layer LSTM recurrence.  Layer-0's input projection (x @ W_ih0 + b0)
    # is pre-computed into xg_ref; layer-1's input projection is done per step.
    # The loop body is skewed: it runs layer-1 at step t-1 and layer-0 at step t,
    # both of which only depend on state from step t-1, so the VLIW scheduler can
    # overlap the two matmul + gate chains (dependent-step chain = S, not 2S).
    #   xg_ref: (S, 4H) pre-projected gates      whh0_ref: (H, 4H)
    #   w1_ref: (2H, 4H) = [W_ih1; W_hh1]        b1_ref:   (1, 4H)
    #   out_ref: (S, H)                          scratches: (1, H) f32
    # Gate order: i, f, g, o (PyTorch convention).
    h0_scr[...] = jnp.zeros_like(h0_scr)
    c0_scr[...] = jnp.zeros_like(c0_scr)
    h1_scr[...] = jnp.zeros_like(h1_scr)
    c1_scr[...] = jnp.zeros_like(c1_scr)

    def gates_split(g):
        i = _sigmoid(g[:, 0 * Hd:1 * Hd])
        f = _sigmoid(g[:, 1 * Hd:2 * Hd])
        gg = jnp.tanh(g[:, 2 * Hd:3 * Hd])
        o = _sigmoid(g[:, 3 * Hd:4 * Hd])
        return i, f, gg, o

    def step(t, carry):
        h0_prev = h0_scr[...]                       # layer-0 output of step t-1

        @pl.when(t > 0)                             # layer 1, time step t-1
        def _():
            hcat = jnp.concatenate([h0_prev, h1_scr[...]], axis=1)
            g1 = jnp.dot(hcat.astype(w1_ref.dtype), w1_ref[...],
                         preferred_element_type=jnp.float32) + b1_ref[...]
            i, f, gg, o = gates_split(g1)
            c1 = f * c1_scr[...] + i * gg
            h1 = o * jnp.tanh(c1)
            c1_scr[...] = c1
            h1_scr[...] = h1
            out_ref[pl.ds(jnp.maximum(t - 1, 0), 1), :] = h1

        @pl.when(t < S)                             # layer 0, time step t
        def _():
            g0 = xg_ref[pl.ds(t, 1), :] + jnp.dot(
                h0_prev.astype(whh0_ref.dtype), whh0_ref[...],
                preferred_element_type=jnp.float32)
            i, f, gg, o = gates_split(g0)
            c0 = f * c0_scr[...] + i * gg
            h0 = o * jnp.tanh(c0)
            c0_scr[...] = c0
            h0_scr[...] = h0

        return carry

    lax.fori_loop(0, S + 1, step, 0)


def _linear_kernel(x_ref, w_ref, b_ref, out_ref, *, apply_sigmoid):
    # (O-tile, K-tile) grid: accumulate directly into the revisited output block.
    k = pl.program_id(1)

    @pl.when(k == 0)
    def _():
        out_ref[...] = jnp.zeros_like(out_ref)

    out_ref[...] += jnp.dot(x_ref[...].astype(w_ref.dtype), w_ref[...],
                            preferred_element_type=jnp.float32)

    @pl.when(k == pl.num_programs(1) - 1)
    def _():
        y = out_ref[...] + b_ref[...]
        if apply_sigmoid:
            y = _sigmoid(y)
        out_ref[...] = y


# ------------------------------ kernel wrappers ----------------------------- #

def conv1d_bn_elu(x, w, scale, shift, *, do_pool):
    # x: (N, Ci, T)   w: (K, Co, Ci)   scale/shift: (Co, 1)
    N, Ci, T = x.shape
    K, Co, _ = w.shape
    pad = K // 2
    xp = jnp.pad(x, ((0, 0), (0, 0), (pad, pad)))         # "same" padding
    Tp = T + 2 * pad
    w_mat = jnp.transpose(w, (1, 0, 2)).reshape(Co, K * Ci)
    w_mat = w_mat.astype(jnp.float32 if Ci == 1 else _MXU_DTYPE)

    in_specs = [
        pl.BlockSpec((1, Ci, Tp), lambda b: (b, 0, 0)),
        pl.BlockSpec((Co, K * Ci), lambda b: (0, 0)),
        pl.BlockSpec((Co, 1), lambda b: (0, 0)),
        pl.BlockSpec((Co, 1), lambda b: (0, 0)),
    ]
    args = [xp, w_mat, scale, shift]
    if do_pool:
        pc = _choose_pool_chunk(T)
        in_specs.append(pl.BlockSpec((pc, pc // 2), lambda b: (0, 0)))
        args.append(_pool_pair_matrix(pc))
        T_out = T // 2
    else:
        pc = None
        T_out = T

    kernel = functools.partial(_conv_bn_elu_kernel, K=K, Ci=Ci, T=T, pool_chunk=pc)
    return pl.pallas_call(
        kernel,
        out_shape=jax.ShapeDtypeStruct((N, Co, T_out), jnp.float32),
        grid=(N,),
        in_specs=in_specs,
        out_specs=pl.BlockSpec((1, Co, T_out), lambda b: (b, 0, 0)),
        compiler_params=pltpu.CompilerParams(dimension_semantics=("parallel",)),
    )(*args)


def depthwise_bn_elu_pool(x, w, scale, shift):
    # x: (B, H, C, T)   w: (H, C, 1)   out: (B, C, T//2)
    B, H, C, T = x.shape
    pc = _choose_pool_chunk(T)
    kernel = functools.partial(_dw_bn_elu_pool_kernel, H=H, T=T, pool_chunk=pc)
    return pl.pallas_call(
        kernel,
        out_shape=jax.ShapeDtypeStruct((B, C, T // 2), jnp.float32),
        grid=(B,),
        in_specs=[
            pl.BlockSpec((1, H, C, T), lambda b: (b, 0, 0, 0)),
            pl.BlockSpec((H, C, 1), lambda b: (0, 0, 0)),
            pl.BlockSpec((C, 1), lambda b: (0, 0)),
            pl.BlockSpec((C, 1), lambda b: (0, 0)),
            pl.BlockSpec((pc, pc // 2), lambda b: (0, 0)),
        ],
        out_specs=pl.BlockSpec((1, C, T // 2), lambda b: (b, 0, 0)),
        compiler_params=pltpu.CompilerParams(dimension_semantics=("parallel",)),
    )(x, w, scale, shift, _pool_pair_matrix(pc))


def lstm2(xg0, whh0, w1cat, b1):
    # Fused 2-layer LSTM.  xg0: (B, S, 4H) pre-projected layer-0 gates;
    # whh0: (H, 4H); w1cat: (2H, 4H) = [W_ih1; W_hh1]; b1: (1, 4H).
    # Grid over batch ("parallel") -> both v7x TensorCores run the serial
    # recurrence on disjoint batch elements and per-core VMEM stays bounded.
    B, S, G = xg0.shape
    Hd = G // 4
    kernel = functools.partial(_lstm2_kernel, S=S, Hd=Hd)
    return pl.pallas_call(
        kernel,
        out_shape=jax.ShapeDtypeStruct((B, S, Hd), jnp.float32),
        grid=(B,),
        in_specs=[
            pl.BlockSpec((None, S, G), lambda b: (b, 0, 0)),
            pl.BlockSpec((Hd, G), lambda b: (0, 0)),
            pl.BlockSpec((2 * Hd, G), lambda b: (0, 0)),
            pl.BlockSpec((1, G), lambda b: (0, 0)),
        ],
        out_specs=pl.BlockSpec((None, S, Hd), lambda b: (b, 0, 0)),
        scratch_shapes=[pltpu.VMEM((1, Hd), jnp.float32)] * 4,
        compiler_params=pltpu.CompilerParams(dimension_semantics=("parallel",)),
    )(xg0, whh0, w1cat, b1)


def linear(x, w, b, *, apply_sigmoid=False):
    # x: (B, K) f32   w: (K, O) MXU dtype   b: (O,) f32   -> (B, O) f32
    # Grid: leading "parallel" O-tile axis (engages both v7x cores for the big
    # fc1 weight stream), trailing "arbitrary" K reduction axis.  tk<=2048 keeps
    # the double-buffered weight tile inside v5e's default scoped VMEM; raise per
    # generation (v6e: 4096 + vmem_limit_bytes, v7x: <=3072) if tuning further.
    B, Kd = x.shape
    O = w.shape[1]
    tk = _choose_tile(Kd, 2048)
    to = _choose_tile(O, 640)
    return pl.pallas_call(
        functools.partial(_linear_kernel, apply_sigmoid=apply_sigmoid),
        out_shape=jax.ShapeDtypeStruct((B, O), jnp.float32),
        grid=(O // to, Kd // tk),
        in_specs=[
            pl.BlockSpec((B, tk), lambda o, k: (0, k)),
            pl.BlockSpec((tk, to), lambda o, k: (k, o)),
            pl.BlockSpec((1, to), lambda o, k: (0, o)),
        ],
        out_specs=pl.BlockSpec((B, to), lambda o, k: (0, o)),
        compiler_params=pltpu.CompilerParams(
            dimension_semantics=("parallel", "arbitrary")),
    )(x, w, b.reshape(1, O))


# ------------------------------ model forward ------------------------------- #

def cnn_lstm_forward(x, params, *, cls=False):
    """x: (B, 1, Ch, T) float32 (PyTorch NCHW).  Returns (B, 128*(T//8)) if not cls,
    else (B, 1) after the sigmoid head."""
    B, _, Ch, T = x.shape
    nf = 16

    # block1: Conv2d(1,16,(1,13)) acts independently per H row -> fold H into batch.
    x1 = x[:, 0].reshape(B * Ch, 1, T)                                   # (B*Ch, 1, T)
    y = conv1d_bn_elu(x1, params['w1'], params['s1'], params['sh1'],
                      do_pool=False)                                     # (B*Ch, 16, T)
    y = y.reshape(B, Ch, nf, T)                                          # (B, H, C, T)
    # depthwise Conv2d(16,16,(Ch,1),groups=16) + BN + ELU + AvgPool(1,2)
    y = depthwise_bn_elu_pool(y, params['wd'], params['sd'], params['shd'])  # (B,16,T/2)

    # block2
    y = conv1d_bn_elu(y, params['w2a'], params['s2a'], params['sh2a'],
                      do_pool=True)                                      # (B, 32, T/4)
    y = conv1d_bn_elu(y, params['w2b'], params['s2b'], params['sh2b'],
                      do_pool=True)                                      # (B, 64, T/8)

    # torch: squeeze -> (B, 64, S); transpose(1,2) -> (B, S, 64); LSTM(64,128,2).
    # Layer-0 input projection hoisted to one big matmul; both layers fused into
    # a single recurrence kernel (layer-1's input projection runs per step).
    xg0 = jnp.einsum('bcs,cg->bsg', y.astype(_MXU_DTYPE), params['wih0'],
                     preferred_element_type=jnp.float32) + params['b0']  # (B, S, 512)
    w1cat = jnp.concatenate([params['wih1'], params['whh1']], axis=0)    # (256, 512)
    h = lstm2(xg0, params['whh0'], w1cat, params['b1'])                  # (B, S, 128)
    out = h.reshape(B, -1)                                               # flatten(x, 1)

    if not cls:
        return out
    out = linear(out, params['fc1_w'], params['fc1_b'], apply_sigmoid=False)
    out = linear(out, params['fc2_w'], params['fc2_b'], apply_sigmoid=True)
    return out


# --------------------------- deterministic params --------------------------- #

def fold_bn(gamma, beta, mean, var, conv_bias=None, eps=1e-5):
    s = gamma / jnp.sqrt(var + eps)
    b = conv_bias if conv_bias is not None else jnp.zeros_like(gamma)
    scale = s
    shift = (b - mean) * s + beta
    return (scale.reshape(-1, 1).astype(jnp.float32),
            shift.reshape(-1, 1).astype(jnp.float32))


def init_params(key, ch, T, n_classes=1):
    nf, K, Hd = 16, 13, 128
    keys = iter(jax.random.split(key, 48))

    def nrm(shape, scale=0.1):
        return (scale * jax.random.normal(next(keys), shape)).astype(jnp.float32)

    def bn(c):
        gamma = 1.0 + nrm((c,))
        beta = nrm((c,))
        mean = nrm((c,))
        var = (1.0 + 0.1 * jnp.abs(jax.random.normal(next(keys), (c,)))).astype(jnp.float32)
        return gamma, beta, mean, var

    p = {}
    # block1: Conv2d(1,16,(1,13)) + bias, BN
    p['w1'] = nrm((K, nf, 1), 0.2)
    b1 = nrm((nf,))
    p['s1'], p['sh1'] = fold_bn(*bn(nf), conv_bias=b1)
    # depthwise Conv2d(16,16,(ch,1),groups=16,bias=False), BN
    p['wd'] = nrm((ch, nf, 1), 0.2)
    p['sd'], p['shd'] = fold_bn(*bn(nf))
    # block2: Conv2d(16,32,(1,13)) + bias, BN
    p['w2a'] = nrm((K, 2 * nf, nf), 0.1)
    b2a = nrm((2 * nf,))
    p['s2a'], p['sh2a'] = fold_bn(*bn(2 * nf), conv_bias=b2a)
    # block2: Conv2d(32,64,(1,13)) + bias, BN
    p['w2b'] = nrm((K, 4 * nf, 2 * nf), 0.1)
    b2b = nrm((4 * nf,))
    p['s2b'], p['sh2b'] = fold_bn(*bn(4 * nf), conv_bias=b2b)
    # LSTM(64, 128, num_layers=2): weights pre-transposed (D,4H)/(H,4H) in the MXU
    # dtype; bias = b_ih + b_hh folded to one (1,4H) f32 row.  Gate order: i,f,g,o.
    D0 = 4 * nf
    p['wih0'] = nrm((D0, 4 * Hd), 0.05).astype(_MXU_DTYPE)
    p['whh0'] = nrm((Hd, 4 * Hd), 0.05).astype(_MXU_DTYPE)
    p['b0'] = nrm((1, 4 * Hd), 0.05)
    p['wih1'] = nrm((Hd, 4 * Hd), 0.05).astype(_MXU_DTYPE)
    p['whh1'] = nrm((Hd, 4 * Hd), 0.05).astype(_MXU_DTYPE)
    p['b1'] = nrm((1, 4 * Hd), 0.05)
    # fc1: Linear(dim_feat, 1280), Linear(1280, n_classes), Sigmoid
    dim_feat = Hd * (T // 8)
    p['fc1_w'] = nrm((dim_feat, 1280), 0.02).astype(_MXU_DTYPE)
    p['fc1_b'] = nrm((1280,), 0.02)
    p['fc2_w'] = nrm((1280, n_classes), 0.02).astype(_MXU_DTYPE)
    p['fc2_b'] = nrm((n_classes,), 0.02)
    return p


# ----------------------------------- main ----------------------------------- #

if __name__ == "__main__":
    B, Ch, T = 2, 3, 64          # small version of input_size=[3, 7680]
    key = jax.random.PRNGKey(0)
    kx, kp = jax.random.split(key)
    x = jax.random.normal(kx, (B, 1, Ch, T), dtype=jnp.float32)
    params = init_params(kp, ch=Ch, T=T)

    fwd = jax.jit(functools.partial(cnn_lstm_forward, cls=False))
    fwd_cls = jax.jit(functools.partial(cnn_lstm_forward, cls=True))

    out = fwd(x, params)                 # default forward (cls=False)
    out_cls = fwd_cls(x, params)         # also exercise the fc head
    jax.block_until_ready((out, out_cls))

    assert out.shape == (B, 128 * (T // 8)), out.shape
    assert out_cls.shape == (B, 1), out_cls.shape
    assert bool(jnp.all(jnp.isfinite(out))) and bool(jnp.all(jnp.isfinite(out_cls)))
    print("KERNEL_OK")
</pallas_src>

<mosaic_0001>
module attributes {stable_mosaic.version = 11 : i64} {
  func.func @_conv_bn_elu_kernel(%arg0: i32, %arg1: memref<1x1x76xf32, #tpu.memory_space<vmem>>, %arg2: memref<16x13xf32, #tpu.memory_space<vmem>>, %arg3: memref<16x1xf32, #tpu.memory_space<vmem>>, %arg4: memref<16x1xf32, #tpu.memory_space<vmem>>, %arg5: memref<1x16x64xf32, #tpu.memory_space<vmem>>) attributes {dimension_semantics = [#tpu.dimension_semantics<parallel>], iteration_bounds = array<i64: 6>, scalar_prefetch = 0 : i64, scratch_operands = 0 : i64, tpu.core_type = #tpu.core_type<tc>, window_params = [{transform_indices = @transform_0, window_bounds = array<i64: 1, 1, 76>}, {pipeline_mode = #tpu.pipeline_mode<synchronous>, transform_indices = @transform_1, window_bounds = array<i64: 16, 13>}, {pipeline_mode = #tpu.pipeline_mode<synchronous>, transform_indices = @transform_2, window_bounds = array<i64: 16, 1>}, {pipeline_mode = #tpu.pipeline_mode<synchronous>, transform_indices = @transform_3, window_bounds = array<i64: 16, 1>}, {transform_indices = @transform_4, window_bounds = array<i64: 1, 16, 64>}]} {
    %c0 = arith.constant 0 : index
    %c0_0 = arith.constant 0 : index
    %c0_1 = arith.constant 0 : index
    %0 = vector.load %arg1[%c0, %c0_0, %c0_1] : memref<1x1x76xf32, #tpu.memory_space<vmem>>, vector<1x1x76xf32>
    %1 = vector.shape_cast %0 : vector<1x1x76xf32> to vector<1x76xf32>
    %c0_2 = arith.constant 0 : index
    %c0_3 = arith.constant 0 : index
    %2 = vector.load %arg2[%c0_2, %c0_3] : memref<16x13xf32, #tpu.memory_space<vmem>>, vector<16x13xf32>
    %cst = arith.constant 0.000000e+00 : f32
    %3 = vector.broadcast %cst : f32 to vector<16x64xf32>
    %4 = vector.extract_strided_slice %2 {offsets = [0, 0], sizes = [16, 1], strides = [1, 1]} : vector<16x13xf32> to vector<16x1xf32>
    %5 = vector.extract_strided_slice %1 {offsets = [0, 0], sizes = [1, 64], strides = [1, 1]} : vector<1x76xf32> to vector<1x64xf32>
    %6 = vector.broadcast %4 : vector<16x1xf32> to vector<16x64xf32>
    %7 = vector.broadcast %5 : vector<1x64xf32> to vector<16x64xf32>
    %8 = arith.mulf %6, %7 : vector<16x64xf32>
    %9 = arith.addf %3, %8 : vector<16x64xf32>
    %10 = vector.extract_strided_slice %2 {offsets = [0, 1], sizes = [16, 1], strides = [1, 1]} : vector<16x13xf32> to vector<16x1xf32>
    %11 = vector.extract_strided_slice %1 {offsets = [0, 1], sizes = [1, 64], strides = [1, 1]} : vector<1x76xf32> to vector<1x64xf32>
    %12 = vector.broadcast %10 : vector<16x1xf32> to vector<16x64xf32>
    %13 = vector.broadcast %11 : vector<1x64xf32> to vector<16x64xf32>
    %14 = arith.mulf %12, %13 : vector<16x64xf32>
    %15 = arith.addf %9, %14 : vector<16x64xf32>
    %16 = vector.extract_strided_slice %2 {offsets = [0, 2], sizes = [16, 1], strides = [1, 1]} : vector<16x13xf32> to vector<16x1xf32>
    %17 = vector.extract_strided_slice %1 {offsets = [0, 2], sizes = [1, 64], strides = [1, 1]} : vector<1x76xf32> to vector<1x64xf32>
    %18 = vector.broadcast %16 : vector<16x1xf32> to vector<16x64xf32>
    %19 = vector.broadcast %17 : vector<1x64xf32> to vector<16x64xf32>
    %20 = arith.mulf %18, %19 : vector<16x64xf32>
    %21 = arith.addf %15, %20 : vector<16x64xf32>
    %22 = vector.extract_strided_slice %2 {offsets = [0, 3], sizes = [16, 1], strides = [1, 1]} : vector<16x13xf32> to vector<16x1xf32>
    %23 = vector.extract_strided_slice %1 {offsets = [0, 3], sizes = [1, 64], strides = [1, 1]} : vector<1x76xf32> to vector<1x64xf32>
    %24 = vector.broadcast %22 : vector<16x1xf32> to vector<16x64xf32>
    %25 = vector.broadcast %23 : vector<1x64xf32> to vector<16x64xf32>
    %26 = arith.mulf %24, %25 : vector<16x64xf32>
    %27 = arith.addf %21, %26 : vector<16x64xf32>
    %28 = vector.extract_strided_slice %2 {offsets = [0, 4], sizes = [16, 1], strides = [1, 1]} : vector<16x13xf32> to vector<16x1xf32>
    %29 = vector.extract_strided_slice %1 {offsets = [0, 4], sizes = [1, 64], strides = [1, 1]} : vector<1x76xf32> to vector<1x64xf32>
    %30 = vector.broadcast %28 : vector<16x1xf32> to vector<16x64xf32>
    %31 = vector.broadcast %29 : vector<1x64xf32> to vector<16x64xf32>
    %32 = arith.mulf %30, %31 : vector<16x64xf32>
    %33 = arith.addf %27, %32 : vector<16x64xf32>
    %34 = vector.extract_strided_slice %2 {offsets = [0, 5], sizes = [16, 1], strides = [1, 1]} : vector<16x13xf32> to vector<16x1xf32>
    %35 = vector.extract_strided_slice %1 {offsets = [0, 5], sizes = [1, 64], strides = [1, 1]} : vector<1x76xf32> to vector<1x64xf32>
    %36 = vector.broadcast %34 : vector<16x1xf32> to vector<16x64xf32>
    %37 = vector.broadcast %35 : vector<1x64xf32> to vector<16x64xf32>
    %38 = arith.mulf %36, %37 : vector<16x64xf32>
    %39 = arith.addf %33, %38 : vector<16x64xf32>
    %40 = vector.extract_strided_slice %2 {offsets = [0, 6], sizes = [16, 1], strides = [1, 1]} : vector<16x13xf32> to vector<16x1xf32>
    %41 = vector.extract_strided_slice %1 {offsets = [0, 6], sizes = [1, 64], strides = [1, 1]} : vector<1x76xf32> to vector<1x64xf32>
    %42 = vector.broadcast %40 : vector<16x1xf32> to vector<16x64xf32>
    %43 = vector.broadcast %41 : vector<1x64xf32> to vector<16x64xf32>
    %44 = arith.mulf %42, %43 : vector<16x64xf32>
    %45 = arith.addf %39, %44 : vector<16x64xf32>
    %46 = vector.extract_strided_slice %2 {offsets = [0, 7], sizes = [16, 1], strides = [1, 1]} : vector<16x13xf32> to vector<16x1xf32>
    %47 = vector.extract_strided_slice %1 {offsets = [0, 7], sizes = [1, 64], strides = [1, 1]} : vector<1x76xf32> to vector<1x64xf32>
    %48 = vector.broadcast %46 : vector<16x1xf32> to vector<16x64xf32>
    %49 = vector.broadcast %47 : vector<1x64xf32> to vector<16x64xf32>
    %50 = arith.mulf %48, %49 : vector<16x64xf32>
    %51 = arith.addf %45, %50 : vector<16x64xf32>
    %52 = vector.extract_strided_slice %2 {offsets = [0, 8], sizes = [16, 1], strides = [1, 1]} : vector<16x13xf32> to vector<16x1xf32>
    %53 = vector.extract_strided_slice %1 {offsets = [0, 8], sizes = [1, 64], strides = [1, 1]} : vector<1x76xf32> to vector<1x64xf32>
    %54 = vector.broadcast %52 : vector<16x1xf32> to vector<16x64xf32>
    %55 = vector.broadcast %53 : vector<1x64xf32> to vector<16x64xf32>
    %56 = arith.mulf %54, %55 : vector<16x64xf32>
    %57 = arith.addf %51, %56 : vector<16x64xf32>
    %58 = vector.extract_strided_slice %2 {offsets = [0, 9], sizes = [16, 1], strides = [1, 1]} : vector<16x13xf32> to vector<16x1xf32>
    %59 = vector.extract_strided_slice %1 {offsets = [0, 9], sizes = [1, 64], strides = [1, 1]} : vector<1x76xf32> to vector<1x64xf32>
    %60 = vector.broadcast %58 : vector<16x1xf32> to vector<16x64xf32>
    %61 = vector.broadcast %59 : vector<1x64xf32> to vector<16x64xf32>
    %62 = arith.mulf %60, %61 : vector<16x64xf32>
    %63 = arith.addf %57, %62 : vector<16x64xf32>
    %64 = vector.extract_strided_slice %2 {offsets = [0, 10], sizes = [16, 1], strides = [1, 1]} : vector<16x13xf32> to vector<16x1xf32>
    %65 = vector.extract_strided_slice %1 {offsets = [0, 10], sizes = [1, 64], strides = [1, 1]} : vector<1x76xf32> to vector<1x64xf32>
    %66 = vector.broadcast %64 : vector<16x1xf32> to vector<16x64xf32>
    %67 = vector.broadcast %65 : vector<1x64xf32> to vector<16x64xf32>
    %68 = arith.mulf %66, %67 : vector<16x64xf32>
    %69 = arith.addf %63, %68 : vector<16x64xf32>
    %70 = vector.extract_strided_slice %2 {offsets = [0, 11], sizes = [16, 1], strides = [1, 1]} : vector<16x13xf32> to vector<16x1xf32>
    %71 = vector.extract_strided_slice %1 {offsets = [0, 11], sizes = [1, 64], strides = [1, 1]} : vector<1x76xf32> to vector<1x64xf32>
    %72 = vector.broadcast %70 : vector<16x1xf32> to vector<16x64xf32>
    %73 = vector.broadcast %71 : vector<1x64xf32> to vector<16x64xf32>
    %74 = arith.mulf %72, %73 : vector<16x64xf32>
    %75 = arith.addf %69, %74 : vector<16x64xf32>
    %76 = vector.extract_strided_slice %2 {offsets = [0, 12], sizes = [16, 1], strides = [1, 1]} : vector<16x13xf32> to vector<16x1xf32>
    %77 = vector.extract_strided_slice %1 {offsets = [0, 12], sizes = [1, 64], strides = [1, 1]} : vector<1x76xf32> to vector<1x64xf32>
    %78 = vector.broadcast %76 : vector<16x1xf32> to vector<16x64xf32>
    %79 = vector.broadcast %77 : vector<1x64xf32> to vector<16x64xf32>
    %80 = arith.mulf %78, %79 : vector<16x64xf32>
    %81 = arith.addf %75, %80 : vector<16x64xf32>
    %c0_4 = arith.constant 0 : index
    %c0_5 = arith.constant 0 : index
    %82 = vector.load %arg3[%c0_4, %c0_5] : memref<16x1xf32, #tpu.memory_space<vmem>>, vector<16x1xf32>
    %83 = vector.broadcast %82 : vector<16x1xf32> to vector<16x64xf32>
    %84 = arith.mulf %81, %83 : vector<16x64xf32>
    %c0_6 = arith.constant 0 : index
    %c0_7 = arith.constant 0 : index
    %85 = vector.load %arg4[%c0_6, %c0_7] : memref<16x1xf32, #tpu.memory_space<vmem>>, vector<16x1xf32>
    %86 = vector.broadcast %85 : vector<16x1xf32> to vector<16x64xf32>
    %87 = arith.addf %84, %86 : vector<16x64xf32>
    %cst_8 = arith.constant 0.000000e+00 : f32
    %88 = vector.broadcast %cst_8 : f32 to vector<16x64xf32>
    %89 = arith.cmpf ogt, %87, %88 : vector<16x64xf32>
    %cst_9 = arith.constant 0.000000e+00 : f32
    %90 = vector.broadcast %cst_9 : f32 to vector<16x64xf32>
    %91 = arith.minimumf %87, %90 : vector<16x64xf32>
    %92 = math.exp %91 : vector<16x64xf32>
    %cst_10 = arith.constant 1.000000e+00 : f32
    %93 = vector.broadcast %cst_10 : f32 to vector<16x64xf32>
    %94 = arith.subf %92, %93 : vector<16x64xf32>
    %95 = arith.select %89, %87, %94 : vector<16x64xi1>, vector<16x64xf32>
    %c0_11 = arith.constant 0 : index
    %c0_12 = arith.constant 0 : index
    %c0_13 = arith.constant 0 : index
    %96 = vector.load %arg5[%c0_11, %c0_12, %c0_13] : memref<1x16x64xf32, #tpu.memory_space<vmem>>, vector<1x16x64xf32>
    %97 = vector.shape_cast %96 : vector<1x16x64xf32> to vector<16x64xf32>
    %98 = vector.shape_cast %95 : vector<16x64xf32> to vector<1x16x64xf32>
    tpu.vector_store %arg5[%c0_11, %c0_12, %c0_13], %98 {strides = array<i32>} : memref<1x16x64xf32, #tpu.memory_space<vmem>>, vector<1x16x64xf32>,
    return
  }
  func.func @transform_0(%arg0: i32) -> (i32, i32, i32) {
    %c0_i32 = arith.constant 0 : i32
    %c0_i32_0 = arith.constant 0 : i32
    %c0_i32_1 = arith.constant 0 : i32
    return %arg0, %c0_i32, %c0_i32_0 : i32, i32, i32
  }
  func.func @transform_1(%arg0: i32) -> (i32, i32) {
    %c0_i32 = arith.constant 0 : i32
    %c0_i32_0 = arith.constant 0 : i32
    %c0_i32_1 = arith.constant 0 : i32
    return %c0_i32, %c0_i32_0 : i32, i32
  }
  func.func @transform_2(%arg0: i32) -> (i32, i32) {
    %c0_i32 = arith.constant 0 : i32
    %c0_i32_0 = arith.constant 0 : i32
    %c0_i32_1 = arith.constant 0 : i32
    return %c0_i32, %c0_i32_0 : i32, i32
  }
  func.func @transform_3(%arg0: i32) -> (i32, i32) {
    %c0_i32 = arith.constant 0 : i32
    %c0_i32_0 = arith.constant 0 : i32
    %c0_i32_1 = arith.constant 0 : i32
    return %c0_i32, %c0_i32_0 : i32, i32
  }
  func.func @transform_4(%arg0: i32) -> (i32, i32, i32) {
    %c0_i32 = arith.constant 0 : i32
    %c0_i32_0 = arith.constant 0 : i32
    %c0_i32_1 = arith.constant 0 : i32
    return %arg0, %c0_i32, %c0_i32_0 : i32, i32, i32
  }
}

module attributes {stable_mosaic.version = 11 : i64} {
  func.func @_dw_bn_elu_pool_kernel(%arg0: i32, %arg1: memref<1x3x16x64xf32, #tpu.memory_space<vmem>>, %arg2: memref<3x16x1xf32, #tpu.memory_space<vmem>>, %arg3: memref<16x1xf32, #tpu.memory_space<vmem>>, %arg4: memref<16x1xf32, #tpu.memory_space<vmem>>, %arg5: memref<64x32xf32, #tpu.memory_space<vmem>>, %arg6: memref<1x16x32xf32, #tpu.memory_space<vmem>>) attributes {dimension_semantics = [#tpu.dimension_semantics<parallel>], iteration_bounds = array<i64: 2>, scalar_prefetch = 0 : i64, scratch_operands = 0 : i64, tpu.core_type = #tpu.core_type<tc>, window_params = [{transform_indices = @transform_0, window_bounds = array<i64: 1, 3, 16, 64>}, {pipeline_mode = #tpu.pipeline_mode<synchronous>, transform_indices = @transform_1, window_bounds = array<i64: 3, 16, 1>}, {pipeline_mode = #tpu.pipeline_mode<synchronous>, transform_indices = @transform_2, window_bounds = array<i64: 16, 1>}, {pipeline_mode = #tpu.pipeline_mode<synchronous>, transform_indices = @transform_3, window_bounds = array<i64: 16, 1>}, {pipeline_mode = #tpu.pipeline_mode<synchronous>, transform_indices = @transform_4, window_bounds = array<i64: 64, 32>}, {transform_indices = @transform_5, window_bounds = array<i64: 1, 16, 32>}]} {
    %cst = arith.constant 0.000000e+00 : f32
    %0 = vector.broadcast %cst : f32 to vector<16x64xf32>
    %c0 = arith.constant 0 : index
    %c0_0 = arith.constant 0 : index
    %c0_1 = arith.constant 0 : index
    %1 = vector.load %arg2[%c0, %c0_0, %c0_1] : memref<3x16x1xf32, #tpu.memory_space<vmem>>, vector<1x16x1xf32>
    %2 = vector.shape_cast %1 : vector<1x16x1xf32> to vector<16x1xf32>
    %c0_2 = arith.constant 0 : index
    %c0_3 = arith.constant 0 : index
    %c0_4 = arith.constant 0 : index
    %c0_5 = arith.constant 0 : index
    %3 = vector.load %arg1[%c0_2, %c0_3, %c0_4, %c0_5] : memref<1x3x16x64xf32, #tpu.memory_space<vmem>>, vector<1x1x16x64xf32>
    %4 = vector.shape_cast %3 : vector<1x1x16x64xf32> to vector<16x64xf32>
    %5 = vector.broadcast %2 : vector<16x1xf32> to vector<16x64xf32>
    %6 = arith.mulf %5, %4 : vector<16x64xf32>
    %7 = arith.addf %0, %6 : vector<16x64xf32>
    %c1 = arith.constant 1 : index
    %c0_6 = arith.constant 0 : index
    %c0_7 = arith.constant 0 : index
    %8 = vector.load %arg2[%c1, %c0_6, %c0_7] : memref<3x16x1xf32, #tpu.memory_space<vmem>>, vector<1x16x1xf32>
    %9 = vector.shape_cast %8 : vector<1x16x1xf32> to vector<16x1xf32>
    %c0_8 = arith.constant 0 : index
    %c1_9 = arith.constant 1 : index
    %c0_10 = arith.constant 0 : index
    %c0_11 = arith.constant 0 : index
    %10 = vector.load %arg1[%c0_8, %c1_9, %c0_10, %c0_11] : memref<1x3x16x64xf32, #tpu.memory_space<vmem>>, vector<1x1x16x64xf32>
    %11 = vector.shape_cast %10 : vector<1x1x16x64xf32> to vector<16x64xf32>
    %12 = vector.broadcast %9 : vector<16x1xf32> to vector<16x64xf32>
    %13 = arith.mulf %12, %11 : vector<16x64xf32>
    %14 = arith.addf %7, %13 : vector<16x64xf32>
    %c2 = arith.constant 2 : index
    %c0_12 = arith.constant 0 : index
    %c0_13 = arith.constant 0 : index
    %15 = vector.load %arg2[%c2, %c0_12, %c0_13] : memref<3x16x1xf32, #tpu.memory_space<vmem>>, vector<1x16x1xf32>
    %16 = vector.shape_cast %15 : vector<1x16x1xf32> to vector<16x1xf32>
    %c0_14 = arith.constant 0 : index
    %c2_15 = arith.constant 2 : index
    %c0_16 = arith.constant 0 : index
    %c0_17 = arith.constant 0 : index
    %17 = vector.load %arg1[%c0_14, %c2_15, %c0_16, %c0_17] : memref<1x3x16x64xf32, #tpu.memory_space<vmem>>, vector<1x1x16x64xf32>
    %18 = vector.shape_cast %17 : vector<1x1x16x64xf32> to vector<16x64xf32>
    %19 = vector.broadcast %16 : vector<16x1xf32> to vector<16x64xf32>
    %20 = arith.mulf %19, %18 : vector<16x64xf32>
    %21 = arith.addf %14, %20 : vector<16x64xf32>
    %c0_18 = arith.constant 0 : index
    %c0_19 = arith.constant 0 : index
    %22 = vector.load %arg3[%c0_18, %c0_19] : memref<16x1xf32, #tpu.memory_space<vmem>>, vector<16x1xf32>
    %23 = vector.broadcast %22 : vector<16x1xf32> to vector<16x64xf32>
    %24 = arith.mulf %21, %23 : vector<16x64xf32>
    %c0_20 = arith.constant 0 : index
    %c0_21 = arith.constant 0 : index
    %25 = vector.load %arg4[%c0_20, %c0_21] : memref<16x1xf32, #tpu.memory_space<vmem>>, vector<16x1xf32>
    %26 = vector.broadcast %25 : vector<16x1xf32> to vector<16x64xf32>
    %27 = arith.addf %24, %26 : vector<16x64xf32>
    %cst_22 = arith.constant 0.000000e+00 : f32
    %28 = vector.broadcast %cst_22 : f32 to vector<16x64xf32>
    %29 = arith.cmpf ogt, %27, %28 : vector<16x64xf32>
    %cst_23 = arith.constant 0.000000e+00 : f32
    %30 = vector.broadcast %cst_23 : f32 to vector<16x64xf32>
    %31 = arith.minimumf %27, %30 : vector<16x64xf32>
    %32 = math.exp %31 : vector<16x64xf32>
    %cst_24 = arith.constant 1.000000e+00 : f32
    %33 = vector.broadcast %cst_24 : f32 to vector<16x64xf32>
    %34 = arith.subf %32, %33 : vector<16x64xf32>
    %35 = arith.select %29, %27, %34 : vector<16x64xi1>, vector<16x64xf32>
    %c0_25 = arith.constant 0 : index
    %c0_26 = arith.constant 0 : index
    %36 = vector.load %arg5[%c0_25, %c0_26] : memref<64x32xf32, #tpu.memory_space<vmem>>, vector<64x32xf32>
    %cst_27 = arith.constant dense<0.000000e+00> : vector<16x32xf32>
    %37 = tpu.matmul %35, %36, %cst_27 {dimension_numbers = #tpu.dot_dimension_numbers<[1], [0], [0], [1], [0, 0, 1, 1], [], []>} : vector<16x64xf32>, vector<64x32xf32>, vector<16x32xf32> -> vector<16x32xf32>
    %c0_28 = arith.constant 0 : index
    %c0_29 = arith.constant 0 : index
    %c0_30 = arith.constant 0 : index
    %38 = vector.load %arg6[%c0_28, %c0_29, %c0_30] : memref<1x16x32xf32, #tpu.memory_space<vmem>>, vector<1x16x32xf32>
    %39 = vector.shape_cast %38 : vector<1x16x32xf32> to vector<16x32xf32>
    %40 = vector.shape_cast %37 : vector<16x32xf32> to vector<1x16x32xf32>
    tpu.vector_store %arg6[%c0_28, %c0_29, %c0_30], %40 {strides = array<i32>} : memref<1x16x32xf32, #tpu.memory_space<vmem>>, vector<1x16x32xf32>,
    return
  }
  func.func @transform_0(%arg0: i32) -> (i32, i32, i32, i32) {
    %c0_i32 = arith.constant 0 : i32
    %c0_i32_0 = arith.constant 0 : i32
    %c0_i32_1 = arith.constant 0 : i32
    %c0_i32_2 = arith.constant 0 : i32
    return %arg0, %c0_i32, %c0_i32_0, %c0_i32_1 : i32, i32, i32, i32
  }
  func.func @transform_1(%arg0: i32) -> (i32, i32, i32) {
    %c0_i32 = arith.constant 0 : i32
    %c0_i32_0 = arith.constant 0 : i32
    %c0_i32_1 = arith.constant 0 : i32
    %c0_i32_2 = arith.constant 0 : i32
    return %c0_i32, %c0_i32_0, %c0_i32_1 : i32, i32, i32
  }
  func.func @transform_2(%arg0: i32) -> (i32, i32) {
    %c0_i32 = arith.constant 0 : i32
    %c0_i32_0 = arith.constant 0 : i32
    %c0_i32_1 = arith.constant 0 : i32
    return %c0_i32, %c0_i32_0 : i32, i32
  }
  func.func @transform_3(%arg0: i32) -> (i32, i32) {
    %c0_i32 = arith.constant 0 : i32
    %c0_i32_0 = arith.constant 0 : i32
    %c0_i32_1 = arith.constant 0 : i32
    return %c0_i32, %c0_i32_0 : i32, i32
  }
  func.func @transform_4(%arg0: i32) -> (i32, i32) {
    %c0_i32 = arith.constant 0 : i32
    %c0_i32_0 = arith.constant 0 : i32
    %c0_i32_1 = arith.constant 0 : i32
    return %c0_i32, %c0_i32_0 : i32, i32
  }
  func.func @transform_5(%arg0: i32) -> (i32, i32, i32) {
    %c0_i32 = arith.constant 0 : i32
    %c0_i32_0 = arith.constant 0 : i32
    %c0_i32_1 = arith.constant 0 : i32
    return %arg0, %c0_i32, %c0_i32_0 : i32, i32, i32
  }
}

module attributes {stable_mosaic.version = 11 : i64} {
  func.func @_conv_bn_elu_kernel(%arg0: i32, %arg1: memref<1x16x44xf32, #tpu.memory_space<vmem>>, %arg2: memref<32x208xf32, #tpu.memory_space<vmem>>, %arg3: memref<32x1xf32, #tpu.memory_space<vmem>>, %arg4: memref<32x1xf32, #tpu.memory_space<vmem>>, %arg5: memref<32x16xf32, #tpu.memory_space<vmem>>, %arg6: memref<1x32x16xf32, #tpu.memory_space<vmem>>) attributes {dimension_semantics = [#tpu.dimension_semantics<parallel>], iteration_bounds = array<i64: 2>, scalar_prefetch = 0 : i64, scratch_operands = 0 : i64, tpu.core_type = #tpu.core_type<tc>, window_params = [{transform_indices = @transform_0, window_bounds = array<i64: 1, 16, 44>}, {pipeline_mode = #tpu.pipeline_mode<synchronous>, transform_indices = @transform_1, window_bounds = array<i64: 32, 208>}, {pipeline_mode = #tpu.pipeline_mode<synchronous>, transform_indices = @transform_2, window_bounds = array<i64: 32, 1>}, {pipeline_mode = #tpu.pipeline_mode<synchronous>, transform_indices = @transform_3, window_bounds = array<i64: 32, 1>}, {pipeline_mode = #tpu.pipeline_mode<synchronous>, transform_indices = @transform_4, window_bounds = array<i64: 32, 16>}, {transform_indices = @transform_5, window_bounds = array<i64: 1, 32, 16>}]} {
    %c0 = arith.constant 0 : index
    %c0_0 = arith.constant 0 : index
    %c0_1 = arith.constant 0 : index
    %0 = vector.load %arg1[%c0, %c0_0, %c0_1] : memref<1x16x44xf32, #tpu.memory_space<vmem>>, vector<1x16x44xf32>
    %1 = vector.shape_cast %0 : vector<1x16x44xf32> to vector<16x44xf32>
    %2 = vector.extract_strided_slice %1 {offsets = [0, 0], sizes = [16, 32], strides = [1, 1]} : vector<16x44xf32> to vector<16x32xf32>
    %3 = vector.extract_strided_slice %1 {offsets = [0, 1], sizes = [16, 32], strides = [1, 1]} : vector<16x44xf32> to vector<16x32xf32>
    %4 = vector.extract_strided_slice %1 {offsets = [0, 2], sizes = [16, 32], strides = [1, 1]} : vector<16x44xf32> to vector<16x32xf32>
    %5 = vector.extract_strided_slice %1 {offsets = [0, 3], sizes = [16, 32], strides = [1, 1]} : vector<16x44xf32> to vector<16x32xf32>
    %6 = vector.extract_strided_slice %1 {offsets = [0, 4], sizes = [16, 32], strides = [1, 1]} : vector<16x44xf32> to vector<16x32xf32>
    %7 = vector.extract_strided_slice %1 {offsets = [0, 5], sizes = [16, 32], strides = [1, 1]} : vector<16x44xf32> to vector<16x32xf32>
    %8 = vector.extract_strided_slice %1 {offsets = [0, 6], sizes = [16, 32], strides = [1, 1]} : vector<16x44xf32> to vector<16x32xf32>
    %9 = vector.extract_strided_slice %1 {offsets = [0, 7], sizes = [16, 32], strides = [1, 1]} : vector<16x44xf32> to vector<16x32xf32>
    %10 = vector.extract_strided_slice %1 {offsets = [0, 8], sizes = [16, 32], strides = [1, 1]} : vector<16x44xf32> to vector<16x32xf32>
    %11 = vector.extract_strided_slice %1 {offsets = [0, 9], sizes = [16, 32], strides = [1, 1]} : vector<16x44xf32> to vector<16x32xf32>
    %12 = vector.extract_strided_slice %1 {offsets = [0, 10], sizes = [16, 32], strides = [1, 1]} : vector<16x44xf32> to vector<16x32xf32>
    %13 = vector.extract_strided_slice %1 {offsets = [0, 11], sizes = [16, 32], strides = [1, 1]} : vector<16x44xf32> to vector<16x32xf32>
    %14 = vector.extract_strided_slice %1 {offsets = [0, 12], sizes = [16, 32], strides = [1, 1]} : vector<16x44xf32> to vector<16x32xf32>
    %15 = tpu.concatenate %2, %3, %4, %5, %6, %7, %8, %9, %10, %11, %12, %13, %14 in 0 : vector<16x32xf32>, vector<16x32xf32>, vector<16x32xf32>, vector<16x32xf32>, vector<16x32xf32>, vector<16x32xf32>, vector<16x32xf32>, vector<16x32xf32>, vector<16x32xf32>, vector<16x32xf32>, vector<16x32xf32>, vector<16x32xf32>, vector<16x32xf32> -> vector<208x32xf32>
    %c0_2 = arith.constant 0 : index
    %c0_3 = arith.constant 0 : index
    %16 = vector.load %arg2[%c0_2, %c0_3] : memref<32x208xf32, #tpu.memory_space<vmem>>, vector<32x208xf32>
    %cst = arith.constant dense<0.000000e+00> : vector<32x32xf32>
    %17 = tpu.matmul %16, %15, %cst {dimension_numbers = #tpu.dot_dimension_numbers<[1], [0], [0], [1], [0, 0, 1, 1], [], []>} : vector<32x208xf32>, vector<208x32xf32>, vector<32x32xf32> -> vector<32x32xf32>
    %c0_4 = arith.constant 0 : index
    %c0_5 = arith.constant 0 : index
    %18 = vector.load %arg3[%c0_4, %c0_5] : memref<32x1xf32, #tpu.memory_space<vmem>>, vector<32x1xf32>
    %19 = vector.broadcast %18 : vector<32x1xf32> to vector<32x32xf32>
    %20 = arith.mulf %17, %19 : vector<32x32xf32>
    %c0_6 = arith.constant 0 : index
    %c0_7 = arith.constant 0 : index
    %21 = vector.load %arg4[%c0_6, %c0_7] : memref<32x1xf32, #tpu.memory_space<vmem>>, vector<32x1xf32>
    %22 = vector.broadcast %21 : vector<32x1xf32> to vector<32x32xf32>
    %23 = arith.addf %20, %22 : vector<32x32xf32>
    %cst_8 = arith.constant 0.000000e+00 : f32
    %24 = vector.broadcast %cst_8 : f32 to vector<32x32xf32>
    %25 = arith.cmpf ogt, %23, %24 : vector<32x32xf32>
    %cst_9 = arith.constant 0.000000e+00 : f32
    %26 = vector.broadcast %cst_9 : f32 to vector<32x32xf32>
    %27 = arith.minimumf %23, %26 : vector<32x32xf32>
    %28 = math.exp %27 : vector<32x32xf32>
    %cst_10 = arith.constant 1.000000e+00 : f32
    %29 = vector.broadcast %cst_10 : f32 to vector<32x32xf32>
    %30 = arith.subf %28, %29 : vector<32x32xf32>
    %31 = arith.select %25, %23, %30 : vector<32x32xi1>, vector<32x32xf32>
    %c0_11 = arith.constant 0 : index
    %c0_12 = arith.constant 0 : index
    %32 = vector.load %arg5[%c0_11, %c0_12] : memref<32x16xf32, #tpu.memory_space<vmem>>, vector<32x16xf32>
    %cst_13 = arith.constant dense<0.000000e+00> : vector<32x16xf32>
    %33 = tpu.matmul %31, %32, %cst_13 {dimension_numbers = #tpu.dot_dimension_numbers<[1], [0], [0], [1], [0, 0, 1, 1], [], []>} : vector<32x32xf32>, vector<32x16xf32>, vector<32x16xf32> -> vector<32x16xf32>
    %c0_14 = arith.constant 0 : index
    %c0_15 = arith.constant 0 : index
    %c0_16 = arith.constant 0 : index
    %34 = vector.load %arg6[%c0_14, %c0_15, %c0_16] : memref<1x32x16xf32, #tpu.memory_space<vmem>>, vector<1x32x16xf32>
    %35 = vector.shape_cast %34 : vector<1x32x16xf32> to vector<32x16xf32>
    %36 = vector.shape_cast %33 : vector<32x16xf32> to vector<1x32x16xf32>
    tpu.vector_store %arg6[%c0_14, %c0_15, %c0_16], %36 {strides = array<i32>} : memref<1x32x16xf32, #tpu.memory_space<vmem>>, vector<1x32x16xf32>,
    return
  }
  func.func @transform_0(%arg0: i32) -> (i32, i32, i32) {
    %c0_i32 = arith.constant 0 : i32
    %c0_i32_0 = arith.constant 0 : i32
    %c0_i32_1 = arith.constant 0 : i32
    return %arg0, %c0_i32, %c0_i32_0 : i32, i32, i32
  }
  func.func @transform_1(%arg0: i32) -> (i32, i32) {
    %c0_i32 = arith.constant 0 : i32
    %c0_i32_0 = arith.constant 0 : i32
    %c0_i32_1 = arith.constant 0 : i32
    return %c0_i32, %c0_i32_0 : i32, i32
  }
  func.func @transform_2(%arg0: i32) -> (i32, i32) {
    %c0_i32 = arith.constant 0 : i32
    %c0_i32_0 = arith.constant 0 : i32
    %c0_i32_1 = arith.constant 0 : i32
    return %c0_i32, %c0_i32_0 : i32, i32
  }
  func.func @transform_3(%arg0: i32) -> (i32, i32) {
    %c0_i32 = arith.constant 0 : i32
    %c0_i32_0 = arith.constant 0 : i32
    %c0_i32_1 = arith.constant 0 : i32
    return %c0_i32, %c0_i32_0 : i32, i32
  }
  func.func @transform_4(%arg0: i32) -> (i32, i32) {
    %c0_i32 = arith.constant 0 : i32
    %c0_i32_0 = arith.constant 0 : i32
    %c0_i32_1 = arith.constant 0 : i32
    return %c0_i32, %c0_i32_0 : i32, i32
  }
  func.func @transform_5(%arg0: i32) -> (i32, i32, i32) {
    %c0_i32 = arith.constant 0 : i32
    %c0_i32_0 = arith.constant 0 : i32
    %c0_i32_1 = arith.constant 0 : i32
    return %arg0, %c0_i32, %c0_i32_0 : i32, i32, i32
  }
}

module attributes {stable_mosaic.version = 11 : i64} {
  func.func @_conv_bn_elu_kernel(%arg0: i32, %arg1: memref<1x32x28xf32, #tpu.memory_space<vmem>>, %arg2: memref<64x416xf32, #tpu.memory_space<vmem>>, %arg3: memref<64x1xf32, #tpu.memory_space<vmem>>, %arg4: memref<64x1xf32, #tpu.memory_space<vmem>>, %arg5: memref<16x8xf32, #tpu.memory_space<vmem>>, %arg6: memref<1x64x8xf32, #tpu.memory_space<vmem>>) attributes {dimension_semantics = [#tpu.dimension_semantics<parallel>], iteration_bounds = array<i64: 2>, scalar_prefetch = 0 : i64, scratch_operands = 0 : i64, tpu.core_type = #tpu.core_type<tc>, window_params = [{transform_indices = @transform_0, window_bounds = array<i64: 1, 32, 28>}, {pipeline_mode = #tpu.pipeline_mode<synchronous>, transform_indices = @transform_1, window_bounds = array<i64: 64, 416>}, {pipeline_mode = #tpu.pipeline_mode<synchronous>, transform_indices = @transform_2, window_bounds = array<i64: 64, 1>}, {pipeline_mode = #tpu.pipeline_mode<synchronous>, transform_indices = @transform_3, window_bounds = array<i64: 64, 1>}, {pipeline_mode = #tpu.pipeline_mode<synchronous>, transform_indices = @transform_4, window_bounds = array<i64: 16, 8>}, {transform_indices = @transform_5, window_bounds = array<i64: 1, 64, 8>}]} {
    %c0 = arith.constant 0 : index
    %c0_0 = arith.constant 0 : index
    %c0_1 = arith.constant 0 : index
    %0 = vector.load %arg1[%c0, %c0_0, %c0_1] : memref<1x32x28xf32, #tpu.memory_space<vmem>>, vector<1x32x28xf32>
    %1 = vector.shape_cast %0 : vector<1x32x28xf32> to vector<32x28xf32>
    %2 = vector.extract_strided_slice %1 {offsets = [0, 0], sizes = [32, 16], strides = [1, 1]} : vector<32x28xf32> to vector<32x16xf32>
    %3 = vector.extract_strided_slice %1 {offsets = [0, 1], sizes = [32, 16], strides = [1, 1]} : vector<32x28xf32> to vector<32x16xf32>
    %4 = vector.extract_strided_slice %1 {offsets = [0, 2], sizes = [32, 16], strides = [1, 1]} : vector<32x28xf32> to vector<32x16xf32>
    %5 = vector.extract_strided_slice %1 {offsets = [0, 3], sizes = [32, 16], strides = [1, 1]} : vector<32x28xf32> to vector<32x16xf32>
    %6 = vector.extract_strided_slice %1 {offsets = [0, 4], sizes = [32, 16], strides = [1, 1]} : vector<32x28xf32> to vector<32x16xf32>
    %7 = vector.extract_strided_slice %1 {offsets = [0, 5], sizes = [32, 16], strides = [1, 1]} : vector<32x28xf32> to vector<32x16xf32>
    %8 = vector.extract_strided_slice %1 {offsets = [0, 6], sizes = [32, 16], strides = [1, 1]} : vector<32x28xf32> to vector<32x16xf32>
    %9 = vector.extract_strided_slice %1 {offsets = [0, 7], sizes = [32, 16], strides = [1, 1]} : vector<32x28xf32> to vector<32x16xf32>
    %10 = vector.extract_strided_slice %1 {offsets = [0, 8], sizes = [32, 16], strides = [1, 1]} : vector<32x28xf32> to vector<32x16xf32>
    %11 = vector.extract_strided_slice %1 {offsets = [0, 9], sizes = [32, 16], strides = [1, 1]} : vector<32x28xf32> to vector<32x16xf32>
    %12 = vector.extract_strided_slice %1 {offsets = [0, 10], sizes = [32, 16], strides = [1, 1]} : vector<32x28xf32> to vector<32x16xf32>
    %13 = vector.extract_strided_slice %1 {offsets = [0, 11], sizes = [32, 16], strides = [1, 1]} : vector<32x28xf32> to vector<32x16xf32>
    %14 = vector.extract_strided_slice %1 {offsets = [0, 12], sizes = [32, 16], strides = [1, 1]} : vector<32x28xf32> to vector<32x16xf32>
    %15 = tpu.concatenate %2, %3, %4, %5, %6, %7, %8, %9, %10, %11, %12, %13, %14 in 0 : vector<32x16xf32>, vector<32x16xf32>, vector<32x16xf32>, vector<32x16xf32>, vector<32x16xf32>, vector<32x16xf32>, vector<32x16xf32>, vector<32x16xf32>, vector<32x16xf32>, vector<32x16xf32>, vector<32x16xf32>, vector<32x16xf32>, vector<32x16xf32> -> vector<416x16xf32>
    %c0_2 = arith.constant 0 : index
    %c0_3 = arith.constant 0 : index
    %16 = vector.load %arg2[%c0_2, %c0_3] : memref<64x416xf32, #tpu.memory_space<vmem>>, vector<64x416xf32>
    %cst = arith.constant dense<0.000000e+00> : vector<64x16xf32>
    %17 = tpu.matmul %16, %15, %cst {dimension_numbers = #tpu.dot_dimension_numbers<[1], [0], [0], [1], [0, 0, 1, 1], [], []>} : vector<64x416xf32>, vector<416x16xf32>, vector<64x16xf32> -> vector<64x16xf32>
    %c0_4 = arith.constant 0 : index
    %c0_5 = arith.constant 0 : index
    %18 = vector.load %arg3[%c0_4, %c0_5] : memref<64x1xf32, #tpu.memory_space<vmem>>, vector<64x1xf32>
    %19 = vector.broadcast %18 : vector<64x1xf32> to vector<64x16xf32>
    %20 = arith.mulf %17, %19 : vector<64x16xf32>
    %c0_6 = arith.constant 0 : index
    %c0_7 = arith.constant 0 : index
    %21 = vector.load %arg4[%c0_6, %c0_7] : memref<64x1xf32, #tpu.memory_space<vmem>>, vector<64x1xf32>
    %22 = vector.broadcast %21 : vector<64x1xf32> to vector<64x16xf32>
    %23 = arith.addf %20, %22 : vector<64x16xf32>
    %cst_8 = arith.constant 0.000000e+00 : f32
    %24 = vector.broadcast %cst_8 : f32 to vector<64x16xf32>
    %25 = arith.cmpf ogt, %23, %24 : vector<64x16xf32>
    %cst_9 = arith.constant 0.000000e+00 : f32
    %26 = vector.broadcast %cst_9 : f32 to vector<64x16xf32>
    %27 = arith.minimumf %23, %26 : vector<64x16xf32>
    %28 = math.exp %27 : vector<64x16xf32>
    %cst_10 = arith.constant 1.000000e+00 : f32
    %29 = vector.broadcast %cst_10 : f32 to vector<64x16xf32>
    %30 = arith.subf %28, %29 : vector<64x16xf32>
    %31 = arith.select %25, %23, %30 : vector<64x16xi1>, vector<64x16xf32>
    %c0_11 = arith.constant 0 : index
    %c0_12 = arith.constant 0 : index
    %32 = vector.load %arg5[%c0_11, %c0_12] : memref<16x8xf32, #tpu.memory_space<vmem>>, vector<16x8xf32>
    %cst_13 = arith.constant dense<0.000000e+00> : vector<64x8xf32>
    %33 = tpu.matmul %31, %32, %cst_13 {dimension_numbers = #tpu.dot_dimension_numbers<[1], [0], [0], [1], [0, 0, 1, 1], [], []>} : vector<64x16xf32>, vector<16x8xf32>, vector<64x8xf32> -> vector<64x8xf32>
    %c0_14 = arith.constant 0 : index
    %c0_15 = arith.constant 0 : index
    %c0_16 = arith.constant 0 : index
    %34 = vector.load %arg6[%c0_14, %c0_15, %c0_16] : memref<1x64x8xf32, #tpu.memory_space<vmem>>, vector<1x64x8xf32>
    %35 = vector.shape_cast %34 : vector<1x64x8xf32> to vector<64x8xf32>
    %36 = vector.shape_cast %33 : vector<64x8xf32> to vector<1x64x8xf32>
    tpu.vector_store %arg6[%c0_14, %c0_15, %c0_16], %36 {strides = array<i32>} : memref<1x64x8xf32, #tpu.memory_space<vmem>>, vector<1x64x8xf32>,
    return
  }
  func.func @transform_0(%arg0: i32) -> (i32, i32, i32) {
    %c0_i32 = arith.constant 0 : i32
    %c0_i32_0 = arith.constant 0 : i32
    %c0_i32_1 = arith.constant 0 : i32
    return %arg0, %c0_i32, %c0_i32_0 : i32, i32, i32
  }
  func.func @transform_1(%arg0: i32) -> (i32, i32) {
    %c0_i32 = arith.constant 0 : i32
    %c0_i32_0 = arith.constant 0 : i32
    %c0_i32_1 = arith.constant 0 : i32
    return %c0_i32, %c0_i32_0 : i32, i32
  }
  func.func @transform_2(%arg0: i32) -> (i32, i32) {
    %c0_i32 = arith.constant 0 : i32
    %c0_i32_0 = arith.constant 0 : i32
    %c0_i32_1 = arith.constant 0 : i32
    return %c0_i32, %c0_i32_0 : i32, i32
  }
  func.func @transform_3(%arg0: i32) -> (i32, i32) {
    %c0_i32 = arith.constant 0 : i32
    %c0_i32_0 = arith.constant 0 : i32
    %c0_i32_1 = arith.constant 0 : i32
    return %c0_i32, %c0_i32_0 : i32, i32
  }
  func.func @transform_4(%arg0: i32) -> (i32, i32) {
    %c0_i32 = arith.constant 0 : i32
    %c0_i32_0 = arith.constant 0 : i32
    %c0_i32_1 = arith.constant 0 : i32
    return %c0_i32, %c0_i32_0 : i32, i32
  }
  func.func @transform_5(%arg0: i32) -> (i32, i32, i32) {
    %c0_i32 = arith.constant 0 : i32
    %c0_i32_0 = arith.constant 0 : i32
    %c0_i32_1 = arith.constant 0 : i32
    return %arg0, %c0_i32, %c0_i32_0 : i32, i32, i32
  }
}

module attributes {stable_mosaic.version = 11 : i64} {
  func.func @_lstm2_kernel(%arg0: i32, %arg1: memref<1x8x512xf32, #tpu.memory_space<vmem>>, %arg2: memref<128x512xf32, #tpu.memory_space<vmem>>, %arg3: memref<256x512xf32, #tpu.memory_space<vmem>>, %arg4: memref<1x512xf32, #tpu.memory_space<vmem>>, %arg5: memref<1x8x128xf32, #tpu.memory_space<vmem>>, %arg6: memref<1x128xf32, #tpu.memory_space<vmem>>, %arg7: memref<1x128xf32, #tpu.memory_space<vmem>>, %arg8: memref<1x128xf32, #tpu.memory_space<vmem>>, %arg9: memref<1x128xf32, #tpu.memory_space<vmem>>) attributes {dimension_semantics = [#tpu.dimension_semantics<parallel>], iteration_bounds = array<i64: 2>, scalar_prefetch = 0 : i64, scratch_operands = 4 : i64, tpu.core_type = #tpu.core_type<tc>, window_params = [{transform_indices = @transform_0, window_bounds = array<i64: 1, 8, 512>}, {pipeline_mode = #tpu.pipeline_mode<synchronous>, transform_indices = @transform_1, window_bounds = array<i64: 128, 512>}, {pipeline_mode = #tpu.pipeline_mode<synchronous>, transform_indices = @transform_2, window_bounds = array<i64: 256, 512>}, {pipeline_mode = #tpu.pipeline_mode<synchronous>, transform_indices = @transform_3, window_bounds = array<i64: 1, 512>}, {transform_indices = @transform_4, window_bounds = array<i64: 1, 8, 128>}]} {
    %cst = arith.constant 0.000000e+00 : f32
    %0 = vector.broadcast %cst : f32 to vector<1x128xf32>
    %c0 = arith.constant 0 : index
    %c0_0 = arith.constant 0 : index
    %1 = vector.load %arg6[%c0, %c0_0] : memref<1x128xf32, #tpu.memory_space<vmem>>, vector<1x128xf32>
    tpu.vector_store %arg6[%c0, %c0_0], %0 {strides = array<i32>} : memref<1x128xf32, #tpu.memory_space<vmem>>, vector<1x128xf32>,
    %cst_1 = arith.constant 0.000000e+00 : f32
    %2 = vector.broadcast %cst_1 : f32 to vector<1x128xf32>
    %c0_2 = arith.constant 0 : index
    %c0_3 = arith.constant 0 : index
    %3 = vector.load %arg7[%c0_2, %c0_3] : memref<1x128xf32, #tpu.memory_space<vmem>>, vector<1x128xf32>
    tpu.vector_store %arg7[%c0_2, %c0_3], %2 {strides = array<i32>} : memref<1x128xf32, #tpu.memory_space<vmem>>, vector<1x128xf32>,
    %cst_4 = arith.constant 0.000000e+00 : f32
    %4 = vector.broadcast %cst_4 : f32 to vector<1x128xf32>
    %c0_5 = arith.constant 0 : index
    %c0_6 = arith.constant 0 : index
    %5 = vector.load %arg8[%c0_5, %c0_6] : memref<1x128xf32, #tpu.memory_space<vmem>>, vector<1x128xf32>
    tpu.vector_store %arg8[%c0_5, %c0_6], %4 {strides = array<i32>} : memref<1x128xf32, #tpu.memory_space<vmem>>, vector<1x128xf32>,
    %cst_7 = arith.constant 0.000000e+00 : f32
    %6 = vector.broadcast %cst_7 : f32 to vector<1x128xf32>
    %c0_8 = arith.constant 0 : index
    %c0_9 = arith.constant 0 : index
    %7 = vector.load %arg9[%c0_8, %c0_9] : memref<1x128xf32, #tpu.memory_space<vmem>>, vector<1x128xf32>
    tpu.vector_store %arg9[%c0_8, %c0_9], %6 {strides = array<i32>} : memref<1x128xf32, #tpu.memory_space<vmem>>, vector<1x128xf32>,
    %c0_i32 = arith.constant 0 : i32
    %c9_i32 = arith.constant 9 : i32
    %8 = arith.addi %c0_i32, %c9_i32 : i32
    %c1_i32 = arith.constant 1 : i32
    scf.for %arg10 = %c0_i32 to %8 step %c1_i32  : i32 {
      %c0_11 = arith.constant 0 : index
      %c0_12 = arith.constant 0 : index
      %9 = vector.load %arg6[%c0_11, %c0_12] : memref<1x128xf32, #tpu.memory_space<vmem>>, vector<1x128xf32>
      %c0_i32_13 = arith.constant 0 : i32
      %10 = arith.cmpi sgt, %arg10, %c0_i32_13 : i32
      %11 = arith.extui %10 : i1 to i32
      %c0_i32_14 = arith.constant 0 : i32
      %12 = arith.cmpi ne, %11, %c0_i32_14 : i32
      scf.if %12 {
        %c0_16 = arith.constant 0 : index
        %c0_17 = arith.constant 0 : index
        %16 = vector.load %arg8[%c0_16, %c0_17] : memref<1x128xf32, #tpu.memory_space<vmem>>, vector<1x128xf32>
        %17 = tpu.concatenate %9, %16 in 1 : vector<1x128xf32>, vector<1x128xf32> -> vector<1x256xf32>
        %c0_18 = arith.constant 0 : index
        %c0_19 = arith.constant 0 : index
        %18 = vector.load %arg3[%c0_18, %c0_19] : memref<256x512xf32, #tpu.memory_space<vmem>>, vector<256x512xf32>
        %cst_20 = arith.constant dense<0.000000e+00> : vector<1x512xf32>
        %19 = tpu.matmul %17, %18, %cst_20 {dimension_numbers = #tpu.dot_dimension_numbers<[1], [0], [0], [1], [0, 0, 1, 1], [], []>} : vector<1x256xf32>, vector<256x512xf32>, vector<1x512xf32> -> vector<1x512xf32>
        %c0_21 = arith.constant 0 : index
        %c0_22 = arith.constant 0 : index
        %20 = vector.load %arg4[%c0_21, %c0_22] : memref<1x512xf32, #tpu.memory_space<vmem>>, vector<1x512xf32>
        %21 = arith.addf %19, %20 : vector<1x512xf32>
        %22 = vector.extract_strided_slice %21 {offsets = [0, 0], sizes = [1, 128], strides = [1, 1]} : vector<1x512xf32> to vector<1x128xf32>
        %cst_23 = arith.constant 5.000000e-01 : f32
        %23 = vector.broadcast %cst_23 : f32 to vector<1x128xf32>
        %24 = arith.mulf %23, %22 : vector<1x128xf32>
        %25 = math.tanh %24 : vector<1x128xf32>
        %cst_24 = arith.constant 5.000000e-01 : f32
        %26 = vector.broadcast %cst_24 : f32 to vector<1x128xf32>
        %27 = arith.mulf %26, %25 : vector<1x128xf32>
        %cst_25 = arith.constant 5.000000e-01 : f32
        %28 = vector.broadcast %cst_25 : f32 to vector<1x128xf32>
        %29 = arith.addf %27, %28 : vector<1x128xf32>
        %30 = vector.extract_strided_slice %21 {offsets = [0, 128], sizes = [1, 128], strides = [1, 1]} : vector<1x512xf32> to vector<1x128xf32>
        %cst_26 = arith.constant 5.000000e-01 : f32
        %31 = vector.broadcast %cst_26 : f32 to vector<1x128xf32>
        %32 = arith.mulf %31, %30 : vector<1x128xf32>
        %33 = math.tanh %32 : vector<1x128xf32>
        %cst_27 = arith.constant 5.000000e-01 : f32
        %34 = vector.broadcast %cst_27 : f32 to vector<1x128xf32>
        %35 = arith.mulf %34, %33 : vector<1x128xf32>
        %cst_28 = arith.constant 5.000000e-01 : f32
        %36 = vector.broadcast %cst_28 : f32 to vector<1x128xf32>
        %37 = arith.addf %35, %36 : vector<1x128xf32>
        %38 = vector.extract_strided_slice %21 {offsets = [0, 256], sizes = [1, 128], strides = [1, 1]} : vector<1x512xf32> to vector<1x128xf32>
        %39 = math.tanh %38 : vector<1x128xf32>
        %40 = vector.extract_strided_slice %21 {offsets = [0, 384], sizes = [1, 128], strides = [1, 1]} : vector<1x512xf32> to vector<1x128xf32>
        %cst_29 = arith.constant 5.000000e-01 : f32
        %41 = vector.broadcast %cst_29 : f32 to vector<1x128xf32>
        %42 = arith.mulf %41, %40 : vector<1x128xf32>
        %43 = math.tanh %42 : vector<1x128xf32>
        %cst_30 = arith.constant 5.000000e-01 : f32
        %44 = vector.broadcast %cst_30 : f32 to vector<1x128xf32>
        %45 = arith.mulf %44, %43 : vector<1x128xf32>
        %cst_31 = arith.constant 5.000000e-01 : f32
        %46 = vector.broadcast %cst_31 : f32 to vector<1x128xf32>
        %47 = arith.addf %45, %46 : vector<1x128xf32>
        %c0_32 = arith.constant 0 : index
        %c0_33 = arith.constant 0 : index
        %48 = vector.load %arg9[%c0_32, %c0_33] : memref<1x128xf32, #tpu.memory_space<vmem>>, vector<1x128xf32>
        %49 = arith.mulf %37, %48 : vector<1x128xf32>
        %50 = arith.mulf %29, %39 : vector<1x128xf32>
        %51 = arith.addf %49, %50 : vector<1x128xf32>
        %52 = math.tanh %51 : vector<1x128xf32>
        %53 = arith.mulf %47, %52 : vector<1x128xf32>
        %c0_34 = arith.constant 0 : index
        %c0_35 = arith.constant 0 : index
        %54 = vector.load %arg9[%c0_34, %c0_35] : memref<1x128xf32, #tpu.memory_space<vmem>>, vector<1x128xf32>
        tpu.vector_store %arg9[%c0_34, %c0_35], %51 {strides = array<i32>} : memref<1x128xf32, #tpu.memory_space<vmem>>, vector<1x128xf32>,
        %c0_36 = arith.constant 0 : index
        %c0_37 = arith.constant 0 : index
        %55 = vector.load %arg8[%c0_36, %c0_37] : memref<1x128xf32, #tpu.memory_space<vmem>>, vector<1x128xf32>
        tpu.vector_store %arg8[%c0_36, %c0_37], %53 {strides = array<i32>} : memref<1x128xf32, #tpu.memory_space<vmem>>, vector<1x128xf32>,
        %c1_i32_38 = arith.constant 1 : i32
        %56 = arith.subi %arg10, %c1_i32_38 : i32
        %c0_i32_39 = arith.constant 0 : i32
        %57 = arith.maxsi %56, %c0_i32_39 : i32
        %c0_40 = arith.constant 0 : index
        %58 = arith.index_cast %57 : i32 to index
        %c0_41 = arith.constant 0 : index
        %59 = vector.load %arg5[%c0_40, %58, %c0_41] : memref<1x8x128xf32, #tpu.memory_space<vmem>>, vector<1x1x128xf32>
        %60 = vector.shape_cast %59 : vector<1x1x128xf32> to vector<1x128xf32>
        %61 = vector.shape_cast %53 : vector<1x128xf32> to vector<1x1x128xf32>
        tpu.vector_store %arg5[%c0_40, %58, %c0_41], %61 {strides = array<i32>} : memref<1x8x128xf32, #tpu.memory_space<vmem>>, vector<1x1x128xf32>,
      } else {
      }
      %c8_i32 = arith.constant 8 : i32
      %13 = arith.cmpi slt, %arg10, %c8_i32 : i32
      %14 = arith.extui %13 : i1 to i32
      %c0_i32_15 = arith.constant 0 : i32
      %15 = arith.cmpi ne, %14, %c0_i32_15 : i32
      scf.if %15 {
        %c0_16 = arith.constant 0 : index
        %16 = arith.index_cast %arg10 : i32 to index
        %c0_17 = arith.constant 0 : index
        %17 = vector.load %arg1[%c0_16, %16, %c0_17] : memref<1x8x512xf32, #tpu.memory_space<vmem>>, vector<1x1x512xf32>
        %18 = vector.shape_cast %17 : vector<1x1x512xf32> to vector<1x512xf32>
        %c0_18 = arith.constant 0 : index
        %c0_19 = arith.constant 0 : index
        %19 = vector.load %arg2[%c0_18, %c0_19] : memref<128x512xf32, #tpu.memory_space<vmem>>, vector<128x512xf32>
        %cst_20 = arith.constant dense<0.000000e+00> : vector<1x512xf32>
        %20 = tpu.matmul %9, %19, %cst_20 {dimension_numbers = #tpu.dot_dimension_numbers<[1], [0], [0], [1], [0, 0, 1, 1], [], []>} : vector<1x128xf32>, vector<128x512xf32>, vector<1x512xf32> -> vector<1x512xf32>
        %21 = arith.addf %18, %20 : vector<1x512xf32>
        %22 = vector.extract_strided_slice %21 {offsets = [0, 0], sizes = [1, 128], strides = [1, 1]} : vector<1x512xf32> to vector<1x128xf32>
        %cst_21 = arith.constant 5.000000e-01 : f32
        %23 = vector.broadcast %cst_21 : f32 to vector<1x128xf32>
        %24 = arith.mulf %23, %22 : vector<1x128xf32>
        %25 = math.tanh %24 : vector<1x128xf32>
        %cst_22 = arith.constant 5.000000e-01 : f32
        %26 = vector.broadcast %cst_22 : f32 to vector<1x128xf32>
        %27 = arith.mulf %26, %25 : vector<1x128xf32>
        %cst_23 = arith.constant 5.000000e-01 : f32
        %28 = vector.broadcast %cst_23 : f32 to vector<1x128xf32>
        %29 = arith.addf %27, %28 : vector<1x128xf32>
        %30 = vector.extract_strided_slice %21 {offsets = [0, 128], sizes = [1, 128], strides = [1, 1]} : vector<1x512xf32> to vector<1x128xf32>
        %cst_24 = arith.constant 5.000000e-01 : f32
        %31 = vector.broadcast %cst_24 : f32 to vector<1x128xf32>
        %32 = arith.mulf %31, %30 : vector<1x128xf32>
        %33 = math.tanh %32 : vector<1x128xf32>
        %cst_25 = arith.constant 5.000000e-01 : f32
        %34 = vector.broadcast %cst_25 : f32 to vector<1x128xf32>
        %35 = arith.mulf %34, %33 : vector<1x128xf32>
        %cst_26 = arith.constant 5.000000e-01 : f32
        %36 = vector.broadcast %cst_26 : f32 to vector<1x128xf32>
        %37 = arith.addf %35, %36 : vector<1x128xf32>
        %38 = vector.extract_strided_slice %21 {offsets = [0, 256], sizes = [1, 128], strides = [1, 1]} : vector<1x512xf32> to vector<1x128xf32>
        %39 = math.tanh %38 : vector<1x128xf32>
        %40 = vector.extract_strided_slice %21 {offsets = [0, 384], sizes = [1, 128], strides = [1, 1]} : vector<1x512xf32> to vector<1x128xf32>
        %cst_27 = arith.constant 5.000000e-01 : f32
        %41 = vector.broadcast %cst_27 : f32 to vector<1x128xf32>
        %42 = arith.mulf %41, %40 : vector<1x128xf32>
        %43 = math.tanh %42 : vector<1x128xf32>
        %cst_28 = arith.constant 5.000000e-01 : f32
        %44 = vector.broadcast %cst_28 : f32 to vector<1x128xf32>
        %45 = arith.mulf %44, %43 : vector<1x128xf32>
        %cst_29 = arith.constant 5.000000e-01 : f32
        %46 = vector.broadcast %cst_29 : f32 to vector<1x128xf32>
        %47 = arith.addf %45, %46 : vector<1x128xf32>
        %c0_30 = arith.constant 0 : index
        %c0_31 = arith.constant 0 : index
        %48 = vector.load %arg7[%c0_30, %c0_31] : memref<1x128xf32, #tpu.memory_space<vmem>>, vector<1x128xf32>
        %49 = arith.mulf %37, %48 : vector<1x128xf32>
        %50 = arith.mulf %29, %39 : vector<1x128xf32>
        %51 = arith.addf %49, %50 : vector<1x128xf32>
        %52 = math.tanh %51 : vector<1x128xf32>
        %53 = arith.mulf %47, %52 : vector<1x128xf32>
        %c0_32 = arith.constant 0 : index
        %c0_33 = arith.constant 0 : index
        %54 = vector.load %arg7[%c0_32, %c0_33] : memref<1x128xf32, #tpu.memory_space<vmem>>, vector<1x128xf32>
        tpu.vector_store %arg7[%c0_32, %c0_33], %51 {strides = array<i32>} : memref<1x128xf32, #tpu.memory_space<vmem>>, vector<1x128xf32>,
        %c0_34 = arith.constant 0 : index
        %c0_35 = arith.constant 0 : index
        %55 = vector.load %arg6[%c0_34, %c0_35] : memref<1x128xf32, #tpu.memory_space<vmem>>, vector<1x128xf32>
        tpu.vector_store %arg6[%c0_34, %c0_35], %53 {strides = array<i32>} : memref<1x128xf32, #tpu.memory_space<vmem>>, vector<1x128xf32>,
      } else {
      }
    }
    %c9_i32_10 = arith.constant 9 : i32
    return
  }
  func.func @transform_0(%arg0: i32) -> (i32, i32, i32) {
    %c0_i32 = arith.constant 0 : i32
    %c0_i32_0 = arith.constant 0 : i32
    %c0_i32_1 = arith.constant 0 : i32
    return %arg0, %c0_i32, %c0_i32_0 : i32, i32, i32
  }
  func.func @transform_1(%arg0: i32) -> (i32, i32) {
    %c0_i32 = arith.constant 0 : i32
    %c0_i32_0 = arith.constant 0 : i32
    %c0_i32_1 = arith.constant 0 : i32
    return %c0_i32, %c0_i32_0 : i32, i32
  }
  func.func @transform_2(%arg0: i32) -> (i32, i32) {
    %c0_i32 = arith.constant 0 : i32
    %c0_i32_0 = arith.constant 0 : i32
    %c0_i32_1 = arith.constant 0 : i32
    return %c0_i32, %c0_i32_0 : i32, i32
  }
  func.func @transform_3(%arg0: i32) -> (i32, i32) {
    %c0_i32 = arith.constant 0 : i32
    %c0_i32_0 = arith.constant 0 : i32
    %c0_i32_1 = arith.constant 0 : i32
    return %c0_i32, %c0_i32_0 : i32, i32
  }
  func.func @transform_4(%arg0: i32) -> (i32, i32, i32) {
    %c0_i32 = arith.constant 0 : i32
    %c0_i32_0 = arith.constant 0 : i32
    %c0_i32_1 = arith.constant 0 : i32
    return %arg0, %c0_i32, %c0_i32_0 : i32, i32, i32
  }
}

</mosaic_0001>

<bundles_post_ra>
// kernel: cnn_lstm_forward.5
= control target key start
LH: loop header
LB: loop body
LE: loop exit
PB: predicated region body
PF: predicated region fallthrough
CT: control target
= control target key end

     0   :  { %s679_s15 = smov 0   ;;  %s765_s0 = inlined_call_operand.vmem [shape: f32[6,1,76], index: 0, kind: input, shape index: {}]   ;;  %s766_s1 = inlined_call_operand.vmem [shape: f32[16,13], index: 1, kind: input, shape index: {}]   ;;  %s767_s2 = inlined_call_operand.vmem [shape: f32[16,1], index: 2, kind: input, shape index: {}]   ;;  %s768_s3 = inlined_call_operand.vmem [shape: f32[16,1], index: 3, kind: input, shape index: {}]   ;;  %s769_s4 = inlined_call_operand.vmem [shape: f32[6,16,64], index: 4, kind: output, shape index: {}]  }
   0x1 LB: > { %s550_s16 = sadd.s32 4294967295, %s627_s15   ;;  %p554_p0 = scmp.ge.s32.totalorder %s627_s15, 1  ;;  %s627_s15 = sphi %s679_s15, %s14_s15  }
   0x2   : > { %p160_p1 = scmp.lt.s32.totalorder %s627_s15, 7 }
   0x4   : > { %p161_p2 = pnand %p554_p0, %p160_p1 }
   0x5   : > { %v690_v0 = vld [vmem:[%s766_s1] sm:$0xff] (!%p161_p2)  ;;  %v629_v1 = vmov (!%p161_p2), 2   ;;  %v630_v2 = vmov (!%p161_p2), 1   ;;  %v194_v3 = vld [vmem:[%s766_s1 + $0x8] sm:$0xff] (!%p161_p2)  ;;  %v631_v4 = vmov (!%p161_p2), 3   ;;  %v632_v5 = vmov (!%p161_p2), 4  }
   0x6   : > { %164 = sbr.rel (%p161_p2) target bundleno = 343 (0x157), region = 36  ;;  %597 = vset.pattern.permute.xlu1 (!%p161_p2), %v629_v1  ;;  %596 = vset.pattern.permute.xlu0 (!%p161_p2), %v630_v2  ;;  %v633_v6 = vmov (!%p161_p2), 5   ;;  %v634_v7 = vmov (!%p161_p2), 6   ;;  %v635_v8 = vmov (!%p161_p2), 7   ;;  %v636_v9 = vmov (!%p161_p2), 9   ;;  %v455_v14 = vld [vmem:[%s767_s2] sm:$0xff] (!%p161_p2) }
   0x7   : > { %236 = vperm.xlu1 (!%p161_p2), %597, %v690_v0   ;;  %216 = vperm.xlu0 (!%p161_p2), %596, %v690_v0   ;;  %v637_v10 = vmov (!%p161_p2), 10   ;;  %v638_v11 = vmov (!%p161_p2), 8   ;;  %v639_v12 = vmov (!%p161_p2), 12   ;;  %v640_v13 = vmov (!%p161_p2), 0   ;;  %v469_v15 = vld [vmem:[%s768_s3] sm:$0xff] (!%p161_p2)  ;;  %v456_v17 = vld [vmem:[%s767_s2 + $0x8] sm:$0xff] (!%p161_p2) }
   0x8   : > { %v641_v16 = vmov (!%p161_p2), 11   ;;  %v470_v18 = vld [vmem:[%s768_s3 + $0x8] sm:$0xff] (!%p161_p2)  ;;  %p184_p3 = scmp.lt.s32.totalorder (!%p161_p2), %s550_s16, 5  ;;  %s642_s6 = smov (!%p161_p2), 126   ;;  %vm495_vm0 = vcmask (!%p161_p2), 523264  }
   0x9   : > { %s643_s7 = smov (!%p161_p2), 127   ;;  %s644_s8 = smov (!%p161_p2), 125  }
   0xa   : > { %s645_s9 = smov (!%p161_p2), 124   ;;  %s646_s10 = smov (!%p161_p2), 123  }
   0xb   : > { %240 = vperm.xlu1 (!%p161_p2), %597, %v194_v3   ;;  %220 = vperm.xlu0 (!%p161_p2), %596, %v194_v3   ;;  %s647_s11 = smov (!%p161_p2), 122   ;;  %s648_s12 = smov (!%p161_p2), 121  }
   0xc   : > { %s649_s13 = smov (!%p161_p2), 120   ;;  %s650_s14 = smov (!%p161_p2), 119  }
   0xd   : > { %s771_s16 = smov (!%p184_p3, %s550_s16), 5  ;;  %s651_s17 = smov 118  }
   0xe   : > { %s186_s5 = scalar_lea.vmem %s765_s0, %s771_s16  ;;  %s652_s18 = smov 117  }
   0xf   : > { %599 = vset.pattern.permute.xlu1 %v631_v4  ;;  %598 = vset.pattern.permute.xlu0 %v631_v4  ;;  %v730_v19 = vld [vmem:[%s186_s5] ss:$0 sm:$0xff]  ;;  %s653_s19 = smov 116   ;;  %s562_s20 = sshll.u32 %s771_s16, 4 }
  0x10   : > { %260 = vperm.xlu1 %599, %v194_v3   ;;  %256 = vperm.xlu0 %598, %v690_v0   ;;  %s191_s23 = scalar_lea.vmem %s769_s4, %s562_s20 }
  0x14   : > { %600 = vset.pattern.permute.xlu1 %v632_v5  ;;  %601 = vset.pattern.permute.xlu0 %v632_v5 }
  0x15   : > { %276 = vperm.xlu1 %600, %v690_v0   ;;  %280 = vperm.xlu0 %601, %v194_v3  }
  0x19   : > { %602 = vset.pattern.permute.xlu1 %v633_v6  ;;  %603 = vset.pattern.permute.xlu0 %v634_v7 }
  0x1a   : > { %296 = vperm.xlu1 %602, %v690_v0   ;;  %316 = vperm.xlu0 %603, %v690_v0  }
  0x1e   : > { %300 = vperm.xlu1 %602, %v194_v3   ;;  %606 = vset.pattern.permute.xlu0 %v635_v8 }
  0x1f   : > { %340 = vperm.xlu0 %606, %v194_v3  }
  0x22   : > { %604 = vset.pattern.permute.xlu1 %v634_v7 }
  0x23   : > { %320 = vperm.xlu1 %604, %v194_v3   ;;  %608 = vset.pattern.permute.xlu0 %v636_v9 }
  0x24   : > { %376 = vperm.xlu0 %608, %v690_v0  }
  0x27   : > { %605 = vset.pattern.permute.xlu1 %v635_v8 }
  0x28   : > { %336 = vperm.xlu1 %605, %v690_v0   ;;  %611 = vset.pattern.permute.xlu0 %v637_v10 }
  0x29   : > { %400 = vperm.xlu0 %611, %v194_v3  }
  0x2c   : > { %607 = vset.pattern.permute.xlu1 %v638_v11 }
  0x2d   : > { %356 = vperm.xlu1 %607, %v690_v0   ;;  %613 = vset.pattern.permute.xlu0 %v639_v12 }
  0x2e   : > { %436 = vperm.xlu0 %613, %v690_v0  }
  0x31   : > { %360 = vperm.xlu1 %607, %v194_v3  }
  0x32   : > { %616 = vset.pattern.permute.xlu0 %v640_v13 }
  0x33   : > { %202 = vperm.xlu0 %616, %v194_v3  }
  0x35   : > { %609 = vset.pattern.permute.xlu1 %v636_v9 }
  0x36   : > { %380 = vperm.xlu1 %609, %v194_v3  }
  0x37   : > { %459 = vperm.xlu0 %616, %v455_v14  }
  0x3a   : > { %610 = vset.pattern.permute.xlu1 %v637_v10 }
  0x3b   : > { %396 = vperm.xlu1 %610, %v690_v0   ;;  %473 = vperm.xlu0 %616, %v469_v15  }
  0x3f   : > { %612 = vset.pattern.permute.xlu1 %v641_v16 }
  0x40   : > { %416 = vperm.xlu1 %612, %v690_v0  }
  0x44   : > { %420 = vperm.xlu1 %612, %v194_v3  }
  0x48   : > { %614 = vset.pattern.permute.xlu1 %v639_v12 }
  0x49   : > { %440 = vperm.xlu1 %614, %v194_v3  }
  0x4d   : > { %615 = vset.pattern.permute.xlu1 %v640_v13 }
  0x4e   : > { %197 = vperm.xlu1 %615, %v690_v0  }
  0x52   : > { %464 = vperm.xlu1 %615, %v456_v17  }
  0x56   : > { %478 = vperm.xlu1 %615, %v470_v18  }
  0x86   : > { %v237_v20 = vpop.permute.xlu1 %236  ;;  %v217_v21 = vpop.permute.xlu0 %216 }
  0x87   : > { %v243_v22 = vmul.f32 %v730_v19, %v237_v20  ;;  %v223_v23 = vmul.f32 %v730_v19, %v217_v21 }
  0x89   : > { %247 = vrot.lane.b32.xlu0 %v243_v22, %s642_s6  ;;  %227 = vrot.lane.b32.xlu1 %v223_v23, %s643_s7 }
  0x8a   : > { %v241_v24 = vpop.permute.xlu1 %240  ;;  %v221_v25 = vpop.permute.xlu0 %220 }
  0x8b   : > { %v224_v26 = vmul.f32 %v730_v19, %v221_v25  ;;  %v244_v27 = vmul.f32 %v730_v19, %v241_v24 }
  0x8d   : > { %229 = vrot.lane.b32.xlu1 %v224_v26, %s643_s7 }
  0x8f   : > { %v261_v28 = vpop.permute.xlu1 %260  ;;  %v257_v29 = vpop.permute.xlu0 %256 }
  0x90   : > { %v263_v30 = vmul.f32 %v730_v19, %v257_v29  ;;  %v264_v31 = vmul.f32 %v730_v19, %v261_v28 }
  0x91   : > { %249 = vrot.lane.b32.xlu1 %v244_v27, %s642_s6 }
  0x92   : > { %267 = vrot.lane.b32.xlu0 %v263_v30, %s644_s8 }
  0x94   : > { %v277_v32 = vpop.permute.xlu1 %276  ;;  %v281_v33 = vpop.permute.xlu0 %280 }
  0x95   : > { %v283_v34 = vmul.f32 %v730_v19, %v277_v32  ;;  %269 = vrot.lane.b32.xlu1 %v264_v31, %s644_s8  ;;  %v284_v35 = vmul.f32 %v730_v19, %v281_v33 }
  0x97   : > { %287 = vrot.lane.b32.xlu0 %v283_v34, %s645_s9 }
  0x99   : > { %v297_v36 = vpop.permute.xlu1 %296  ;;  %289 = vrot.lane.b32.xlu1 %v284_v35, %s645_s9  ;;  %v317_v37 = vpop.permute.xlu0 %316 }
  0x9a   : > { %v303_v38 = vmul.f32 %v730_v19, %v297_v36  ;;  %v323_v39 = vmul.f32 %v730_v19, %v317_v37 }
  0x9c   : > { %307 = vrot.lane.b32.xlu0 %v303_v38, %s646_s10 }
  0x9d   : > { %v301_v40 = vpop.permute.xlu1 %300 }
  0x9e   : > { %v304_v41 = vmul.f32 %v730_v19, %v301_v40  ;;  %v341_v43 = vpop.permute.xlu0 %340 }
  0x9f   : > { %v344_v45 = vmul.f32 %v730_v19, %v341_v43 }
  0xa0   : > { %327 = vrot.lane.b32.xlu0 %v323_v39, %s647_s11  ;;  %309 = vrot.lane.b32.xlu1 %v304_v41, %s646_s10 }
  0xa2   : > { %v321_v42 = vpop.permute.xlu1 %320 }
  0xa3   : > { %v324_v44 = vmul.f32 %v730_v19, %v321_v42  ;;  %v377_v49 = vpop.permute.xlu0 %376 }
  0xa4   : > { %v383_v51 = vmul.f32 %v730_v19, %v377_v49 }
  0xa5   : > { %329 = vrot.lane.b32.xlu1 %v324_v44, %s647_s11 }
  0xa7   : > { %v337_v46 = vpop.permute.xlu1 %336 }
  0xa8   : > { %v343_v47 = vmul.f32 %v730_v19, %v337_v46  ;;  %v401_v55 = vpop.permute.xlu0 %400 }
  0xa9   : > { %349 = vrot.lane.b32.xlu1 %v344_v45, %s648_s12  ;;  %v404_v57 = vmul.f32 %v730_v19, %v401_v55 }
  0xaa   : > { %347 = vrot.lane.b32.xlu0 %v343_v47, %s648_s12 }
  0xac   : > { %v357_v48 = vpop.permute.xlu1 %356 }
  0xad   : > { %v363_v50 = vmul.f32 %v730_v19, %v357_v48  ;;  %v437_v61 = vpop.permute.xlu0 %436 }
  0xae   : > { %v443_v63 = vmul.f32 %v730_v19, %v437_v61 }
  0xaf   : > { %367 = vrot.lane.b32.xlu0 %v363_v50, %s649_s13 }
  0xb0   : > { %v361_v52 = vpop.permute.xlu1 %360 }
  0xb1   : > { %v364_v53 = vmul.f32 %v730_v19, %v361_v52 }
  0xb2   : > { %v203_v6 = vpop.permute.xlu0 %202 }
  0xb3   : > { %387 = vrot.lane.b32.xlu0 %v383_v51, %s650_s14  ;;  %369 = vrot.lane.b32.xlu1 %v364_v53, %s649_s13  ;;  %v212_v26 = vmul.f32 %v730_v19, %v203_v6 }
  0xb5   : > { %v381_v54 = vpop.permute.xlu1 %380 }
  0xb6   : > { %v384_v56 = vmul.f32 %v730_v19, %v381_v54  ;;  %v460_v8 = vpop.permute.xlu0 %459 }
  0xb8   : > { %389 = vrot.lane.b32.xlu1 %v384_v56, %s650_s14 }
  0xba   : > { %v397_v58 = vpop.permute.xlu1 %396  ;;  %v474_v10 = vpop.permute.xlu0 %473 }
  0xbb   : > { %v403_v59 = vmul.f32 %v730_v19, %v397_v58 }
  0xbc   : > { %409 = vrot.lane.b32.xlu1 %v404_v57, %s651_s17 }
  0xbd   : > { %407 = vrot.lane.b32.xlu0 %v403_v59, %s651_s17 }
  0xbf   : > { %v417_v60 = vpop.permute.xlu1 %416 }
  0xc0   : > { %v423_v62 = vmul.f32 %v730_v19, %v417_v60 }
  0xc2   : > { %427 = vrot.lane.b32.xlu0 %v423_v62, %s652_s18 }
  0xc3   : > { %v421_v0 = vpop.permute.xlu1 %420 }
  0xc4   : > { %v424_v1 = vmul.f32 %v730_v19, %v421_v0 }
  0xc6   : > { %447 = vrot.lane.b32.xlu0 %v443_v63, %s653_s19  ;;  %429 = vrot.lane.b32.xlu1 %v424_v1, %s652_s18 }
  0xc8   : > { %v441_v2 = vpop.permute.xlu1 %440 }
  0xc9   : > { %v444_v3 = vmul.f32 %v730_v19, %v441_v2 }
  0xcb   : > { %449 = vrot.lane.b32.xlu1 %v444_v3, %s653_s19 }
  0xcd   : > { %v198_v4 = vpop.permute.xlu1 %197 }
  0xce   : > { %v211_v22 = vmul.f32 %v730_v19, %v198_v4 }
  0xd1   : > { %v465_v5 = vpop.permute.xlu1 %464 }
  0xd5   : > { %v479_v7 = vpop.permute.xlu1 %478 }
  0xfb   : > { %v228_v9 = vpop.permute.xlu1 %227  ;;  %v248_v12 = vpop.permute.xlu0 %247 }
  0xfc   : > { %v233_v25 = vadd.f32 %v228_v9, %v211_v22 }
  0xfe   : > { %v253_v28 = vadd.f32 %v248_v12, %v233_v25 }
  0xff   : > { %v230_v11 = vpop.permute.xlu1 %229 }
 0x100   : > { %v234_v30 = vadd.f32 %v230_v11, %v212_v26 }
 0x103   : > { %v250_v13 = vpop.permute.xlu1 %249 }
 0x104   : > { %v268_v14 = vpop.permute.xlu0 %267  ;;  %v254_v34 = vadd.f32 %v250_v13, %v234_v30 }
 0x105   : > { %v273_v31 = vadd.f32 %v268_v14, %v253_v28 }
 0x107   : > { %v270_v15 = vpop.permute.xlu1 %269 }
 0x108   : > { %v274_v37 = vadd.f32 %v270_v15, %v254_v34 }
 0x109   : > { %v288_v16 = vpop.permute.xlu0 %287 }
 0x10a   : > { %v293_v33 = vadd.f32 %v288_v16, %v273_v31 }
 0x10b   : > { %v290_v17 = vpop.permute.xlu1 %289 }
 0x10c   : > { %v294_v39 = vadd.f32 %v290_v17, %v274_v37 }
 0x10e   : > { %v308_v18 = vpop.permute.xlu0 %307 }
 0x10f   : > { %v313_v35 = vadd.f32 %v308_v18, %v293_v33 }
 0x112   : > { %v310_v20 = vpop.permute.xlu1 %309  ;;  %v328_v21 = vpop.permute.xlu0 %327 }
 0x113   : > { %v333_v38 = vadd.f32 %v328_v21, %v313_v35  ;;  %v314_v43 = vadd.f32 %v310_v20, %v294_v39 }
 0x117   : > { %v330_v23 = vpop.permute.xlu1 %329 }
 0x118   : > { %v334_v45 = vadd.f32 %v330_v23, %v314_v43 }
 0x11b   : > { %v350_v27 = vpop.permute.xlu1 %349 }
 0x11c   : > { %v348_v24 = vpop.permute.xlu0 %347  ;;  %v354_v46 = vadd.f32 %v350_v27, %v334_v45 }
 0x11d   : > { %v353_v41 = vadd.f32 %v348_v24, %v333_v38 }
 0x121   : > { %v368_v29 = vpop.permute.xlu0 %367 }
 0x122   : > { %v373_v44 = vadd.f32 %v368_v29, %v353_v41 }
 0x125   : > { %v370_v32 = vpop.permute.xlu1 %369  ;;  %v388_v36 = vpop.permute.xlu0 %387 }
 0x126   : > { %v393_v19 = vadd.f32 %v388_v36, %v373_v44  ;;  %v374_v50 = vadd.f32 %v370_v32, %v354_v46 }
 0x12a   : > { %v390_v40 = vpop.permute.xlu1 %389 }
 0x12b   : > { %v394_v52 = vadd.f32 %v390_v40, %v374_v50 }
 0x12e   : > { %v410_v47 = vpop.permute.xlu1 %409 }
 0x12f   : > { %v408_v42 = vpop.permute.xlu0 %407  ;;  %v414_v56 = vadd.f32 %v410_v47, %v394_v52 }
 0x130   : > { %v413_v49 = vadd.f32 %v408_v42, %v393_v19 }
 0x134   : > { %v428_v48 = vpop.permute.xlu0 %427 }
 0x135   : > { %v433_v51 = vadd.f32 %v428_v48, %v413_v49 }
 0x138   : > { %v448_v53 = vpop.permute.xlu0 %447  ;;  %v430_v54 = vpop.permute.xlu1 %429 }
 0x139   : > { %v453_v55 = vadd.f32 %v448_v53, %v433_v51  ;;  %v434_v58 = vadd.f32 %v430_v54, %v414_v56 }
 0x13b   : > { %v467_v57 = vmul.f32 %v460_v8, %v453_v55 }
 0x13d   : > { %v481_v59 = vadd.f32 %v474_v10, %v467_v57  ;;  %v450_v60 = vpop.permute.xlu1 %449 }
 0x13e   : > { %v454_v61 = vadd.f32 %v450_v60, %v434_v58 }
 0x13f   : > { %v485_v62 = vmin.f32 %v481_v59, 0.0  ;;  %vm483_vm1 = vcmp.gt.f32.partialorder %v481_v59, 0.0 }
 0x140   : > { %v468_v63 = vmul.f32 %v465_v5, %v454_v61 }
 0x141   : > { %v487_v0 = vmul.f32 1.442695, %v485_v62 }
 0x142   : > { %v482_v1 = vadd.f32 %v479_v7, %v468_v63 }
 0x143   : > { %617 = vpow2.f32 %v487_v0 }
 0x144   : > { %v486_v2 = vmin.f32 %v482_v1, 0.0  ;;  %vm484_vm2 = vcmp.gt.f32.partialorder %v482_v1, 0.0 }
 0x146   : > { %v489_v3 = vmul.f32 1.442695, %v486_v2 }
 0x148   : > { %619 = vpow2.f32 %v489_v3 }
 0x14d   : > { %v618_v4 = vpop.eup %617 }
 0x14e   : > { %v558_v6 = vadd.f32 -1.0, %v618_v4 }
 0x150   : > { %v493_v8 = vsel %vm483_vm1, %v481_v59, %v558_v6 }
 0x151   : > { %496 = vst.msk [vmem:[%s191_s23] sm:$0xff] %vm495_vm0, %v493_v8 }
 0x152   : > { %v620_v9 = vpop.eup %619 }
 0x153   : > { %v559_v10 = vadd.f32 -1.0, %v620_v9 }
 0x155   : > { %v494_v5 = vsel %vm484_vm2, %v482_v1, %v559_v10 }
 0x156   : > { %497 = vst.msk [vmem:[%s191_s23 + $0x8] sm:$0xff] %vm495_vm0, %v494_v5 }
 0x157 PF: > { %s14_s15 = sadd.s32 1, %s627_s15  }
 0x158   : > { %p11_p4 = scmp.ge.s32.totalorder %s14_s15, 8  }
 0x15a   :  { %13 = sbr.rel (!%p11_p4) target bundleno = 1 (0x1), region = 66 }

// kernel: cnn_lstm_forward.6
= control target key start
LH: loop header
LB: loop body
LE: loop exit
PB: predicated region body
PF: predicated region fallthrough
CT: control target
= control target key end

     0   :  { %s594_s18 = smov 0   ;;  %s673_s0 = inlined_call_operand.vmem [shape: f32[2,3,16,64], index: 0, kind: input, shape index: {}]   ;;  %s674_s1 = inlined_call_operand.vmem [shape: f32[3,16,1], index: 1, kind: input, shape index: {}]   ;;  %s675_s2 = inlined_call_operand.vmem [shape: f32[16,1], index: 2, kind: input, shape index: {}]   ;;  %s676_s3 = inlined_call_operand.vmem [shape: f32[16,1], index: 3, kind: input, shape index: {}]   ;;  %s677_s4 = inlined_call_operand.vmem [shape: f32[64,32], index: 4, kind: input, shape index: {}]   ;;  %s678_s5 = inlined_call_operand.vmem [shape: f32[2,16,32], index: 5, kind: output, shape index: {}]  }
   0x1 LB: > { %s471_s19 = sadd.s32 4294967295, %s561_s18   ;;  %p475_p0 = scmp.ge.s32.totalorder %s561_s18, 1  ;;  %s561_s18 = sphi %s594_s18, %s15_s18  }
   0x2   : > { %p187_p1 = scmp.lt.s32.totalorder %s561_s18, 3 }
   0x4   : > { %p188_p2 = pnand %p475_p0, %p187_p1 }
   0x5   : > { %v226_v0 = vld [vmem:[%s674_s1 + $0x8] sm:$0xff] (!%p188_p2)  ;;  %v225_v1 = vld [vmem:[%s674_s1] sm:$0xff] (!%p188_p2)  ;;  %v563_v2 = vmov (!%p188_p2), 0   ;;  %v480_v3 = vld [vmem:[%s674_s1 + $0x18] sm:$0xff] (!%p188_p2)  ;;  %p215_p3 = scmp.lt.s32.totalorder (!%p188_p2), %s471_s19, 1  ;;  %vm331_vm1 = vcmask (!%p188_p2), 523264  }
   0x6   : > { %191 = sbr.rel (%p188_p2) target bundleno = 387 (0x183), region = 40  ;;  %550 = vset.pattern.permute.xlu1 (!%p188_p2), %v563_v2  ;;  %549 = vset.pattern.permute.xlu0 (!%p188_p2), %v563_v2  ;;  %v479_v4 = vld [vmem:[%s674_s1 + $0x10] sm:$0xff] (!%p188_p2)  ;;  %v484_v5 = vld [vmem:[%s674_s1 + $0x28] sm:$0xff] (!%p188_p2)  ;;  %v483_v6 = vld [vmem:[%s674_s1 + $0x20] sm:$0xff] (!%p188_p2)  ;;  %vm413_vm3 = vcmask (!%p188_p2), 261120  }
   0x7   : > { %236 = vperm.xlu1 (!%p188_p2), %550, %v226_v0   ;;  %231 = vperm.xlu0 (!%p188_p2), %549, %v225_v1   ;;  %v284_v7 = vld [vmem:[%s675_s2 + $0x8] sm:$0xff] (!%p188_p2)  ;;  %v283_v8 = vld [vmem:[%s675_s2] sm:$0xff] (!%p188_p2)  ;;  %v325_v14 = vld [vmem:[%s677_s4 + $0x10] sm:$0xff] (!%p188_p2) }
   0x8   : > { %v298_v9 = vld [vmem:[%s676_s3 + $0x8] sm:$0xff] (!%p188_p2)  ;;  %v297_v10 = vld [vmem:[%s676_s3] sm:$0xff] (!%p188_p2)  ;;  %v326_v15 = vld [vmem:[%s677_s4 + $0x18] sm:$0xff] (!%p188_p2) }
   0x9   : > { %v323_v11 = vld [vmem:[%s677_s4] sm:$0xff] (!%p188_p2)  ;;  %v324_v12 = vld [vmem:[%s677_s4 + $0x8] sm:$0xff] (!%p188_p2)  ;;  %v527_v17 = vpack.c.bf16 (!%p188_p2), %v326_v15, %v325_v14  ;;  %v329_v20 = vld [vmem:[%s677_s4 + $0x30] sm:$0xff] (!%p188_p2) }
   0xa   : > { %v523_v13 = vpack.c.bf16 (!%p188_p2), %v324_v12, %v323_v11  ;;  %v327_v16 = vld [vmem:[%s677_s4 + $0x20] sm:$0xff] (!%p188_p2)  ;;  %v328_v18 = vld [vmem:[%s677_s4 + $0x28] sm:$0xff] (!%p188_p2)  ;;  %v330_v21 = vld [vmem:[%s677_s4 + $0x38] sm:$0xff] (!%p188_p2) }
   0xb   : > { %256 = vperm.xlu1 (!%p188_p2), %550, %v480_v3   ;;  %251 = vperm.xlu0 (!%p188_p2), %549, %v479_v4   ;;  %v531_v19 = vpack.c.bf16 (!%p188_p2), %v328_v18, %v327_v16  ;;  %v535_v22 = vpack.c.bf16 (!%p188_p2), %v330_v21, %v329_v20 }
   0xc   : > { %524 = vmatprep.subr.bf16.mxu0 (!%p188_p2), %v523_v13 }
   0xd   : > { %526 = vmatpush3.bf16.msra.mxu0 %v523_v13  ;;  %s680_s19 = smov (!%p215_p3, %s471_s19), 1 }
   0xe   : > { %528 = vmatprep.subr.bf16.mxu0 %v527_v17  ;;  %s539_s8 = smul.u32 48, %s680_s19  ;;  %s493_s12 = sshll.u32 %s680_s19, 4 }
   0xf   : > { %276 = vperm.xlu1 %550, %v484_v5   ;;  %271 = vperm.xlu0 %549, %v483_v6   ;;  %s224_s15 = scalar_lea.vmem %s678_s5, %s493_s12 }
  0x10   : > { %s219_s11 = scalar_lea.vmem %s673_s0, %s539_s8 }
  0x11   : > { %530 = vmatpush3.bf16.msra.mxu0 %v527_v17  ;;  %v482_v25 = vld [vmem:[%s219_s11 + $0x18] sm:$0xff]  ;;  %v481_v26 = vld [vmem:[%s219_s11 + $0x10] sm:$0xff]  ;;  %v228_v27 = vld [vmem:[%s219_s11 + $0x8] sm:$0xff] }
  0x12   : > { %532 = vmatprep.subr.bf16.mxu0 %v531_v19  ;;  %v227_v28 = vld [vmem:[%s219_s11] sm:$0xff]  ;;  %v486_v33 = vld [vmem:[%s219_s11 + $0x28] sm:$0xff] }
  0x13   : > { %292 = vperm.xlu1 %550, %v284_v7   ;;  %287 = vperm.xlu0 %549, %v283_v8   ;;  %v485_v34 = vld [vmem:[%s219_s11 + $0x20] sm:$0xff] }
  0x15   : > { %534 = vmatpush3.bf16.msra.mxu0 %v531_v19 }
  0x16   : > { %536 = vmatprep.subr.bf16.mxu0 %v535_v22 }
  0x17   : > { %306 = vperm.xlu1 %550, %v298_v9   ;;  %301 = vperm.xlu0 %549, %v297_v10  }
  0x19   : > { %538 = vmatpush3.bf16.msra.mxu0 %v535_v22 }
  0x86   : > { %v237_v23 = vpop.permute.xlu1 %236  ;;  %v232_v24 = vpop.permute.xlu0 %231 }
  0x87   : > { %v240_v35 = vmul.f32 %v237_v23, %v228_v27  ;;  %v239_v36 = vmul.f32 %v232_v24, %v227_v28 }
  0x8a   : > { %v257_v29 = vpop.permute.xlu1 %256  ;;  %v252_v30 = vpop.permute.xlu0 %251 }
  0x8b   : > { %v260_v31 = vmul.f32 %v482_v25, %v257_v29  ;;  %v259_v32 = vmul.f32 %v481_v26, %v252_v30 }
  0x8d   : > { %v262_v39 = vadd.f32 %v260_v31, %v240_v35  ;;  %v261_v40 = vadd.f32 %v259_v32, %v239_v36 }
  0x8e   : > { %v277_v37 = vpop.permute.xlu1 %276  ;;  %v272_v38 = vpop.permute.xlu0 %271 }
  0x8f   : > { %v280_v41 = vmul.f32 %v486_v33, %v277_v37  ;;  %v279_v42 = vmul.f32 %v485_v34, %v272_v38 }
  0x91   : > { %v282_v43 = vadd.f32 %v280_v41, %v262_v39  ;;  %v281_v44 = vadd.f32 %v279_v42, %v261_v40 }
  0x92   : > { %v293_v45 = vpop.permute.xlu1 %292  ;;  %v288_v46 = vpop.permute.xlu0 %287 }
  0x93   : > { %v296_v47 = vmul.f32 %v293_v45, %v282_v43  ;;  %v295_v48 = vmul.f32 %v288_v46, %v281_v44 }
  0x96   : > { %v307_v49 = vpop.permute.xlu1 %306  ;;  %v302_v50 = vpop.permute.xlu0 %301 }
  0x97   : > { %v310_v51 = vadd.f32 %v307_v49, %v296_v47  ;;  %v309_v52 = vadd.f32 %v302_v50, %v295_v48 }
  0x99   : > { %v314_v53 = vmin.f32 %v310_v51, 0.0  ;;  %v313_v54 = vmin.f32 %v309_v52, 0.0  ;;  %vm312_vm0 = vcmp.gt.f32.partialorder %v310_v51, 0.0  ;;  %vm311_vm2 = vcmp.gt.f32.partialorder %v309_v52, 0.0 }
  0x9b   : > { %v317_v55 = vmul.f32 1.442695, %v314_v53  ;;  %v315_v56 = vmul.f32 1.442695, %v313_v54 }
  0x9d   : > { %551 = vpow2.f32 %v317_v55 }
  0x9e   : > { %553 = vpow2.f32 %v315_v56 }
  0xa7   : > { %v552_v57 = vpop.eup %551 }
  0xa8   : > { %v554_v58 = vpop.eup %553  ;;  %v488_v59 = vadd.f32 -1.0, %v552_v57 }
  0xa9   : > { %v487_v60 = vadd.f32 -1.0, %v554_v58 }
  0xaa   : > { %v322_v61 = vsel %vm312_vm0, %v310_v51, %v488_v59 }
  0xab   : > { %v321_v62 = vsel %vm311_vm2, %v309_v52, %v487_v60 }
  0xac   : > { %520 = vmatprep.mubr.msk.f32.mxu0 %vm331_vm1, %v321_v62 }
  0xad   : > { %521 = vmatmul.mubr.msk.f32.vlgmr.msra.gmra.mrb[0].mxu0 %vm331_vm1, %v322_v61 }
 0x180   : > { %v522_v63 = vpop.f32.mrb[0].mxu0 }
 0x181   : > { %415 = vst.msk [vmem:[%s224_s15 + $0x8] sm:$0xff] %vm413_vm3, %v522_v63  ;;  %v404_v0 = vpop.f32.mrb[1].mxu0 }
 0x182   : > { %414 = vst.msk [vmem:[%s224_s15] sm:$0xff] %vm413_vm3, %v404_v0 }
 0x183 PF: > { %s15_s18 = sadd.s32 1, %s561_s18  }
 0x184   : > { %p12_p4 = scmp.ge.s32.totalorder %s15_s18, 4  }
 0x186   :  { %14 = sbr.rel (!%p12_p4) target bundleno = 1 (0x1), region = 74 }

// kernel: cnn_lstm_forward.7
= control target key start
LH: loop header
LB: loop body
LE: loop exit
PB: predicated region body
PF: predicated region fallthrough
CT: control target
= control target key end

     0   :  { %s887_s18 = smov 0   ;;  %s989_s0 = inlined_call_operand.vmem [shape: f32[2,16,44], index: 0, kind: input, shape index: {}]   ;;  %s990_s1 = inlined_call_operand.vmem [shape: f32[32,208], index: 1, kind: input, shape index: {}]   ;;  %s991_s2 = inlined_call_operand.vmem [shape: f32[32,1], index: 2, kind: input, shape index: {}]   ;;  %s992_s3 = inlined_call_operand.vmem [shape: f32[32,1], index: 3, kind: input, shape index: {}]   ;;  %s993_s4 = inlined_call_operand.vmem [shape: f32[32,16], index: 4, kind: input, shape index: {}]   ;;  %s994_s5 = inlined_call_operand.vmem [shape: f32[2,32,16], index: 5, kind: output, shape index: {}]  }
   0x1 LB: > { %s649_s19 = sadd.s32 4294967295, %s841_s18   ;;  %p653_p0 = scmp.ge.s32.totalorder %s841_s18, 1  ;;  %s841_s18 = sphi %s887_s18, %s15_s18  }
   0x2   : > { %p187_p1 = scmp.lt.s32.totalorder %s841_s18, 3 }
   0x4   : > { %p188_p2 = pnand %p653_p0, %p187_p1 }
   0x5   : > { %p215_p3 = scmp.lt.s32.totalorder (!%p188_p2), %s649_s19, 1  ;;  %v843_v0 = vmov (!%p188_p2), 0.0|0.0   ;;  %s844_s24 = smov (!%p188_p2), 127   ;;  %v302_v5 = vld [vmem:[%s990_s1 + $0x8] sm:$0xff] (!%p188_p2)  ;;  %vm309_vm0 = vcmask (!%p188_p2), 654336   ;;  %v407_v7 = vld [vmem:[%s991_s2] sm:$0xff] (!%p188_p2) }
   0x6   : > { %191 = sbr.rel (%p188_p2) target bundleno = 645 (0x285), region = 40  ;;  %696 = vmatprep.subr.bf16.mxu0 (!%p188_p2), %v843_v0  ;;  %s845_s25 = smov (!%p188_p2), 125   ;;  %658 = vmatprep.mubr.msk.f32.mxu0 (!%p188_p2), %vm309_vm0, %v302_v5  ;;  %v408_v6 = vld [vmem:[%s991_s2 + $0x8] sm:$0xff] (!%p188_p2)  ;;  %v856_v8 = vmov (!%p188_p2), 0   ;;  %v435_v9 = vld [vmem:[%s992_s3] sm:$0xff] (!%p188_p2)  ;;  %v409_v11 = vld [vmem:[%s991_s2 + $0x10] sm:$0xff] (!%p188_p2) }
   0x7   : > { %s846_s26 = smov (!%p188_p2), 126   ;;  %s847_s27 = smov (!%p188_p2), 124   ;;  %826 = vset.pattern.permute.xlu1 (!%p188_p2), %v856_v8  ;;  %825 = vset.pattern.permute.xlu0 (!%p188_p2), %v856_v8  ;;  %v436_v10 = vld [vmem:[%s992_s3 + $0x8] sm:$0xff] (!%p188_p2)  ;;  %v410_v12 = vld [vmem:[%s991_s2 + $0x18] sm:$0xff] (!%p188_p2)  ;;  %v437_v13 = vld [vmem:[%s992_s3 + $0x10] sm:$0xff] (!%p188_p2)  ;;  %vm491_vm1 = vcmask (!%p188_p2), 261120  }
   0x8   : > { %s848_s28 = smov (!%p188_p2), 123   ;;  %s849_s29 = smov (!%p188_p2), 122   ;;  %v438_v14 = vld [vmem:[%s992_s3 + $0x18] sm:$0xff] (!%p188_p2)  ;;  %v301_v63 = vld [vmem:[%s990_s1] sm:$0xff] (!%p188_p2)  ;;  %v307_v5 = vld [vmem:[%s990_s1 + $0x30] sm:$0xff] (!%p188_p2)  ;;  %vm589_vm6 = vcmask (!%p188_p2), 130048  }
   0x9   : > { %s850_s30 = smov (!%p188_p2), 121   ;;  %s851_s6 = smov (!%p188_p2), 120  }
   0xa   : > { %s852_s7 = smov (!%p188_p2), 119   ;;  %s853_s8 = smov (!%p188_p2), 118  }
   0xb   : > { %s854_s9 = smov (!%p188_p2), 117   ;;  %s855_s10 = smov (!%p188_p2), 116  }
   0xd   : > { %s996_s19 = smov (!%p215_p3, %s649_s19), 1 }
   0xe   : > { %s672_s20 = sshll.u32 %s996_s19, 4 }
   0xf   : > { %s219_s23 = scalar_lea.vmem %s989_s0, %s672_s20 }
  0x10   : > { %v225_v1 = vld [vmem:[%s219_s23] sm:$0xff]  ;;  %v226_v2 = vld [vmem:[%s219_s23 + $0x8] sm:$0xff] }
  0x11   : > { %v765_v3 = vpack.i.bf16 %v226_v2, %v225_v1  ;;  %v697_v4 = vpack.c.bf16 %v226_v2, %v225_v1  ;;  %v304_v1 = vld [vmem:[%s990_s1 + $0x18] sm:$0xff]  ;;  %v303_v2 = vld [vmem:[%s990_s1 + $0x10] sm:$0xff] }
  0x13   : > { %766 = vrot.lane.b32.xlu0 %v765_v3, %s844_s24  ;;  %776 = vrot.lane.b32.xlu1 %v765_v3, %s845_s25 }
  0x14   : > { %698 = vmatpush1.bf16.msra.mxu0 %v697_v4  ;;  %v308_v4 = vld [vmem:[%s990_s1 + $0x38] sm:$0xff] }
  0x15   : > { %699 = vmatprep.subr.bf16.mxu0 %v843_v0 }
  0x17   : > { %771 = vrot.lane.b32.xlu0 %v765_v3, %s846_s26  ;;  %781 = vrot.lane.b32.xlu1 %v765_v3, %s847_s27 }
  0x1b   : > { %786 = vrot.lane.b32.xlu0 %v765_v3, %s848_s28  ;;  %791 = vrot.lane.b32.xlu1 %v765_v3, %s849_s29 }
  0x1f   : > { %796 = vrot.lane.b32.xlu0 %v765_v3, %s850_s30  ;;  %801 = vrot.lane.b32.xlu1 %v765_v3, %s851_s6  ;;  %s673_s30 = sshll.u32 %s996_s19, 5 }
  0x23   : > { %806 = vrot.lane.b32.xlu0 %v765_v3, %s852_s7  ;;  %811 = vrot.lane.b32.xlu1 %v765_v3, %s853_s8  ;;  %s224_s8 = scalar_lea.vmem %s994_s5, %s673_s30 }
  0x27   : > { %816 = vrot.lane.b32.xlu0 %v765_v3, %s854_s9  ;;  %821 = vrot.lane.b32.xlu1 %v765_v3, %s855_s10  ;;  %v305_v3 = vld [vmem:[%s990_s1 + $0x20] sm:$0xff] }
  0x2b   : > { %418 = vperm.xlu1 %826, %v408_v6   ;;  %413 = vperm.xlu0 %825, %v407_v7   ;;  %v487_v6 = vld [vmem:[%s993_s4] sm:$0xff]  ;;  %v488_v7 = vld [vmem:[%s993_s4 + $0x8] sm:$0xff] }
  0x2c   : > { %v735_v8 = vpack.c.bf16 %v488_v7, %v487_v6 }
  0x2e   : > { %736 = vmatprep.subr.bf16.mxu1 %v735_v8 }
  0x2f   : > { %441 = vperm.xlu1 %826, %v435_v9   ;;  %446 = vperm.xlu0 %825, %v436_v10   ;;  %v489_v9 = vld [vmem:[%s993_s4 + $0x10] sm:$0xff]  ;;  %v490_v10 = vld [vmem:[%s993_s4 + $0x18] sm:$0xff] }
  0x30   : > { %738 = vmatpush3.bf16.msra.mxu1 %v735_v8 }
  0x33   : > { %423 = vperm.xlu1 %826, %v409_v11   ;;  %428 = vperm.xlu0 %825, %v410_v12   ;;  %v739_v11 = vpack.c.bf16 %v490_v10, %v489_v9 }
  0x35   : > { %740 = vmatprep.subr.bf16.mxu1 %v739_v11 }
  0x36   : > { %742 = vmatpush3.bf16.msra.mxu1 %v739_v11 }
  0x37   : > { %451 = vperm.xlu1 %826, %v437_v13   ;;  %456 = vperm.xlu0 %825, %v438_v14  }
  0x85   : > { %v767_v15 = vpop.permute.xlu0 %766  ;;  %v777_v16 = vpop.permute.xlu1 %776 }
  0x86   : > { %v769_v17 = vunpack.i.h.bf16 %v767_v15  ;;  %v768_v18 = vunpack.i.l.bf16 %v767_v15  ;;  %v779_v23 = vunpack.i.h.bf16 %v777_v16  ;;  %v778_v24 = vunpack.i.l.bf16 %v777_v16 }
  0x88   : > { %v700_v19 = vpack.c.bf16 %v769_v17, %v768_v18  ;;  %v706_v27 = vpack.c.bf16 %v779_v23, %v778_v24 }
  0x89   : > { %v772_v20 = vpop.permute.xlu0 %771  ;;  %v782_v25 = vpop.permute.xlu1 %781 }
  0x8a   : > { %v774_v21 = vunpack.i.h.bf16 %v772_v20  ;;  %v773_v22 = vunpack.i.l.bf16 %v772_v20  ;;  %701 = vmatpush1.bf16.msra.mxu0 %v700_v19  ;;  %v784_v28 = vunpack.i.h.bf16 %v782_v25  ;;  %v783_v29 = vunpack.i.l.bf16 %v782_v25 }
  0x8b   : > { %702 = vmatprep.subr.bf16.mxu0 %v843_v0 }
  0x8c   : > { %v703_v26 = vpack.c.bf16 %v774_v21, %v773_v22  ;;  %v709_v31 = vpack.c.bf16 %v784_v28, %v783_v29 }
  0x8d   : > { %v787_v30 = vpop.permute.xlu0 %786  ;;  %v792_v34 = vpop.permute.xlu1 %791 }
  0x8e   : > { %704 = vmatpush1.bf16.msra.mxu0 %v703_v26  ;;  %v789_v32 = vunpack.i.h.bf16 %v787_v30  ;;  %v788_v33 = vunpack.i.l.bf16 %v787_v30  ;;  %v794_v36 = vunpack.i.h.bf16 %v792_v34  ;;  %v793_v37 = vunpack.i.l.bf16 %v792_v34 }
  0x8f   : > { %705 = vmatprep.subr.bf16.mxu0 %v843_v0 }
  0x90   : > { %v712_v35 = vpack.c.bf16 %v789_v32, %v788_v33  ;;  %v715_v39 = vpack.c.bf16 %v794_v36, %v793_v37 }
  0x91   : > { %v797_v38 = vpop.permute.xlu0 %796  ;;  %v802_v42 = vpop.permute.xlu1 %801 }
  0x92   : > { %707 = vmatpush1.bf16.msra.mxu0 %v706_v27  ;;  %v799_v40 = vunpack.i.h.bf16 %v797_v38  ;;  %v798_v41 = vunpack.i.l.bf16 %v797_v38  ;;  %v804_v44 = vunpack.i.h.bf16 %v802_v42  ;;  %v803_v45 = vunpack.i.l.bf16 %v802_v42 }
  0x93   : > { %708 = vmatprep.subr.bf16.mxu0 %v843_v0 }
  0x94   : > { %v718_v43 = vpack.c.bf16 %v799_v40, %v798_v41  ;;  %v721_v47 = vpack.c.bf16 %v804_v44, %v803_v45 }
  0x95   : > { %v807_v46 = vpop.permute.xlu0 %806  ;;  %v812_v50 = vpop.permute.xlu1 %811 }
  0x96   : > { %710 = vmatpush1.bf16.msra.mxu0 %v709_v31  ;;  %v809_v48 = vunpack.i.h.bf16 %v807_v46  ;;  %v808_v49 = vunpack.i.l.bf16 %v807_v46  ;;  %v814_v52 = vunpack.i.h.bf16 %v812_v50  ;;  %v813_v53 = vunpack.i.l.bf16 %v812_v50 }
  0x97   : > { %711 = vmatprep.subr.bf16.mxu0 %v843_v0 }
  0x98   : > { %v724_v51 = vpack.c.bf16 %v809_v48, %v808_v49  ;;  %v727_v55 = vpack.c.bf16 %v814_v52, %v813_v53 }
  0x99   : > { %v817_v54 = vpop.permute.xlu0 %816  ;;  %v822_v58 = vpop.permute.xlu1 %821 }
  0x9a   : > { %713 = vmatpush1.bf16.msra.mxu0 %v712_v35  ;;  %v819_v56 = vunpack.i.h.bf16 %v817_v54  ;;  %v818_v57 = vunpack.i.l.bf16 %v817_v54  ;;  %v824_v60 = vunpack.i.h.bf16 %v822_v58  ;;  %v823_v61 = vunpack.i.l.bf16 %v822_v58 }
  0x9b   : > { %714 = vmatprep.subr.bf16.mxu0 %v843_v0 }
  0x9c   : > { %v730_v59 = vpack.c.bf16 %v819_v56, %v818_v57  ;;  %v733_v62 = vpack.c.bf16 %v824_v60, %v823_v61 }
  0x9e   : > { %716 = vmatpush1.bf16.msra.mxu0 %v715_v39 }
  0x9f   : > { %717 = vmatprep.subr.bf16.mxu0 %v843_v0 }
  0xa2   : > { %719 = vmatpush1.bf16.msra.mxu0 %v718_v43 }
  0xa3   : > { %720 = vmatprep.subr.bf16.mxu0 %v843_v0 }
  0xa6   : > { %722 = vmatpush1.bf16.msra.mxu0 %v721_v47 }
  0xa7   : > { %723 = vmatprep.subr.bf16.mxu0 %v843_v0 }
  0xaa   : > { %725 = vmatpush1.bf16.msra.mxu0 %v724_v51  ;;  %v419_v12 = vpop.permute.xlu1 %418  ;;  %v414_v13 = vpop.permute.xlu0 %413 }
  0xab   : > { %726 = vmatprep.subr.bf16.mxu0 %v843_v0 }
  0xae   : > { %728 = vmatpush1.bf16.msra.mxu0 %v727_v55  ;;  %v442_v14 = vpop.permute.xlu1 %441  ;;  %v447_v18 = vpop.permute.xlu0 %446 }
  0xaf   : > { %729 = vmatprep.subr.bf16.mxu0 %v843_v0 }
  0xb2   : > { %731 = vmatpush1.bf16.msra.mxu0 %v730_v59  ;;  %v424_v20 = vpop.permute.xlu1 %423  ;;  %v429_v27 = vpop.permute.xlu0 %428 }
  0xb3   : > { %732 = vmatprep.subr.bf16.mxu0 %v843_v0  ;;  %v306_v0 = vld [vmem:[%s990_s1 + $0x28] sm:$0xff] }
  0xb6   : > { %734 = vmatpush1.bf16.msra.mxu0 %v733_v62  ;;  %v452_v32 = vpop.permute.xlu1 %451  ;;  %v457_v39 = vpop.permute.xlu0 %456 }
  0xb9   : > { %387 = vmatmul.mubr.f32.vlgmr.msra.gmra.mrb[0].mxu0 %v301_v63 }
  0xba   : > { %659 = vmatprep.mubr.msk.f32.mxu0 %vm309_vm0, %v304_v1 }
  0xbd   : > { %392 = vmatmul.mubr.f32.gmra.mrb[2].mxu0 %v303_v2 }
  0xbe   : > { %660 = vmatprep.mubr.msk.f32.mxu0 %vm309_vm0, %v306_v0 }
  0xc1   : > { %397 = vmatmul.mubr.f32.gmra.mrb[4].mxu0 %v305_v3 }
  0xc2   : > { %661 = vmatprep.mubr.msk.f32.mxu0 %vm309_vm0, %v308_v4 }
  0xc5   : > { %402 = vmatmul.mubr.f32.gmra.mrb[6].mxu0 %v307_v5 }
 0x18c   : > { %v388_v15 = vpop.f32.mrb[0].mxu0 }
 0x18d   : > { %v431_v16 = vmul.f32 %v414_v13, %v388_v15  ;;  %v390_v17 = vpop.f32.mrb[1].mxu0 }
 0x18f   : > { %v459_v19 = vadd.f32 %v442_v14, %v431_v16 }
 0x190   : > { %v393_v21 = vpop.f32.mrb[2].mxu0 }
 0x191   : > { %v467_v22 = vmin.f32 %v459_v19, 0.0  ;;  %v432_v23 = vmul.f32 %v419_v12, %v393_v21  ;;  %v395_v24 = vpop.f32.mrb[3].mxu0  ;;  %vm463_vm2 = vcmp.gt.f32.partialorder %v459_v19, 0.0 }
 0x193   : > { %v471_v25 = vmul.f32 1.442695, %v467_v22  ;;  %v460_v26 = vadd.f32 %v447_v18, %v432_v23 }
 0x194   : > { %v398_v28 = vpop.f32.mrb[4].mxu0 }
 0x195   : > { %v468_v29 = vmin.f32 %v460_v26, 0.0  ;;  %v433_v30 = vmul.f32 %v424_v20, %v398_v28  ;;  %v400_v31 = vpop.f32.mrb[5].mxu0  ;;  %827 = vpow2.f32 %v471_v25  ;;  %vm464_vm3 = vcmp.gt.f32.partialorder %v460_v26, 0.0 }
 0x197   : > { %v473_v33 = vmul.f32 1.442695, %v468_v29  ;;  %v461_v34 = vadd.f32 %v452_v32, %v433_v30 }
 0x198   : > { %v403_v35 = vpop.f32.mrb[6].mxu0 }
 0x199   : > { %829 = vpow2.f32 %v473_v33  ;;  %v469_v36 = vmin.f32 %v461_v34, 0.0  ;;  %v434_v37 = vmul.f32 %v429_v27, %v403_v35  ;;  %v405_v38 = vpop.f32.mrb[7].mxu0  ;;  %vm465_vm4 = vcmp.gt.f32.partialorder %v461_v34, 0.0 }
 0x19b   : > { %v475_v40 = vmul.f32 1.442695, %v469_v36  ;;  %v462_v41 = vadd.f32 %v457_v39, %v434_v37 }
 0x19d   : > { %831 = vpow2.f32 %v475_v40  ;;  %v470_v42 = vmin.f32 %v462_v41, 0.0  ;;  %vm466_vm5 = vcmp.gt.f32.partialorder %v462_v41, 0.0 }
 0x19f   : > { %v828_v43 = vpop.eup %827  ;;  %v477_v44 = vmul.f32 1.442695, %v470_v42 }
 0x1a0   : > { %v662_v45 = vadd.f32 -1.0, %v828_v43 }
 0x1a1   : > { %833 = vpow2.f32 %v477_v44 }
 0x1a2   : > { %v483_v46 = vsel %vm463_vm2, %v459_v19, %v662_v45 }
 0x1a3   : > { %v830_v47 = vpop.eup %829  ;;  %690 = vmatprep.mubr.msk.f32.mxu1 %vm491_vm1, %v483_v46 }
 0x1a4   : > { %v663_v48 = vadd.f32 -1.0, %v830_v47 }
 0x1a6   : > { %v484_v49 = vsel %vm464_vm3, %v460_v26, %v663_v48 }
 0x1a7   : > { %v832_v50 = vpop.eup %831  ;;  %691 = vmatmul.mubr.msk.f32.vlgmr.msra.gmra.mrb[0].mxu1 %vm491_vm1, %v484_v49 }
 0x1a8   : > { %v664_v51 = vadd.f32 -1.0, %v832_v50 }
 0x1aa   : > { %v485_v52 = vsel %vm465_vm4, %v461_v34, %v664_v51 }
 0x1ab   : > { %v834_v53 = vpop.eup %833  ;;  %693 = vmatprep.mubr.msk.f32.mxu1 %vm491_vm1, %v485_v52 }
 0x1ac   : > { %v665_v54 = vadd.f32 -1.0, %v834_v53 }
 0x1ae   : > { %v486_v55 = vsel %vm466_vm5, %v462_v41, %v665_v54 }
 0x1af   : > { %694 = vmatmul.mubr.msk.f32.gmra.mrb[2].mxu1 %vm491_vm1, %v486_v55 }
 0x27a   : > { %v692_v56 = vpop.f32.mrb[0].mxu1 }
 0x27b   : > { %591 = vst.msk [vmem:[%s224_s8 + $0x8] sm:$0xff] %vm589_vm6, %v692_v56  ;;  %v570_v57 = vpop.f32.mrb[1].mxu1 }
 0x27c   : > { %590 = vst.msk [vmem:[%s224_s8] sm:$0xff] %vm589_vm6, %v570_v57 }
 0x282   : > { %v695_v58 = vpop.f32.mrb[2].mxu1 }
 0x283   : > { %593 = vst.msk [vmem:[%s224_s8 + $0x18] sm:$0xff] %vm589_vm6, %v695_v58  ;;  %v580_v59 = vpop.f32.mrb[3].mxu1 }
 0x284   : > { %592 = vst.msk [vmem:[%s224_s8 + $0x10] sm:$0xff] %vm589_vm6, %v580_v59 }
 0x285 PF: > { %s15_s18 = sadd.s32 1, %s841_s18  }
 0x286   : > { %p12_p4 = scmp.ge.s32.totalorder %s15_s18, 4  }
 0x288   :  { %14 = sbr.rel (!%p12_p4) target bundleno = 1 (0x1), region = 70 }

// kernel: cnn_lstm_forward.8
= control target key start
LH: loop header
LB: loop body
LE: loop exit
PB: predicated region body
PF: predicated region fallthrough
CT: control target
= control target key end

     0   :  { %s1399_s18 = smov 0   ;;  %s1646_s0 = inlined_call_operand.vmem [shape: f32[2,32,28], index: 0, kind: input, shape index: {}]   ;;  %s1647_s1 = inlined_call_operand.vmem [shape: f32[64,416], index: 1, kind: input, shape index: {}]   ;;  %s1648_s2 = inlined_call_operand.vmem [shape: f32[64,1], index: 2, kind: input, shape index: {}]   ;;  %s1649_s3 = inlined_call_operand.vmem [shape: f32[64,1], index: 3, kind: input, shape index: {}]   ;;  %s1650_s4 = inlined_call_operand.vmem [shape: f32[16,8], index: 4, kind: input, shape index: {}]   ;;  %s1651_s5 = inlined_call_operand.vmem [shape: f32[2,64,8], index: 5, kind: output, shape index: {}]  }
   0x1 LB: > { %s1000_s19 = sadd.s32 4294967295, %s1353_s18   ;;  %p1004_p0 = scmp.ge.s32.totalorder %s1353_s18, 1  ;;  %s1353_s18 = sphi %s1399_s18, %s15_s18  }
   0x2   : > { %p187_p1 = scmp.lt.s32.totalorder %s1353_s18, 3 }
   0x4   : > { %p188_p2 = pnand %p1004_p0, %p187_p1 }
   0x5   : > { %p215_p3 = scmp.lt.s32.totalorder (!%p188_p2), %s1000_s19, 1  ;;  %v1355_v0 = vmov (!%p188_p2), 0.0|0.0   ;;  %s1356_s24 = smov (!%p188_p2), 120   ;;  %v378_v9 = vld [vmem:[%s1647_s1 + $0x8] sm:$0xff] (!%p188_p2)  ;;  %v380_v10 = vld [vmem:[%s1647_s1 + $0x18] sm:$0xff] (!%p188_p2)  ;;  %vm409_vm0 = vcmask (!%p188_p2), 261120  }
   0x6   : > { %191 = sbr.rel (%p188_p2) target bundleno = 666 (0x29a), region = 40  ;;  %1151 = vmatprep.subr.bf16.mxu1 (!%p188_p2), %v1355_v0  ;;  %s1357_s25 = smov (!%p188_p2), 124   ;;  %498 = vmatprep.mubr.f32.mxu0 (!%p188_p2), %v378_v9  ;;  %v645_v11 = vld [vmem:[%s1648_s2 + $0x8] sm:$0xff] (!%p188_p2)  ;;  %v644_v12 = vld [vmem:[%s1648_s2] sm:$0xff] (!%p188_p2)  ;;  %v1368_v13 = vmov (!%p188_p2), 0   ;;  %v646_v16 = vld [vmem:[%s1648_s2 + $0x10] sm:$0xff] (!%p188_p2) }
   0x7   : > { %s1358_s26 = smov (!%p188_p2), 119   ;;  %s1359_s27 = smov (!%p188_p2), 123   ;;  %1009 = vmatprep.mubr.msk.f32.mxu1 (!%p188_p2), %vm409_vm0, %v380_v10  ;;  %1330 = vset.pattern.permute.xlu1 (!%p188_p2), %v1368_v13  ;;  %v700_v14 = vld [vmem:[%s1649_s3] sm:$0xff] (!%p188_p2)  ;;  %v701_v15 = vld [vmem:[%s1649_s3 + $0x8] sm:$0xff] (!%p188_p2)  ;;  %v647_v17 = vld [vmem:[%s1648_s2 + $0x18] sm:$0xff] (!%p188_p2)  ;;  %vm806_vm1 = vcmask (!%p188_p2), 130048  }
   0x8   : > { %s1360_s28 = smov (!%p188_p2), 127   ;;  %s1361_s29 = smov (!%p188_p2), 118   ;;  %1329 = vset.pattern.permute.xlu0 (!%p188_p2), %v1368_v13  ;;  %v702_v18 = vld [vmem:[%s1649_s3 + $0x10] sm:$0xff] (!%p188_p2)  ;;  %v703_v19 = vld [vmem:[%s1649_s3 + $0x18] sm:$0xff] (!%p188_p2)  ;;  %v648_v20 = vld [vmem:[%s1648_s2 + $0x20] sm:$0xff] (!%p188_p2)  ;;  %vm936_vm10 = vcmask (!%p188_p2), 64512  }
   0x9   : > { %s1362_s30 = smov (!%p188_p2), 122   ;;  %s1363_s6 = smov (!%p188_p2), 126   ;;  %v650_v21 = vld [vmem:[%s1648_s2 + $0x30] sm:$0xff] (!%p188_p2)  ;;  %v649_v22 = vld [vmem:[%s1648_s2 + $0x28] sm:$0xff] (!%p188_p2)  ;;  %v651_v23 = vld [vmem:[%s1648_s2 + $0x38] sm:$0xff] (!%p188_p2) }
   0xa   : > { %s1364_s7 = smov (!%p188_p2), 117   ;;  %s1365_s8 = smov (!%p188_p2), 121   ;;  %v704_v24 = vld [vmem:[%s1649_s3 + $0x20] sm:$0xff] (!%p188_p2)  ;;  %v706_v25 = vld [vmem:[%s1649_s3 + $0x30] sm:$0xff] (!%p188_p2)  ;;  %v705_v26 = vld [vmem:[%s1649_s3 + $0x28] sm:$0xff] (!%p188_p2) }
   0xb   : > { %s1366_s11 = smov (!%p188_p2), 125   ;;  %s1367_s14 = smov (!%p188_p2), 116   ;;  %v707_v27 = vld [vmem:[%s1649_s3 + $0x38] sm:$0xff] (!%p188_p2) }
   0xd   : > { %s1653_s19 = smov (!%p215_p3, %s1000_s19), 1 }
   0xe   : > { %s1035_s20 = sshll.u32 %s1653_s19, 5  ;;  %s1036_s21 = sshll.u32 %s1653_s19, 6 }
   0xf   : > { %s219_s23 = scalar_lea.vmem %s1646_s0, %s1035_s20 }
  0x10   : > { %v1414_v1 = vld [vmem:[%s219_s23] sm:$0xff]  ;;  %v1416_v2 = vld [vmem:[%s219_s23 + $0x8] sm:$0xff]  ;;  %v1418_v3 = vld [vmem:[%s219_s23 + $0x10] sm:$0xff] }
  0x11   : > { %v1209_v4 = vpack.i.bf16 %v1416_v2, %v1414_v1  ;;  %v1422_v5 = vld [vmem:[%s219_s23 + $0x18] sm:$0xff]  ;;  %v1121_v7 = vpack.c.bf16 %v1416_v2, %v1414_v1 }
  0x12   : > { %v1219_v6 = vpack.i.bf16 %v1422_v5, %v1418_v3  ;;  %v1125_v8 = vpack.c.bf16 %v1422_v5, %v1418_v3 }
  0x13   : > { %1210 = vrot.lane.b32.xlu0 %v1209_v4, %s1356_s24 }
  0x14   : > { %1220 = vrot.lane.b32.xlu1 %v1219_v6, %s1356_s24  ;;  %s224_s24 = scalar_lea.vmem %s1651_s5, %s1036_s21 }
  0x17   : > { %1215 = vrot.lane.b32.xlu0 %v1209_v4, %s1357_s25 }
  0x18   : > { %1225 = vrot.lane.b32.xlu1 %v1219_v6, %s1357_s25 }
  0x1b   : > { %1230 = vrot.lane.b32.xlu0 %v1209_v4, %s1358_s26 }
  0x1c   : > { %1235 = vrot.lane.b32.xlu1 %v1209_v4, %s1359_s27 }
  0x1f   : > { %1240 = vrot.lane.b32.xlu0 %v1219_v6, %s1358_s26 }
  0x20   : > { %1245 = vrot.lane.b32.xlu1 %v1209_v4, %s1360_s28 }
  0x23   : > { %1250 = vrot.lane.b32.xlu0 %v1219_v6, %s1359_s27 }
  0x24   : > { %1255 = vrot.lane.b32.xlu1 %v1209_v4, %s1361_s29 }
  0x27   : > { %1260 = vrot.lane.b32.xlu0 %v1219_v6, %s1360_s28 }
  0x28   : > { %1265 = vrot.lane.b32.xlu1 %v1209_v4, %s1362_s30 }
  0x2b   : > { %1270 = vrot.lane.b32.xlu0 %v1219_v6, %s1361_s29 }
  0x2c   : > { %1275 = vrot.lane.b32.xlu1 %v1209_v4, %s1363_s6 }
  0x2f   : > { %1280 = vrot.lane.b32.xlu0 %v1219_v6, %s1362_s30 }
  0x30   : > { %1285 = vrot.lane.b32.xlu1 %v1209_v4, %s1364_s7 }
  0x33   : > { %1290 = vrot.lane.b32.xlu0 %v1219_v6, %s1363_s6 }
  0x34   : > { %1295 = vrot.lane.b32.xlu1 %v1209_v4, %s1365_s8 }
  0x37   : > { %1300 = vrot.lane.b32.xlu0 %v1219_v6, %s1364_s7 }
  0x38   : > { %1305 = vrot.lane.b32.xlu1 %v1209_v4, %s1366_s11 }
  0x3b   : > { %1310 = vrot.lane.b32.xlu0 %v1219_v6, %s1365_s8 }
  0x3c   : > { %1315 = vrot.lane.b32.xlu1 %v1209_v4, %s1367_s14 }
  0x3f   : > { %1320 = vrot.lane.b32.xlu0 %v1219_v6, %s1366_s11 }
  0x40   : > { %1325 = vrot.lane.b32.xlu1 %v1219_v6, %s1367_s14 }
  0x43   : > { %654 = vperm.xlu0 %1329, %v644_v12  }
  0x44   : > { %659 = vperm.xlu1 %1330, %v645_v11  }
  0x47   : > { %715 = vperm.xlu0 %1329, %v701_v15  }
  0x48   : > { %710 = vperm.xlu1 %1330, %v700_v14  }
  0x4b   : > { %669 = vperm.xlu0 %1329, %v647_v17  }
  0x4c   : > { %664 = vperm.xlu1 %1330, %v646_v16  }
  0x4f   : > { %725 = vperm.xlu0 %1329, %v703_v19  }
  0x50   : > { %720 = vperm.xlu1 %1330, %v702_v18  }
  0x53   : > { %684 = vperm.xlu0 %1329, %v650_v21  }
  0x54   : > { %674 = vperm.xlu1 %1330, %v648_v20  }
  0x57   : > { %689 = vperm.xlu0 %1329, %v651_v23  }
  0x58   : > { %679 = vperm.xlu1 %1330, %v649_v22  }
  0x5b   : > { %740 = vperm.xlu0 %1329, %v706_v25  }
  0x5c   : > { %730 = vperm.xlu1 %1330, %v704_v24  }
  0x5f   : > { %745 = vperm.xlu0 %1329, %v707_v27  }
  0x60   : > { %735 = vperm.xlu1 %1330, %v705_v26  }
  0x85   : > { %v1211_v28 = vpop.permute.xlu0 %1210 }
  0x86   : > { %v1213_v29 = vunpack.i.h.bf16 %v1211_v28  ;;  %v1212_v30 = vunpack.i.l.bf16 %v1211_v28  ;;  %v1221_v31 = vpop.permute.xlu1 %1220 }
  0x87   : > { %v1223_v32 = vunpack.i.h.bf16 %v1221_v31  ;;  %v1222_v33 = vunpack.i.l.bf16 %v1221_v31 }
  0x88   : > { %v1152_v34 = vpack.c.bf16 %v1213_v29, %v1212_v30 }
  0x89   : > { %v1216_v35 = vpop.permute.xlu0 %1215  ;;  %v1155_v36 = vpack.c.bf16 %v1223_v32, %v1222_v33 }
  0x8a   : > { %v1218_v37 = vunpack.i.h.bf16 %v1216_v35  ;;  %v1217_v38 = vunpack.i.l.bf16 %v1216_v35  ;;  %1153 = vmatpush1.bf16.msra.mxu1 %v1152_v34  ;;  %v1226_v39 = vpop.permute.xlu1 %1225 }
  0x8b   : > { %v1228_v40 = vunpack.i.h.bf16 %v1226_v39  ;;  %v1227_v41 = vunpack.i.l.bf16 %v1226_v39  ;;  %1154 = vmatprep.subr.bf16.mxu1 %v1355_v0 }
  0x8c   : > { %v1119_v42 = vpack.c.bf16 %v1218_v37, %v1217_v38 }
  0x8d   : > { %v1123_v43 = vpack.c.bf16 %v1228_v40, %v1227_v41  ;;  %v1231_v44 = vpop.permute.xlu0 %1230 }
  0x8e   : > { %v1233_v45 = vunpack.i.h.bf16 %v1231_v44  ;;  %v1232_v46 = vunpack.i.l.bf16 %v1231_v44  ;;  %1120 = vmatprep.subr.bf16.mxu0 %v1119_v42  ;;  %1156 = vmatpush1.bf16.msra.mxu1 %v1155_v36  ;;  %v1236_v47 = vpop.permute.xlu1 %1235 }
  0x8f   : > { %v1238_v48 = vunpack.i.h.bf16 %v1236_v47  ;;  %v1237_v49 = vunpack.i.l.bf16 %v1236_v47  ;;  %1122 = vmatpush3.bf16.msra.mxu0 %v1121_v7  ;;  %1157 = vmatprep.subr.bf16.mxu1 %v1355_v0 }
  0x90   : > { %v1158_v50 = vpack.c.bf16 %v1233_v45, %v1232_v46  ;;  %1124 = vmatprep.subr.bf16.mxu0 %v1123_v43 }
  0x91   : > { %v1127_v51 = vpack.c.bf16 %v1238_v48, %v1237_v49  ;;  %v1241_v52 = vpop.permute.xlu0 %1240 }
  0x92   : > { %v1243_v53 = vunpack.i.h.bf16 %v1241_v52  ;;  %v1242_v54 = vunpack.i.l.bf16 %v1241_v52  ;;  %1159 = vmatpush1.bf16.msra.mxu1 %v1158_v50  ;;  %v1246_v55 = vpop.permute.xlu1 %1245 }
  0x93   : > { %v1248_v56 = vunpack.i.h.bf16 %v1246_v55  ;;  %v1247_v57 = vunpack.i.l.bf16 %v1246_v55  ;;  %1126 = vmatpush3.bf16.msra.mxu0 %v1125_v8  ;;  %1160 = vmatprep.subr.bf16.mxu1 %v1355_v0 }
  0x94   : > { %v1161_v58 = vpack.c.bf16 %v1243_v53, %v1242_v54  ;;  %1128 = vmatprep.subr.bf16.mxu0 %v1127_v51 }
  0x95   : > { %v1129_v59 = vpack.c.bf16 %v1248_v56, %v1247_v57  ;;  %v1251_v60 = vpop.permute.xlu0 %1250 }
  0x96   : > { %v1253_v61 = vunpack.i.h.bf16 %v1251_v60  ;;  %v1252_v62 = vunpack.i.l.bf16 %v1251_v60  ;;  %1162 = vmatpush1.bf16.msra.mxu1 %v1161_v58  ;;  %v1256_v63 = vpop.permute.xlu1 %1255 }
  0x97   : > { %v1258_v1 = vunpack.i.h.bf16 %v1256_v63  ;;  %v1257_v2 = vunpack.i.l.bf16 %v1256_v63  ;;  %1130 = vmatpush3.bf16.msra.mxu0 %v1129_v59  ;;  %1163 = vmatprep.subr.bf16.mxu1 %v1355_v0  ;;  %v382_v63 = vld [vmem:[%s1647_s1 + $0x28] sm:$0xff] }
  0x98   : > { %v1131_v4 = vpack.c.bf16 %v1253_v61, %v1252_v62  ;;  %v377_v61 = vld [vmem:[%s1647_s1] sm:$0xff]  ;;  %v379_v62 = vld [vmem:[%s1647_s1 + $0x10] sm:$0xff] }
  0x99   : > { %v1164_v6 = vpack.c.bf16 %v1258_v1, %v1257_v2  ;;  %v1261_v7 = vpop.permute.xlu0 %1260  ;;  %v384_v1 = vld [vmem:[%s1647_s1 + $0x38] sm:$0xff]  ;;  %v383_v2 = vld [vmem:[%s1647_s1 + $0x30] sm:$0xff] }
  0x9a   : > { %v1263_v3 = vunpack.i.h.bf16 %v1261_v7  ;;  %v1262_v5 = vunpack.i.l.bf16 %v1261_v7  ;;  %1132 = vmatprep.subr.bf16.mxu0 %v1131_v4  ;;  %v1266_v8 = vpop.permute.xlu1 %1265  ;;  %v386_v4 = vld [vmem:[%s1647_s1 + $0x48] sm:$0xff]  ;;  %v385_v7 = vld [vmem:[%s1647_s1 + $0x40] sm:$0xff] }
  0x9b   : > { %v1268_v9 = vunpack.i.h.bf16 %v1266_v8  ;;  %v1267_v10 = vunpack.i.l.bf16 %v1266_v8  ;;  %1165 = vmatpush1.bf16.msra.mxu1 %v1164_v6  ;;  %v388_v6 = vld [vmem:[%s1647_s1 + $0x58] sm:$0xff] }
  0x9c   : > { %v1133_v11 = vpack.c.bf16 %v1263_v3, %v1262_v5  ;;  %1166 = vmatprep.subr.bf16.mxu1 %v1355_v0  ;;  %v387_v3 = vld [vmem:[%s1647_s1 + $0x50] sm:$0xff]  ;;  %v390_v5 = vld [vmem:[%s1647_s1 + $0x68] sm:$0xff]  ;;  %v392_v8 = vld [vmem:[%s1647_s1 + $0x78] sm:$0xff] }
  0x9d   : > { %v1135_v12 = vpack.c.bf16 %v1268_v9, %v1267_v10  ;;  %v1271_v13 = vpop.permute.xlu0 %1270  ;;  %v389_v9 = vld [vmem:[%s1647_s1 + $0x60] sm:$0xff]  ;;  %v391_v10 = vld [vmem:[%s1647_s1 + $0x70] sm:$0xff] }
  0x9e   : > { %v1273_v14 = vunpack.i.h.bf16 %v1271_v13  ;;  %v1272_v15 = vunpack.i.l.bf16 %v1271_v13  ;;  %1134 = vmatpush3.bf16.msra.mxu0 %v1133_v11  ;;  %v1276_v16 = vpop.permute.xlu1 %1275  ;;  %v394_v11 = vld [vmem:[%s1647_s1 + $0x88] sm:$0xff]  ;;  %v393_v13 = vld [vmem:[%s1647_s1 + $0x80] sm:$0xff] }
  0x9f   : > { %v1278_v17 = vunpack.i.h.bf16 %v1276_v16  ;;  %v1277_v18 = vunpack.i.l.bf16 %v1276_v16  ;;  %1136 = vmatprep.subr.bf16.mxu0 %v1135_v12  ;;  %v396_v12 = vld [vmem:[%s1647_s1 + $0x98] sm:$0xff] }
  0xa0   : > { %v1167_v19 = vpack.c.bf16 %v1273_v14, %v1272_v15  ;;  %v395_v14 = vld [vmem:[%s1647_s1 + $0x90] sm:$0xff]  ;;  %v398_v15 = vld [vmem:[%s1647_s1 + $0xa8] sm:$0xff]  ;;  %v400_v16 = vld [vmem:[%s1647_s1 + $0xb8] sm:$0xff] }
  0xa1   : > { %v1137_v20 = vpack.c.bf16 %v1278_v17, %v1277_v18  ;;  %v1281_v21 = vpop.permute.xlu0 %1280  ;;  %v397_v17 = vld [vmem:[%s1647_s1 + $0xa0] sm:$0xff]  ;;  %v399_v18 = vld [vmem:[%s1647_s1 + $0xb0] sm:$0xff] }
  0xa2   : > { %v1283_v22 = vunpack.i.h.bf16 %v1281_v21  ;;  %v1282_v23 = vunpack.i.l.bf16 %v1281_v21  ;;  %1168 = vmatpush1.bf16.msra.mxu1 %v1167_v19  ;;  %v1286_v24 = vpop.permute.xlu1 %1285  ;;  %v402_v19 = vld [vmem:[%s1647_s1 + $0xc8] sm:$0xff]  ;;  %v401_v21 = vld [vmem:[%s1647_s1 + $0xc0] sm:$0xff] }
  0xa3   : > { %v1288_v25 = vunpack.i.h.bf16 %v1286_v24  ;;  %v1287_v26 = vunpack.i.l.bf16 %v1286_v24  ;;  %1138 = vmatpush3.bf16.msra.mxu0 %v1137_v20  ;;  %1169 = vmatprep.subr.bf16.mxu1 %v1355_v0  ;;  %v404_v20 = vld [vmem:[%s1647_s1 + $0xd8] sm:$0xff] }
  0xa4   : > { %v1139_v27 = vpack.c.bf16 %v1283_v22, %v1282_v23  ;;  %v403_v22 = vld [vmem:[%s1647_s1 + $0xd0] sm:$0xff]  ;;  %v406_v23 = vld [vmem:[%s1647_s1 + $0xe8] sm:$0xff]  ;;  %v408_v24 = vld [vmem:[%s1647_s1 + $0xf8] sm:$0xff] }
  0xa5   : > { %v1170_v28 = vpack.c.bf16 %v1288_v25, %v1287_v26  ;;  %v1291_v29 = vpop.permute.xlu0 %1290  ;;  %v405_v25 = vld [vmem:[%s1647_s1 + $0xe0] sm:$0xff]  ;;  %v407_v26 = vld [vmem:[%s1647_s1 + $0xf0] sm:$0xff] }
  0xa6   : > { %v1293_v30 = vunpack.i.h.bf16 %v1291_v29  ;;  %v1292_v31 = vunpack.i.l.bf16 %v1291_v29  ;;  %1140 = vmatprep.subr.bf16.mxu0 %v1139_v27  ;;  %v1296_v32 = vpop.permute.xlu1 %1295  ;;  %v804_v27 = vld [vmem:[%s1650_s4] sm:$0xff] }
  0xa7   : > { %v1298_v33 = vunpack.i.h.bf16 %v1296_v32  ;;  %v1297_v34 = vunpack.i.l.bf16 %v1296_v32  ;;  %1171 = vmatpush1.bf16.msra.mxu1 %v1170_v28  ;;  %v805_v28 = vld [vmem:[%s1650_s4 + $0x8] sm:$0xff] }
  0xa8   : > { %v1141_v35 = vpack.c.bf16 %v1293_v30, %v1292_v31  ;;  %1172 = vmatprep.subr.bf16.mxu1 %v1355_v0  ;;  %v1181_v29 = vpack.c.bf16 %v805_v28, %v804_v27 }
  0xa9   : > { %v1143_v36 = vpack.c.bf16 %v1298_v33, %v1297_v34  ;;  %v1301_v37 = vpop.permute.xlu0 %1300 }
  0xaa   : > { %v1303_v38 = vunpack.i.h.bf16 %v1301_v37  ;;  %v1302_v39 = vunpack.i.l.bf16 %v1301_v37  ;;  %1142 = vmatpush3.bf16.msra.mxu0 %v1141_v35  ;;  %v1306_v40 = vpop.permute.xlu1 %1305 }
  0xab   : > { %v1308_v41 = vunpack.i.h.bf16 %v1306_v40  ;;  %v1307_v42 = vunpack.i.l.bf16 %v1306_v40  ;;  %1144 = vmatprep.subr.bf16.mxu0 %v1143_v36 }
  0xac   : > { %v1173_v43 = vpack.c.bf16 %v1303_v38, %v1302_v39 }
  0xad   : > { %v1145_v44 = vpack.c.bf16 %v1308_v41, %v1307_v42  ;;  %v1311_v45 = vpop.permute.xlu0 %1310 }
  0xae   : > { %v1313_v46 = vunpack.i.h.bf16 %v1311_v45  ;;  %v1312_v47 = vunpack.i.l.bf16 %v1311_v45  ;;  %1174 = vmatpush1.bf16.msra.mxu1 %v1173_v43  ;;  %v1316_v48 = vpop.permute.xlu1 %1315 }
  0xaf   : > { %v1318_v49 = vunpack.i.h.bf16 %v1316_v48  ;;  %v1317_v50 = vunpack.i.l.bf16 %v1316_v48  ;;  %1146 = vmatpush3.bf16.msra.mxu0 %v1145_v44  ;;  %1175 = vmatprep.subr.bf16.mxu1 %v1355_v0 }
  0xb0   : > { %v1147_v51 = vpack.c.bf16 %v1313_v46, %v1312_v47 }
  0xb1   : > { %v1176_v52 = vpack.c.bf16 %v1318_v49, %v1317_v50  ;;  %v1321_v53 = vpop.permute.xlu0 %1320 }
  0xb2   : > { %v1323_v54 = vunpack.i.h.bf16 %v1321_v53  ;;  %v1322_v55 = vunpack.i.l.bf16 %v1321_v53  ;;  %1148 = vmatprep.subr.bf16.mxu0 %v1147_v51  ;;  %v1326_v56 = vpop.permute.xlu1 %1325 }
  0xb3   : > { %v1328_v57 = vunpack.i.h.bf16 %v1326_v56  ;;  %v1327_v58 = vunpack.i.l.bf16 %v1326_v56  ;;  %1177 = vmatpush1.bf16.msra.mxu1 %v1176_v52 }
  0xb4   : > { %v1149_v59 = vpack.c.bf16 %v1323_v54, %v1322_v55  ;;  %1178 = vmatprep.subr.bf16.mxu1 %v1355_v0  ;;  %v381_v0 = vld [vmem:[%s1647_s1 + $0x20] sm:$0xff] }
  0xb5   : > { %v1179_v60 = vpack.c.bf16 %v1328_v57, %v1327_v58 }
  0xb6   : > { %1150 = vmatpush3.bf16.msra.mxu0 %v1149_v59 }
  0xb7   : > { %1180 = vmatpush1.bf16.msra.mxu1 %v1179_v60  ;;  %1182 = vmatprep.subr.bf16.mxu0 %v1181_v29 }
  0xb8   : > { %1185 = vmatprep.subr.bf16.mxu1 %v1181_v29 }
  0xb9   : > { %499 = vmatmul.mubr.f32.vlgmr.msra.gmra.mrb[0].mxu0 %v377_v61 }
  0xba   : > { %604 = vmatmul.mubr.f32.vlgmr.msra.gmra.mrb[0].mxu1 %v379_v62  ;;  %503 = vmatprep.mubr.f32.mxu0 %v382_v63 }
  0xbb   : > { %1010 = vmatprep.mubr.msk.f32.mxu1 %vm409_vm0, %v384_v1  ;;  %1184 = vmatpush3.bf16.msra.mxu0 %v1181_v29 }
  0xbc   : > { %1186 = vmatpush3.bf16.msra.mxu1 %v1181_v29 }
  0xbd   : > { %504 = vmatmul.mubr.f32.gmra.mrb[2].mxu0 %v381_v0 }
  0xbe   : > { %609 = vmatmul.mubr.f32.gmra.mrb[2].mxu1 %v383_v2  ;;  %508 = vmatprep.mubr.f32.mxu0 %v386_v4 }
  0xbf   : > { %1011 = vmatprep.mubr.msk.f32.mxu1 %vm409_vm0, %v388_v6 }
  0xc1   : > { %509 = vmatmul.mubr.f32.gmra.mrb[4].mxu0 %v385_v7 }
  0xc2   : > { %614 = vmatmul.mubr.f32.gmra.mrb[4].mxu1 %v387_v3  ;;  %513 = vmatprep.mubr.f32.mxu0 %v390_v5  ;;  %v655_v32 = vpop.permute.xlu0 %654 }
  0xc3   : > { %1012 = vmatprep.mubr.msk.f32.mxu1 %vm409_vm0, %v392_v8  ;;  %v660_v30 = vpop.permute.xlu1 %659 }
  0xc5   : > { %514 = vmatmul.mubr.f32.gmra.mrb[6].mxu0 %v389_v9 }
  0xc6   : > { %619 = vmatmul.mubr.f32.gmra.mrb[6].mxu1 %v391_v10  ;;  %518 = vmatprep.mubr.f32.mxu0 %v394_v11  ;;  %v716_v34 = vpop.permute.xlu0 %715 }
  0xc7   : > { %1013 = vmatprep.mubr.msk.f32.mxu1 %vm409_vm0, %v396_v12  ;;  %v711_v31 = vpop.permute.xlu1 %710 }
  0xc9   : > { %519 = vmatmul.mubr.f32.gmra.mrb[8].mxu0 %v393_v13 }
  0xca   : > { %624 = vmatmul.mubr.f32.gmra.mrb[8].mxu1 %v395_v14  ;;  %523 = vmatprep.mubr.f32.mxu0 %v398_v15  ;;  %v670_v41 = vpop.permute.xlu0 %669 }
  0xcb   : > { %1014 = vmatprep.mubr.msk.f32.mxu1 %vm409_vm0, %v400_v16  ;;  %v665_v33 = vpop.permute.xlu1 %664 }
  0xcd   : > { %524 = vmatmul.mubr.f32.gmra.mrb[10].mxu0 %v397_v17 }
  0xce   : > { %629 = vmatmul.mubr.f32.gmra.mrb[10].mxu1 %v399_v18  ;;  %528 = vmatprep.mubr.f32.mxu0 %v402_v19  ;;  %v726_v55 = vpop.permute.xlu0 %725 }
  0xcf   : > { %1015 = vmatprep.mubr.msk.f32.mxu1 %vm409_vm0, %v404_v20  ;;  %v721_v38 = vpop.permute.xlu1 %720 }
  0xd1   : > { %529 = vmatmul.mubr.f32.gmra.mrb[12].mxu0 %v401_v21 }
  0xd2   : > { %634 = vmatmul.mubr.f32.gmra.mrb[12].mxu1 %v403_v22  ;;  %533 = vmatprep.mubr.f32.mxu0 %v406_v23  ;;  %v685_v5 = vpop.permute.xlu0 %684 }
  0xd3   : > { %1016 = vmatprep.mubr.msk.f32.mxu1 %vm409_vm0, %v408_v24  ;;  %v675_v49 = vpop.permute.xlu1 %674 }
  0xd5   : > { %534 = vmatmul.mubr.f32.gmra.mrb[14].mxu0 %v405_v25 }
  0xd6   : > { %639 = vmatmul.mubr.f32.gmra.mrb[14].mxu1 %v407_v26  ;;  %v690_v25 = vpop.permute.xlu0 %689 }
  0xd7   : > { %v680_v2 = vpop.permute.xlu1 %679 }
  0xdb   : > { %v731_v18 = vpop.permute.xlu1 %730 }
 0x18c   : > { %v1069_v35 = vpop.f32.mrb[0].mxu0 }
 0x18d   : > { %v1070_v36 = vpop.f32.mrb[1].mxu0  ;;  %v605_v37 = vpop.f32.mrb[0].mxu1 }
 0x18e   : > { %v1071_v39 = vadd.f32 %v1070_v36, %v1069_v35  ;;  %v607_v40 = vpop.f32.mrb[1].mxu1 }
 0x190   : > { %v606_v42 = vadd.f32 %v1071_v39, %v605_v37  ;;  %v1072_v43 = vpop.f32.mrb[2].mxu0 }
 0x191   : > { %v1073_v44 = vpop.f32.mrb[3].mxu0  ;;  %v610_v45 = vpop.f32.mrb[2].mxu1 }
 0x192   : > { %v692_v46 = vmul.f32 %v655_v32, %v606_v42  ;;  %v1074_v47 = vadd.f32 %v1073_v44, %v1072_v43  ;;  %v612_v48 = vpop.f32.mrb[3].mxu1  ;;  %v736_v42 = vpop.permute.xlu1 %735 }
 0x194   : > { %v1603_v50 = vadd.f32 %v711_v31, %v692_v46  ;;  %v611_v51 = vadd.f32 %v1074_v47, %v610_v45  ;;  %v1075_v52 = vpop.f32.mrb[4].mxu0  ;;  %v741_v45 = vpop.permute.xlu0 %740 }
 0x195   : > { %v1076_v53 = vpop.f32.mrb[5].mxu0  ;;  %v615_v54 = vpop.f32.mrb[4].mxu1 }
 0x196   : > { %v764_v56 = vmin.f32 %v1603_v50, 0.0  ;;  %v693_v57 = vmul.f32 %v660_v30, %v611_v51  ;;  %v1077_v58 = vadd.f32 %v1076_v53, %v1075_v52  ;;  %v617_v59 = vpop.f32.mrb[5].mxu1  ;;  %vm756_vm2 = vcmp.gt.f32.partialorder %v1603_v50, 0.0 }
 0x198   : > { %v772_v60 = vmul.f32 1.442695, %v764_v56  ;;  %v1606_v61 = vadd.f32 %v716_v34, %v693_v57  ;;  %v616_v62 = vadd.f32 %v1077_v58, %v615_v54  ;;  %v1078_v63 = vpop.f32.mrb[6].mxu0 }
 0x199   : > { %v1079_v1 = vpop.f32.mrb[7].mxu0  ;;  %v620_v0 = vpop.f32.mrb[6].mxu1 }
 0x19a   : > { %1331 = vpow2.f32 %v772_v60  ;;  %v765_v4 = vmin.f32 %v1606_v61, 0.0  ;;  %v694_v6 = vmul.f32 %v665_v33, %v616_v62  ;;  %v622_v7 = vpop.f32.mrb[7].mxu1  ;;  %v1080_v3 = vadd.f32 %v1079_v1, %v1078_v63 }
 0x19b   : > { %vm757_vm3 = vcmp.gt.f32.partialorder %v1606_v61, 0.0 }
 0x19c   : > { %v774_v8 = vmul.f32 1.442695, %v765_v4  ;;  %v1609_v9 = vadd.f32 %v721_v38, %v694_v6  ;;  %v1081_v10 = vpop.f32.mrb[8].mxu0  ;;  %v621_v11 = vadd.f32 %v1080_v3, %v620_v0 }
 0x19d   : > { %v1082_v12 = vpop.f32.mrb[9].mxu0  ;;  %v625_v13 = vpop.f32.mrb[8].mxu1 }
 0x19e   : > { %1333 = vpow2.f32 %v774_v8  ;;  %v766_v14 = vmin.f32 %v1609_v9, 0.0  ;;  %v1083_v15 = vadd.f32 %v1082_v12, %v1081_v10  ;;  %v627_v16 = vpop.f32.mrb[9].mxu1  ;;  %v695_v17 = vmul.f32 %v670_v41, %v621_v11 }
 0x19f   : > { %vm758_vm4 = vcmp.gt.f32.partialorder %v1609_v9, 0.0 }
 0x1a0   : > { %v776_v19 = vmul.f32 1.442695, %v766_v14  ;;  %v626_v20 = vadd.f32 %v1083_v15, %v625_v13  ;;  %v1084_v21 = vpop.f32.mrb[10].mxu0  ;;  %v1612_v22 = vadd.f32 %v726_v55, %v695_v17 }
 0x1a1   : > { %v1085_v23 = vpop.f32.mrb[11].mxu0  ;;  %v630_v24 = vpop.f32.mrb[10].mxu1 }
 0x1a2   : > { %1335 = vpow2.f32 %v776_v19  ;;  %v696_v26 = vmul.f32 %v675_v49, %v626_v20  ;;  %v1086_v27 = vadd.f32 %v1085_v23, %v1084_v21  ;;  %v632_v28 = vpop.f32.mrb[11].mxu1  ;;  %v767_v29 = vmin.f32 %v1612_v22, 0.0 }
 0x1a3   : > { %vm759_vm5 = vcmp.gt.f32.partialorder %v1612_v22, 0.0 }
 0x1a4   : > { %v1332_v30 = vpop.eup %1331  ;;  %v752_v31 = vadd.f32 %v731_v18, %v696_v26  ;;  %v631_v32 = vadd.f32 %v1086_v27, %v630_v24  ;;  %v1087_v33 = vpop.f32.mrb[12].mxu0  ;;  %v778_v34 = vmul.f32 1.442695, %v767_v29 }
 0x1a5   : > { %v1088_v35 = vpop.f32.mrb[13].mxu0  ;;  %v635_v36 = vpop.f32.mrb[12].mxu1  ;;  %v1017_v37 = vadd.f32 -1.0, %v1332_v30 }
 0x1a6   : > { %v768_v38 = vmin.f32 %v752_v31, 0.0  ;;  %v697_v39 = vmul.f32 %v680_v2, %v631_v32  ;;  %v1089_v40 = vadd.f32 %v1088_v35, %v1087_v33  ;;  %v637_v41 = vpop.f32.mrb[13].mxu1  ;;  %1337 = vpow2.f32 %v778_v34  ;;  %v746_v2 = vpop.permute.xlu0 %745 }
 0x1a7   : > { %v796_v43 = vsel %vm756_vm2, %v1603_v50, %v1017_v37  ;;  %vm760_vm6 = vcmp.gt.f32.partialorder %v752_v31, 0.0 }
 0x1a8   : > { %v1334_v44 = vpop.eup %1333  ;;  %v780_v46 = vmul.f32 1.442695, %v768_v38  ;;  %v753_v47 = vadd.f32 %v736_v42, %v697_v39  ;;  %v636_v48 = vadd.f32 %v1089_v40, %v635_v36  ;;  %v1090_v49 = vpop.f32.mrb[14].mxu0  ;;  %1107 = vmatprep.mubr.msk.f32.mxu0 %vm806_vm1, %v796_v43 }
 0x1a9   : > { %v1018_v51 = vadd.f32 -1.0, %v1334_v44  ;;  %v1091_v52 = vpop.f32.mrb[15].mxu0  ;;  %v640_v53 = vpop.f32.mrb[14].mxu1 }
 0x1aa   : > { %1339 = vpow2.f32 %v780_v46  ;;  %v769_v54 = vmin.f32 %v753_v47, 0.0  ;;  %v698_v55 = vmul.f32 %v685_v5, %v636_v48  ;;  %v1092_v56 = vadd.f32 %v1091_v52, %v1090_v49  ;;  %v642_v57 = vpop.f32.mrb[15].mxu1 }
 0x1ab   : > { %v797_v50 = vsel %vm757_vm3, %v1606_v61, %v1018_v51  ;;  %vm761_vm7 = vcmp.gt.f32.partialorder %v753_v47, 0.0 }
 0x1ac   : > { %v1336_v58 = vpop.eup %1335  ;;  %v782_v59 = vmul.f32 1.442695, %v769_v54  ;;  %v754_v60 = vadd.f32 %v741_v45, %v698_v55  ;;  %v641_v62 = vadd.f32 %v1092_v56, %v640_v53  ;;  %1108 = vmatmul.mubr.msk.f32.vlgmr.msra.gmra.mrb[16].mxu0 %vm806_vm1, %v797_v50 }
 0x1ad   : > { %v1019_v63 = vadd.f32 -1.0, %v1336_v58 }
 0x1ae   : > { %1341 = vpow2.f32 %v782_v59  ;;  %v770_v1 = vmin.f32 %v754_v60, 0.0  ;;  %v699_v0 = vmul.f32 %v690_v25, %v641_v62  ;;  %vm762_vm8 = vcmp.gt.f32.partialorder %v754_v60, 0.0 }
 0x1af   : > { %v798_v4 = vsel %vm758_vm4, %v1609_v9, %v1019_v63 }
 0x1b0   : > { %v784_v6 = vmul.f32 1.442695, %v770_v1  ;;  %v755_v7 = vadd.f32 %v746_v2, %v699_v0  ;;  %1110 = vmatprep.mubr.msk.f32.mxu0 %vm806_vm1, %v798_v4  ;;  %v1338_v61 = vpop.eup %1337 }
 0x1b1   : > { %v1020_v5 = vadd.f32 -1.0, %v1338_v61 }
 0x1b2   : > { %1343 = vpow2.f32 %v784_v6  ;;  %v771_v3 = vmin.f32 %v755_v7, 0.0  ;;  %vm763_vm9 = vcmp.gt.f32.partialorder %v755_v7, 0.0 }
 0x1b3   : > { %v799_v11 = vsel %vm759_vm5, %v1612_v22, %v1020_v5 }
 0x1b4   : > { %v1340_v8 = vpop.eup %1339  ;;  %v786_v10 = vmul.f32 1.442695, %v771_v3  ;;  %1111 = vmatmul.mubr.msk.f32.gmra.mrb[18].mxu0 %vm806_vm1, %v799_v11 }
 0x1b5   : > { %v1021_v12 = vadd.f32 -1.0, %v1340_v8 }
 0x1b6   : > { %1345 = vpow2.f32 %v786_v10 }
 0x1b7   : > { %v800_v9 = vsel %vm760_vm6, %v752_v31, %v1021_v12 }
 0x1b8   : > { %v1342_v13 = vpop.eup %1341  ;;  %1113 = vmatprep.mubr.msk.f32.mxu0 %vm806_vm1, %v800_v9 }
 0x1b9   : > { %v1022_v14 = vadd.f32 -1.0, %v1342_v13 }
 0x1bb   : > { %v801_v15 = vsel %vm761_vm7, %v753_v47, %v1022_v14 }
 0x1bc   : > { %v1344_v16 = vpop.eup %1343  ;;  %1114 = vmatmul.mubr.msk.f32.gmra.mrb[20].mxu0 %vm806_vm1, %v801_v15 }
 0x1bd   : > { %v1023_v17 = vadd.f32 -1.0, %v1344_v16 }
 0x1bf   : > { %v802_v18 = vsel %vm762_vm8, %v754_v60, %v1023_v17 }
 0x1c0   : > { %v1346_v19 = vpop.eup %1345  ;;  %1116 = vmatprep.mubr.msk.f32.mxu1 %vm806_vm1, %v802_v18 }
 0x1c1   : > { %v1024_v20 = vadd.f32 -1.0, %v1346_v19 }
 0x1c3   : > { %v803_v21 = vsel %vm763_vm9, %v755_v7, %v1024_v20 }
 0x1c4   : > { %1117 = vmatmul.mubr.msk.f32.vlgmr.msra.gmra.mrb[16].mxu1 %vm806_vm1, %v803_v21 }
 0x27f   : > { %v1109_v22 = vpop.f32.mrb[16].mxu0 }
 0x280   : > { %938 = vst.msk [vmem:[%s224_s24 + $0x8] sm:$0xff] %vm936_vm10, %v1109_v22  ;;  %v897_v23 = vpop.f32.mrb[17].mxu0 }
 0x281   : > { %937 = vst.msk [vmem:[%s224_s24] sm:$0xff] %vm936_vm10, %v897_v23 }
 0x287   : > { %v1112_v24 = vpop.f32.mrb[18].mxu0 }
 0x288   : > { %940 = vst.msk [vmem:[%s224_s24 + $0x18] sm:$0xff] %vm936_vm10, %v1112_v24  ;;  %v907_v25 = vpop.f32.mrb[19].mxu0 }
 0x289   : > { %939 = vst.msk [vmem:[%s224_s24 + $0x10] sm:$0xff] %vm936_vm10, %v907_v25 }
 0x28f   : > { %v1115_v26 = vpop.f32.mrb[20].mxu0 }
 0x290   : > { %942 = vst.msk [vmem:[%s224_s24 + $0x28] sm:$0xff] %vm936_vm10, %v1115_v26  ;;  %v917_v27 = vpop.f32.mrb[21].mxu0 }
 0x291   : > { %941 = vst.msk [vmem:[%s224_s24 + $0x20] sm:$0xff] %vm936_vm10, %v917_v27 }
 0x297   : > { %v1118_v28 = vpop.f32.mrb[16].mxu1 }
 0x298   : > { %944 = vst.msk [vmem:[%s224_s24 + $0x38] sm:$0xff] %vm936_vm10, %v1118_v28  ;;  %v927_v29 = vpop.f32.mrb[17].mxu1 }
 0x299   : > { %943 = vst.msk [vmem:[%s224_s24 + $0x30] sm:$0xff] %vm936_vm10, %v927_v29 }
 0x29a PF: > { %s15_s18 = sadd.s32 1, %s1353_s18  }
 0x29b   : > { %p12_p4 = scmp.ge.s32.totalorder %s15_s18, 4  }
 0x29d   :  { %14 = sbr.rel (!%p12_p4) target bundleno = 1 (0x1), region = 70 }

// kernel: cnn_lstm_forward.9
= control target key start
LH: loop header
LB: loop body
LE: loop exit
PB: predicated region body
PF: predicated region fallthrough
CT: control target
= control target key end

     0   :  { %s1161_s15 = smov 0   ;;  %s1782_s0 = inlined_call_operand.vmem [shape: f32[2,8,512], index: 0, kind: input, shape index: {}]   ;;  %s1783_s1 = inlined_call_operand.vmem [shape: f32[128,512], index: 1, kind: input, shape index: {}]   ;;  %s1784_s2 = inlined_call_operand.vmem [shape: f32[256,512], index: 2, kind: input, shape index: {}]   ;;  %s1785_s3 = inlined_call_operand.vmem [shape: f32[1,512], index: 3, kind: input, shape index: {}]   ;;  %s1786_s4 = inlined_call_operand.vmem [shape: f32[2,8,128], index: 4, kind: output, shape index: {}]  }
   0x1 LB: > { %s869_s16 = sadd.s32 4294967295, %s1127_s15   ;;  %p873_p0 = scmp.ge.s32.totalorder %s1127_s15, 1  ;;  %s1127_s15 = sphi %s1161_s15, %s14_s15  }
   0x2   : > { %p162_p1 = scmp.lt.s32.totalorder %s1127_s15, 3 }
   0x4   : > { %p163_p2 = pnand %p873_p0, %p162_p1 }
   0x5   : > { %p187_p3 = scmp.lt.s32.totalorder (!%p163_p2), %s869_s16, 1  ;;  %v1133_v0 = vmov (!%p163_p2), 0.0   ;;  %s1179_s25 = smov (!%p163_p2), 0  }
   0x6   : > { %166 = sbr.rel (%p163_p2) target bundleno = 644 (0x284), region = 36  ;;  %196 = vst [vmem:[#allocation2] sm:$0x1] (!%p163_p2), %v1133_v0  ;;  %197 = vst [vmem:[#allocation3] sm:$0x1] (!%p163_p2), %v1133_v0 }
   0x7   : > { %198 = vst [vmem:[#allocation4] sm:$0x1] (!%p163_p2), %v1133_v0  ;;  %199 = vst [vmem:[#allocation5] sm:$0x1] (!%p163_p2), %v1133_v0 }
   0xd   : > { %s1788_s16 = smov (!%p187_p3, %s869_s16), 1 }
   0xe   : > { %s884_s17 = sshll.u32 %s1788_s16, 5  ;;  %s876_s18 = sshll.u32 %s1788_s16, 3 }
   0xf   : > { %s1172_s21 = scalar_lea.vmem %s1782_s0, %s884_s17  ;;  %s1177_s24 = scalar_lea.vmem %s1786_s4, %s876_s18 }
  0x10 LB: >> { %v1184_v1 = vld [vmem:[#allocation2] sm:$0x1]  ;;  %p877_p4 = scmp.le.s32.totalorder %s1131_s25, 0  ;;  %s1131_s25 = sphi %s1179_s25, %s205_s25  }
  0x11   : >> { %v213_v2 = vld [vmem:[%s1784_s2 + $0x8] sm:$0xff] (!%p877_p4)  ;;  %v212_v4 = vld [vmem:[%s1784_s2] sm:$0xff] (!%p877_p4)  ;;  %v215_v13 = vld [vmem:[%s1784_s2 + $0x18] sm:$0xff] (!%p877_p4)  ;;  %s878_s17 = sadd.s32 (!%p877_p4), 4294967295, %s1131_s25 }
  0x12   : >> { %210 = sbr.rel (%p877_p4) target bundleno = 335 (0x14f), region = 47  ;;  %v217_v3 = vld [vmem:[%s1784_s2 + $0x28] sm:$0xff] (!%p877_p4)  ;;  %v216_v6 = vld [vmem:[%s1784_s2 + $0x20] sm:$0xff] (!%p877_p4)  ;;  %v219_v14 = vld [vmem:[%s1784_s2 + $0x38] sm:$0xff] (!%p877_p4)  ;;  %p526_p5 = scmp.gt.s32.totalorder (!%p877_p4), %s878_s17, 0 }
  0x13   : >> { %v886_v5 = vpack.c.bf16 (!%p877_p4), %v217_v3, %v213_v2  ;;  %v221_v7 = vld [vmem:[%s1784_s2 + $0x48] sm:$0xff] (!%p877_p4)  ;;  %v888_v9 = vpack.c.bf16 (!%p877_p4), %v216_v6, %v212_v4  ;;  %v220_v11 = vld [vmem:[%s1784_s2 + $0x40] sm:$0xff] (!%p877_p4)  ;;  %v214_v15 = vld [vmem:[%s1784_s2 + $0x10] sm:$0xff] (!%p877_p4)  ;;  %v950_v18 = vpack.c.bf16 (!%p877_p4), %v219_v14, %v215_v13 }
  0x14   : >> { %v225_v8 = vld [vmem:[%s1784_s2 + $0x68] sm:$0xff] (!%p877_p4)  ;;  %v224_v12 = vld [vmem:[%s1784_s2 + $0x60] sm:$0xff] (!%p877_p4)  ;;  %v218_v16 = vld [vmem:[%s1784_s2 + $0x30] sm:$0xff] (!%p877_p4) }
  0x15   : >> { %v890_v10 = vpack.c.bf16 (!%p877_p4), %v225_v8, %v221_v7  ;;  %887 = vmatprep.subr.bf16.mxu0 (!%p877_p4), %v886_v5  ;;  %v892_v17 = vpack.c.bf16 (!%p877_p4), %v224_v12, %v220_v11  ;;  %v952_v19 = vpack.c.bf16 (!%p877_p4), %v218_v16, %v214_v15  ;;  %v229_v20 = vld [vmem:[%s1784_s2 + $0x88] sm:$0xff] (!%p877_p4)  ;;  %v228_v22 = vld [vmem:[%s1784_s2 + $0x80] sm:$0xff] (!%p877_p4)  ;;  %v223_v25 = vld [vmem:[%s1784_s2 + $0x58] sm:$0xff] (!%p877_p4)  ;;  %951 = vmatprep.subr.bf16.mxu1 (!%p877_p4), %v950_v18 }
  0x16   : >> { %889 = vmatpush1.bf16.msra.mxu0 (!%p877_p4), %v888_v9  ;;  %v233_v21 = vld [vmem:[%s1784_s2 + $0xa8] sm:$0xff] (!%p877_p4)  ;;  %v232_v24 = vld [vmem:[%s1784_s2 + $0xa0] sm:$0xff] (!%p877_p4)  ;;  %v227_v26 = vld [vmem:[%s1784_s2 + $0x78] sm:$0xff] (!%p877_p4) }
  0x17   : >> { %891 = vmatprep.subr.bf16.mxu0 (!%p877_p4), %v890_v10  ;;  %v894_v23 = vpack.c.bf16 (!%p877_p4), %v233_v21, %v229_v20  ;;  %v954_v27 = vpack.c.bf16 (!%p877_p4), %v227_v26, %v223_v25  ;;  %v222_v28 = vld [vmem:[%s1784_s2 + $0x50] sm:$0xff] (!%p877_p4)  ;;  %v237_v30 = vld [vmem:[%s1784_s2 + $0xc8] sm:$0xff] (!%p877_p4)  ;;  %953 = vmatpush1.bf16.msra.mxu1 (!%p877_p4), %v952_v19  ;;  %v896_v33 = vpack.c.bf16 (!%p877_p4), %v232_v24, %v228_v22  ;;  %v231_v34 = vld [vmem:[%s1784_s2 + $0x98] sm:$0xff] (!%p877_p4) }
  0x18   : >> { %v226_v29 = vld [vmem:[%s1784_s2 + $0x70] sm:$0xff] (!%p877_p4)  ;;  %v241_v32 = vld [vmem:[%s1784_s2 + $0xe8] sm:$0xff] (!%p877_p4)  ;;  %v235_v35 = vld [vmem:[%s1784_s2 + $0xb8] sm:$0xff] (!%p877_p4) }
  0x19   : >> { %v956_v31 = vpack.c.bf16 %v226_v29, %v222_v28  ;;  %955 = vmatprep.subr.bf16.mxu1 %v954_v27  ;;  %v230_v36 = vld [vmem:[%s1784_s2 + $0x90] sm:$0xff]  ;;  %v898_v37 = vpack.c.bf16 %v241_v32, %v237_v30  ;;  %v236_v38 = vld [vmem:[%s1784_s2 + $0xc0] sm:$0xff]  ;;  %v958_v40 = vpack.c.bf16 %v235_v35, %v231_v34  ;;  %v245_v42 = vld [vmem:[%s1784_s2 + $0x108] sm:$0xff]  ;;  %s1790_s17 = smov (!%p526_p5, %s878_s17), 0 }
  0x1a   : >> { %893 = vmatpush1.bf16.msra.mxu0 %v892_v17  ;;  %v240_v39 = vld [vmem:[%s1784_s2 + $0xe0] sm:$0xff]  ;;  %v234_v41 = vld [vmem:[%s1784_s2 + $0xb0] sm:$0xff]  ;;  %v249_v43 = vld [vmem:[%s1784_s2 + $0x128] sm:$0xff]  ;;  %s528_s18 = scalar_lea.vmem %s1177_s24, %s1790_s17 }
  0x1b   : >> { %895 = vmatprep.subr.bf16.mxu0 %v894_v23  ;;  %v239_v44 = vld [vmem:[%s1784_s2 + $0xd8] sm:$0xff]  ;;  %957 = vmatpush1.bf16.msra.mxu1 %v956_v31  ;;  %v960_v45 = vpack.c.bf16 %v234_v41, %v230_v36  ;;  %v900_v47 = vpack.c.bf16 %v240_v39, %v236_v38  ;;  %v244_v48 = vld [vmem:[%s1784_s2 + $0x100] sm:$0xff]  ;;  %v238_v50 = vld [vmem:[%s1784_s2 + $0xd0] sm:$0xff]  ;;  %v902_v52 = vpack.c.bf16 %v249_v43, %v245_v42 }
  0x1c   : >> { %v243_v46 = vld [vmem:[%s1784_s2 + $0xf8] sm:$0xff]  ;;  %959 = vmatprep.subr.bf16.mxu1 %v958_v40  ;;  %v242_v51 = vld [vmem:[%s1784_s2 + $0xf0] sm:$0xff]  ;;  %v248_v53 = vld [vmem:[%s1784_s2 + $0x120] sm:$0xff] }
  0x1d   : >> { %v962_v49 = vpack.c.bf16 %v243_v46, %v239_v44  ;;  %v247_v54 = vld [vmem:[%s1784_s2 + $0x118] sm:$0xff]  ;;  %v253_v56 = vld [vmem:[%s1784_s2 + $0x148] sm:$0xff]  ;;  %v964_v58 = vpack.c.bf16 %v242_v51, %v238_v50  ;;  %v904_v59 = vpack.c.bf16 %v248_v53, %v244_v48  ;;  %v252_v60 = vld [vmem:[%s1784_s2 + $0x140] sm:$0xff] }
  0x1e   : >> { %897 = vmatpush1.bf16.msra.mxu0 %v896_v33  ;;  %v251_v55 = vld [vmem:[%s1784_s2 + $0x138] sm:$0xff]  ;;  %v257_v57 = vld [vmem:[%s1784_s2 + $0x168] sm:$0xff]  ;;  %v246_v62 = vld [vmem:[%s1784_s2 + $0x110] sm:$0xff] }
  0x1f   : >> { %899 = vmatprep.subr.bf16.mxu0 %v898_v37  ;;  %961 = vmatpush1.bf16.msra.mxu1 %v960_v45  ;;  %v966_v61 = vpack.c.bf16 %v251_v55, %v247_v54  ;;  %v250_v63 = vld [vmem:[%s1784_s2 + $0x130] sm:$0xff]  ;;  %v906_v0 = vpack.c.bf16 %v257_v57, %v253_v56  ;;  %v256_v2 = vld [vmem:[%s1784_s2 + $0x160] sm:$0xff]  ;;  %v255_v3 = vld [vmem:[%s1784_s2 + $0x158] sm:$0xff] }
  0x20   : >> { %963 = vmatprep.subr.bf16.mxu1 %v962_v49  ;;  %v259_v4 = vld [vmem:[%s1784_s2 + $0x178] sm:$0xff]  ;;  %v261_v5 = vld [vmem:[%s1784_s2 + $0x188] sm:$0xff]  ;;  %v968_v7 = vpack.c.bf16 %v250_v63, %v246_v62  ;;  %v908_v8 = vpack.c.bf16 %v256_v2, %v252_v60  ;;  %v260_v9 = vld [vmem:[%s1784_s2 + $0x180] sm:$0xff] }
  0x21   : >> { %v265_v6 = vld [vmem:[%s1784_s2 + $0x1a8] sm:$0xff]  ;;  %v970_v10 = vpack.c.bf16 %v259_v4, %v255_v3  ;;  %v254_v11 = vld [vmem:[%s1784_s2 + $0x150] sm:$0xff]  ;;  %v264_v14 = vld [vmem:[%s1784_s2 + $0x1a0] sm:$0xff] }
  0x22   : >> { %901 = vmatpush1.bf16.msra.mxu0 %v900_v47  ;;  %v258_v12 = vld [vmem:[%s1784_s2 + $0x170] sm:$0xff]  ;;  %v910_v13 = vpack.c.bf16 %v265_v6, %v261_v5  ;;  %v263_v15 = vld [vmem:[%s1784_s2 + $0x198] sm:$0xff]  ;;  %v269_v17 = vld [vmem:[%s1784_s2 + $0x1c8] sm:$0xff]  ;;  %v912_v20 = vpack.c.bf16 %v264_v14, %v260_v9 }
  0x23   : >> { %903 = vmatprep.subr.bf16.mxu0 %v902_v52  ;;  %965 = vmatpush1.bf16.msra.mxu1 %v964_v58  ;;  %v267_v16 = vld [vmem:[%s1784_s2 + $0x1b8] sm:$0xff]  ;;  %v273_v18 = vld [vmem:[%s1784_s2 + $0x1e8] sm:$0xff]  ;;  %v972_v19 = vpack.c.bf16 %v258_v12, %v254_v11  ;;  %v268_v21 = vld [vmem:[%s1784_s2 + $0x1c0] sm:$0xff] }
  0x24   : >> { %967 = vmatprep.subr.bf16.mxu1 %v966_v61  ;;  %v974_v22 = vpack.c.bf16 %v267_v16, %v263_v15  ;;  %v262_v23 = vld [vmem:[%s1784_s2 + $0x190] sm:$0xff]  ;;  %v914_v25 = vpack.c.bf16 %v273_v18, %v269_v17  ;;  %v272_v26 = vld [vmem:[%s1784_s2 + $0x1e0] sm:$0xff]  ;;  %v271_v27 = vld [vmem:[%s1784_s2 + $0x1d8] sm:$0xff] }
  0x25   : >> { %v266_v24 = vld [vmem:[%s1784_s2 + $0x1b0] sm:$0xff]  ;;  %v275_v28 = vld [vmem:[%s1784_s2 + $0x1f8] sm:$0xff]  ;;  %v277_v29 = vld [vmem:[%s1784_s2 + $0x208] sm:$0xff]  ;;  %v916_v32 = vpack.c.bf16 %v272_v26, %v268_v21 }
  0x26   : >> { %905 = vmatpush1.bf16.msra.mxu0 %v904_v59  ;;  %v281_v30 = vld [vmem:[%s1784_s2 + $0x228] sm:$0xff]  ;;  %v976_v31 = vpack.c.bf16 %v266_v24, %v262_v23  ;;  %v276_v33 = vld [vmem:[%s1784_s2 + $0x200] sm:$0xff]  ;;  %v978_v34 = vpack.c.bf16 %v275_v28, %v271_v27  ;;  %v270_v35 = vld [vmem:[%s1784_s2 + $0x1d0] sm:$0xff] }
  0x27   : >> { %907 = vmatprep.subr.bf16.mxu0 %v906_v0  ;;  %969 = vmatpush1.bf16.msra.mxu1 %v968_v7  ;;  %v274_v36 = vld [vmem:[%s1784_s2 + $0x1f0] sm:$0xff]  ;;  %v918_v37 = vpack.c.bf16 %v281_v30, %v277_v29  ;;  %v280_v38 = vld [vmem:[%s1784_s2 + $0x220] sm:$0xff]  ;;  %v279_v39 = vld [vmem:[%s1784_s2 + $0x218] sm:$0xff] }
  0x28   : >> { %971 = vmatprep.subr.bf16.mxu1 %v970_v10  ;;  %v283_v40 = vld [vmem:[%s1784_s2 + $0x238] sm:$0xff]  ;;  %v285_v41 = vld [vmem:[%s1784_s2 + $0x248] sm:$0xff]  ;;  %v980_v43 = vpack.c.bf16 %v274_v36, %v270_v35  ;;  %v920_v44 = vpack.c.bf16 %v280_v38, %v276_v33  ;;  %v284_v45 = vld [vmem:[%s1784_s2 + $0x240] sm:$0xff] }
  0x29   : >> { %v289_v42 = vld [vmem:[%s1784_s2 + $0x268] sm:$0xff]  ;;  %v982_v46 = vpack.c.bf16 %v283_v40, %v279_v39  ;;  %v278_v47 = vld [vmem:[%s1784_s2 + $0x210] sm:$0xff]  ;;  %v288_v50 = vld [vmem:[%s1784_s2 + $0x260] sm:$0xff] }
  0x2a   : >> { %909 = vmatpush1.bf16.msra.mxu0 %v908_v8  ;;  %v282_v48 = vld [vmem:[%s1784_s2 + $0x230] sm:$0xff]  ;;  %v922_v49 = vpack.c.bf16 %v289_v42, %v285_v41  ;;  %v287_v51 = vld [vmem:[%s1784_s2 + $0x258] sm:$0xff]  ;;  %v293_v53 = vld [vmem:[%s1784_s2 + $0x288] sm:$0xff]  ;;  %v924_v56 = vpack.c.bf16 %v288_v50, %v284_v45 }
  0x2b   : >> { %911 = vmatprep.subr.bf16.mxu0 %v910_v13  ;;  %973 = vmatpush1.bf16.msra.mxu1 %v972_v19  ;;  %v291_v52 = vld [vmem:[%s1784_s2 + $0x278] sm:$0xff]  ;;  %v297_v54 = vld [vmem:[%s1784_s2 + $0x2a8] sm:$0xff]  ;;  %v984_v55 = vpack.c.bf16 %v282_v48, %v278_v47  ;;  %v292_v57 = vld [vmem:[%s1784_s2 + $0x280] sm:$0xff] }
  0x2c   : >> { %975 = vmatprep.subr.bf16.mxu1 %v974_v22  ;;  %v986_v58 = vpack.c.bf16 %v291_v52, %v287_v51  ;;  %v286_v59 = vld [vmem:[%s1784_s2 + $0x250] sm:$0xff]  ;;  %v926_v61 = vpack.c.bf16 %v297_v54, %v293_v53  ;;  %v296_v62 = vld [vmem:[%s1784_s2 + $0x2a0] sm:$0xff]  ;;  %v295_v63 = vld [vmem:[%s1784_s2 + $0x298] sm:$0xff] }
  0x2d   : >> { %v290_v60 = vld [vmem:[%s1784_s2 + $0x270] sm:$0xff]  ;;  %v299_v0 = vld [vmem:[%s1784_s2 + $0x2b8] sm:$0xff]  ;;  %v301_v2 = vld [vmem:[%s1784_s2 + $0x2c8] sm:$0xff]  ;;  %v928_v6 = vpack.c.bf16 %v296_v62, %v292_v57 }
  0x2e   : >> { %913 = vmatpush1.bf16.msra.mxu0 %v912_v20  ;;  %v305_v3 = vld [vmem:[%s1784_s2 + $0x2e8] sm:$0xff]  ;;  %v988_v4 = vpack.c.bf16 %v290_v60, %v286_v59  ;;  %v300_v5 = vld [vmem:[%s1784_s2 + $0x2c0] sm:$0xff]  ;;  %v990_v7 = vpack.c.bf16 %v299_v0, %v295_v63  ;;  %v294_v8 = vld [vmem:[%s1784_s2 + $0x290] sm:$0xff] }
  0x2f   : >> { %915 = vmatprep.subr.bf16.mxu0 %v914_v25  ;;  %977 = vmatpush1.bf16.msra.mxu1 %v976_v31  ;;  %v298_v9 = vld [vmem:[%s1784_s2 + $0x2b0] sm:$0xff]  ;;  %v211_v10 = vld [vmem:[#allocation4] sm:$0x1]  ;;  %v930_v11 = vpack.c.bf16 %v305_v3, %v301_v2  ;;  %v303_v13 = vld [vmem:[%s1784_s2 + $0x2d8] sm:$0xff] }
  0x30   : >> { %979 = vmatprep.subr.bf16.mxu1 %v978_v34  ;;  %v304_v12 = vld [vmem:[%s1784_s2 + $0x2e0] sm:$0xff]  ;;  %v307_v14 = vld [vmem:[%s1784_s2 + $0x2f8] sm:$0xff]  ;;  %426 = vmatprep.mubr.f32.mxu0 %v211_v10  ;;  %v309_v15 = vld [vmem:[%s1784_s2 + $0x308] sm:$0xff]  ;;  %v992_v17 = vpack.c.bf16 %v298_v9, %v294_v8 }
  0x31   : >> { %v313_v16 = vld [vmem:[%s1784_s2 + $0x328] sm:$0xff]  ;;  %497 = vmatprep.mubr.f32.mxu1 %v211_v10  ;;  %v932_v18 = vpack.c.bf16 %v304_v12, %v300_v5  ;;  %v308_v19 = vld [vmem:[%s1784_s2 + $0x300] sm:$0xff]  ;;  %v994_v20 = vpack.c.bf16 %v307_v14, %v303_v13  ;;  %v302_v21 = vld [vmem:[%s1784_s2 + $0x2d0] sm:$0xff] }
  0x32   : >> { %917 = vmatpush1.bf16.msra.mxu0 %v916_v32  ;;  %v306_v22 = vld [vmem:[%s1784_s2 + $0x2f0] sm:$0xff]  ;;  %v934_v23 = vpack.c.bf16 %v313_v16, %v309_v15  ;;  %v312_v24 = vld [vmem:[%s1784_s2 + $0x320] sm:$0xff]  ;;  %v311_v25 = vld [vmem:[%s1784_s2 + $0x318] sm:$0xff] }
  0x33   : >> { %919 = vmatprep.subr.bf16.mxu0 %v918_v37  ;;  %981 = vmatpush1.bf16.msra.mxu1 %v980_v43  ;;  %v315_v26 = vld [vmem:[%s1784_s2 + $0x338] sm:$0xff]  ;;  %v317_v27 = vld [vmem:[%s1784_s2 + $0x348] sm:$0xff]  ;;  %v996_v29 = vpack.c.bf16 %v306_v22, %v302_v21  ;;  %v936_v30 = vpack.c.bf16 %v312_v24, %v308_v19  ;;  %v316_v31 = vld [vmem:[%s1784_s2 + $0x340] sm:$0xff] }
  0x34   : >> { %983 = vmatprep.subr.bf16.mxu1 %v982_v46  ;;  %v321_v28 = vld [vmem:[%s1784_s2 + $0x368] sm:$0xff]  ;;  %v998_v32 = vpack.c.bf16 %v315_v26, %v311_v25  ;;  %v310_v33 = vld [vmem:[%s1784_s2 + $0x310] sm:$0xff]  ;;  %v320_v36 = vld [vmem:[%s1784_s2 + $0x360] sm:$0xff] }
  0x35   : >> { %v314_v34 = vld [vmem:[%s1784_s2 + $0x330] sm:$0xff]  ;;  %v938_v35 = vpack.c.bf16 %v321_v28, %v317_v27  ;;  %v319_v37 = vld [vmem:[%s1784_s2 + $0x358] sm:$0xff]  ;;  %v325_v39 = vld [vmem:[%s1784_s2 + $0x388] sm:$0xff]  ;;  %v940_v42 = vpack.c.bf16 %v320_v36, %v316_v31 }
  0x36   : >> { %921 = vmatpush1.bf16.msra.mxu0 %v920_v44  ;;  %v323_v38 = vld [vmem:[%s1784_s2 + $0x378] sm:$0xff]  ;;  %v329_v40 = vld [vmem:[%s1784_s2 + $0x3a8] sm:$0xff]  ;;  %v1000_v41 = vpack.c.bf16 %v314_v34, %v310_v33  ;;  %v324_v43 = vld [vmem:[%s1784_s2 + $0x380] sm:$0xff] }
  0x37   : >> { %923 = vmatprep.subr.bf16.mxu0 %v922_v49  ;;  %985 = vmatpush1.bf16.msra.mxu1 %v984_v55  ;;  %v1002_v44 = vpack.c.bf16 %v323_v38, %v319_v37  ;;  %v318_v45 = vld [vmem:[%s1784_s2 + $0x350] sm:$0xff]  ;;  %v942_v47 = vpack.c.bf16 %v329_v40, %v325_v39  ;;  %v328_v48 = vld [vmem:[%s1784_s2 + $0x3a0] sm:$0xff]  ;;  %v327_v49 = vld [vmem:[%s1784_s2 + $0x398] sm:$0xff] }
  0x38   : >> { %987 = vmatprep.subr.bf16.mxu1 %v986_v58  ;;  %v322_v46 = vld [vmem:[%s1784_s2 + $0x370] sm:$0xff]  ;;  %v331_v50 = vld [vmem:[%s1784_s2 + $0x3b8] sm:$0xff]  ;;  %v333_v51 = vld [vmem:[%s1784_s2 + $0x3c8] sm:$0xff]  ;;  %v944_v54 = vpack.c.bf16 %v328_v48, %v324_v43 }
  0x39   : >> { %v337_v52 = vld [vmem:[%s1784_s2 + $0x3e8] sm:$0xff]  ;;  %v1004_v53 = vpack.c.bf16 %v322_v46, %v318_v45  ;;  %v332_v55 = vld [vmem:[%s1784_s2 + $0x3c0] sm:$0xff]  ;;  %v326_v57 = vld [vmem:[%s1784_s2 + $0x390] sm:$0xff] }
  0x3a   : >> { %925 = vmatpush1.bf16.msra.mxu0 %v924_v56  ;;  %v1006_v56 = vpack.c.bf16 %v331_v50, %v327_v49  ;;  %v330_v58 = vld [vmem:[%s1784_s2 + $0x3b0] sm:$0xff]  ;;  %v946_v59 = vpack.c.bf16 %v337_v52, %v333_v51  ;;  %v336_v60 = vld [vmem:[%s1784_s2 + $0x3e0] sm:$0xff]  ;;  %v339_v62 = vld [vmem:[%s1784_s2 + $0x3f8] sm:$0xff] }
  0x3b   : >> { %927 = vmatprep.subr.bf16.mxu0 %v926_v61  ;;  %989 = vmatpush1.bf16.msra.mxu1 %v988_v4  ;;  %v335_v61 = vld [vmem:[%s1784_s2 + $0x3d8] sm:$0xff]  ;;  %v1008_v63 = vpack.c.bf16 %v330_v58, %v326_v57  ;;  %v948_v0 = vpack.c.bf16 %v336_v60, %v332_v55  ;;  %v334_v3 = vld [vmem:[%s1784_s2 + $0x3d0] sm:$0xff]  ;;  %v340_v9 = vld [vmem:[%s1785_s3] sm:$0xf] }
  0x3c   : >> { %991 = vmatprep.subr.bf16.mxu1 %v990_v7  ;;  %v1010_v2 = vpack.c.bf16 %v339_v62, %v335_v61  ;;  %v338_v4 = vld [vmem:[%s1784_s2 + $0x3f0] sm:$0xff]  ;;  %v517_v34 = vld [vmem:[#allocation5] sm:$0x1] }
  0x3d   : >> { %v1012_v5 = vpack.c.bf16 %v338_v4, %v334_v3 }
  0x3e   : >> { %929 = vmatpush1.bf16.msra.mxu0 %v928_v6  ;;  %v342_v6 = vlaneseq }
  0x3f   : >> { %931 = vmatprep.subr.bf16.mxu0 %v930_v11  ;;  %993 = vmatpush1.bf16.msra.mxu1 %v992_v17 }
  0x40   : >> { %995 = vmatprep.subr.bf16.mxu1 %v994_v20  ;;  %v343_v7 = vshrl.u32 %v342_v6, 7 }
  0x42   : >> { %933 = vmatpush1.bf16.msra.mxu0 %v932_v18  ;;  %v344_v8 = vsub.s32 0, %v343_v7  ;;  %v348_v10 = vsub.s32 1, %v343_v7  ;;  %v352_v11 = vsub.s32 2, %v343_v7  ;;  %v356_v18 = vsub.s32 3, %v343_v7 }
  0x43   : >> { %935 = vmatprep.subr.bf16.mxu0 %v934_v23  ;;  %997 = vmatpush1.bf16.msra.mxu1 %v996_v29 }
  0x44   : >> { %999 = vmatprep.subr.bf16.mxu1 %v998_v32  ;;  %v345_v12 = vrot.slane %v340_v9, %v344_v8  ;;  %v349_v13 = vrot.slane %v340_v9, %v348_v10  ;;  %v353_v15 = vrot.slane %v340_v9, %v352_v11  ;;  %v357_v25 = vrot.slane %v340_v9, %v356_v18 }
  0x46   : >> { %937 = vmatpush1.bf16.msra.mxu0 %v936_v30 }
  0x47   : >> { %939 = vmatprep.subr.bf16.mxu0 %v938_v35  ;;  %1001 = vmatpush1.bf16.msra.mxu1 %v1000_v41 }
  0x48   : >> { %1003 = vmatprep.subr.bf16.mxu1 %v1002_v44 }
  0x4a   : >> { %941 = vmatpush1.bf16.msra.mxu0 %v940_v42 }
  0x4b   : >> { %943 = vmatprep.subr.bf16.mxu0 %v942_v47  ;;  %1005 = vmatpush1.bf16.msra.mxu1 %v1004_v53 }
  0x4c   : >> { %1007 = vmatprep.subr.bf16.mxu1 %v1006_v56 }
  0x4e   : >> { %945 = vmatpush1.bf16.msra.mxu0 %v944_v54 }
  0x4f   : >> { %947 = vmatprep.subr.bf16.mxu0 %v946_v59  ;;  %1009 = vmatpush1.bf16.msra.mxu1 %v1008_v63 }
  0x50   : >> { %1011 = vmatprep.subr.bf16.mxu1 %v1010_v2 }
  0x52   : >> { %949 = vmatpush1.bf16.msra.mxu0 %v948_v0 }
  0x53   : >> { %1013 = vmatpush1.bf16.msra.mxu1 %v1012_v5 }
  0x55   : >> { %427 = vmatmul.mubr.f32.vlgmr.msra.gmra.mrb[0].mxu0 %v1184_v1 }
  0x56   : >> { %498 = vmatmul.mubr.f32.vlgmr.msra.gmra.mrb[0].mxu1 %v1184_v1 }
 0x128   : >> { %v428_v14 = vpop.f32.mrb[0].mxu0 }
 0x129   : >> { %v429_v16 = vadd.f32 %v428_v14, %v345_v12  ;;  %v430_v17 = vpop.f32.mrb[1].mxu0  ;;  %v499_v21 = vpop.f32.mrb[0].mxu1 }
 0x12a   : >> { %v431_v19 = vadd.f32 %v430_v17, %v349_v13  ;;  %v500_v23 = vadd.f32 %v499_v21, %v353_v15  ;;  %v501_v24 = vpop.f32.mrb[1].mxu1 }
 0x12b   : >> { %v504_v20 = vmul.f32 0.5, %v429_v16  ;;  %v502_v26 = vadd.f32 %v501_v24, %v357_v25 }
 0x12c   : >> { %v508_v22 = vmul.f32 0.5, %v431_v19 }
 0x12d   : >> { %1097 = vtanh.f32 %v504_v20  ;;  %v513_v27 = vmul.f32 0.5, %v502_v26 }
 0x12e   : >> { %1099 = vtanh.f32 %v508_v22 }
 0x12f   : >> { %1101 = vtanh.f32 %v500_v23 }
 0x130   : >> { %1103 = vtanh.f32 %v513_v27 }
 0x137   : >> { %v1098_v28 = vpop.eup %1097 }
 0x138   : >> { %v1100_v29 = vpop.eup %1099  ;;  %v506_v30 = vmul.f32 0.5, %v1098_v28 }
 0x139   : >> { %v1102_v31 = vpop.eup %1101  ;;  %v510_v32 = vmul.f32 0.5, %v1100_v29 }
 0x13a   : >> { %v507_v33 = vadd.f32 0.5, %v506_v30  ;;  %v1104_v39 = vpop.eup %1103 }
 0x13b   : >> { %v511_v35 = vadd.f32 0.5, %v510_v32  ;;  %v515_v40 = vmul.f32 0.5, %v1104_v39 }
 0x13c   : >> { %v519_v36 = vmul.f32 %v1102_v31, %v507_v33 }
 0x13d   : >> { %v518_v37 = vmul.f32 %v517_v34, %v511_v35  ;;  %v516_v41 = vadd.f32 0.5, %v515_v40 }
 0x13f   : >> { %v520_v38 = vadd.f32 %v519_v36, %v518_v37 }
 0x141   : >> { %1105 = vtanh.f32 %v520_v38  ;;  %523 = vst [vmem:[#allocation5] sm:$0x1] %v520_v38 }
 0x14b   : >> { %v1106_v42 = vpop.eup %1105 }
 0x14c   : >> { %v522_v43 = vmul.f32 %v1106_v42, %v516_v41 }
 0x14e   : >> { %524 = vst [vmem:[#allocation4] sm:$0x1] %v522_v43  ;;  %529 = vst [vmem:[%s528_s18] sm:$0x1] %v522_v43 }
 0x14f PF: >> { %p879_p6 = scmp.ge.s32.totalorder %s1131_s25, 8 }
 0x150   : >> { %v544_v44 = vld [vmem:[%s1783_s1 + $0x8] sm:$0xff] (!%p879_p6)  ;;  %v546_v46 = vld [vmem:[%s1783_s1 + $0x18] sm:$0xff] (!%p879_p6)  ;;  %v543_v49 = vld [vmem:[%s1783_s1] sm:$0xff] (!%p879_p6)  ;;  %v1134_v51 = vmov (!%p879_p6), 0.0   ;;  %s534_s14 = sshra.s32 (!%p879_p6), %s1131_s25, 3  ;;  %s537_s16 = sand.u32 (!%p879_p6), 7, %s1131_s25 }
 0x151   : >> { %533 = sbr.rel (%p879_p6) target bundleno = 633 (0x279), region = 51  ;;  %v548_v45 = vld [vmem:[%s1783_s1 + $0x28] sm:$0xff] (!%p879_p6)  ;;  %v550_v48 = vld [vmem:[%s1783_s1 + $0x38] sm:$0xff] (!%p879_p6)  ;;  %v547_v50 = vld [vmem:[%s1783_s1 + $0x20] sm:$0xff] (!%p879_p6)  ;;  %671 = vmatprep.mubr.f32.mxu0 (!%p879_p6), %v1134_v51  ;;  %742 = vmatprep.mubr.f32.mxu1 (!%p879_p6), %v1134_v51  ;;  %s885_s17 = sshll.u32 (!%p879_p6), %s534_s14, 5 }
 0x152   : >> { %v1014_v47 = vpack.c.bf16 (!%p879_p6), %v548_v45, %v544_v44  ;;  %v1046_v52 = vpack.c.bf16 (!%p879_p6), %v550_v48, %v546_v46  ;;  %v1016_v53 = vpack.c.bf16 (!%p879_p6), %v547_v50, %v543_v49  ;;  %v545_v54 = vld [vmem:[%s1783_s1 + $0x10] sm:$0xff] (!%p879_p6)  ;;  %v552_v56 = vld [vmem:[%s1783_s1 + $0x48] sm:$0xff] (!%p879_p6)  ;;  %v554_v59 = vld [vmem:[%s1783_s1 + $0x58] sm:$0xff] (!%p879_p6)  ;;  %s540_s18 = sadd.s32 (!%p879_p6), %s885_s17, %s537_s16 }
 0x153   : >> { %v549_v55 = vld [vmem:[%s1783_s1 + $0x30] sm:$0xff] (!%p879_p6)  ;;  %v556_v58 = vld [vmem:[%s1783_s1 + $0x68] sm:$0xff] (!%p879_p6)  ;;  %v558_v60 = vld [vmem:[%s1783_s1 + $0x78] sm:$0xff] (!%p879_p6)  ;;  %s541_s19 = scalar_lea.vmem (!%p879_p6), %s1172_s21, %s540_s18 }
 0x154   : >> { %1015 = vmatprep.subr.bf16.mxu0 (!%p879_p6), %v1014_v47  ;;  %v1048_v57 = vpack.c.bf16 (!%p879_p6), %v549_v55, %v545_v54  ;;  %1047 = vmatprep.subr.bf16.mxu1 (!%p879_p6), %v1046_v52  ;;  %v1018_v61 = vpack.c.bf16 (!%p879_p6), %v556_v58, %v552_v56  ;;  %v1050_v62 = vpack.c.bf16 (!%p879_p6), %v558_v60, %v554_v59  ;;  %v551_v63 = vld [vmem:[%s1783_s1 + $0x40] sm:$0xff] (!%p879_p6)  ;;  %v553_v2 = vld [vmem:[%s1783_s1 + $0x50] sm:$0xff] (!%p879_p6)  ;;  %v560_v5 = vld [vmem:[%s1783_s1 + $0x88] sm:$0xff] (!%p879_p6) }
 0x155   : >> { %1017 = vmatpush1.bf16.msra.mxu0 (!%p879_p6), %v1016_v53  ;;  %v555_v0 = vld [vmem:[%s1783_s1 + $0x60] sm:$0xff] (!%p879_p6)  ;;  %v557_v4 = vld [vmem:[%s1783_s1 + $0x70] sm:$0xff] (!%p879_p6)  ;;  %v564_v6 = vld [vmem:[%s1783_s1 + $0xa8] sm:$0xff] (!%p879_p6) }
 0x156   : >> { %1049 = vmatpush1.bf16.msra.mxu1 (!%p879_p6), %v1048_v57  ;;  %v1020_v3 = vpack.c.bf16 (!%p879_p6), %v555_v0, %v551_v63  ;;  %1019 = vmatprep.subr.bf16.mxu0 (!%p879_p6), %v1018_v61  ;;  %v1052_v7 = vpack.c.bf16 (!%p879_p6), %v557_v4, %v553_v2  ;;  %v1022_v8 = vpack.c.bf16 (!%p879_p6), %v564_v6, %v560_v5  ;;  %v562_v9 = vld [vmem:[%s1783_s1 + $0x98] sm:$0xff] (!%p879_p6)  ;;  %v559_v11 = vld [vmem:[%s1783_s1 + $0x80] sm:$0xff] (!%p879_p6)  ;;  %v561_v14 = vld [vmem:[%s1783_s1 + $0x90] sm:$0xff] (!%p879_p6) }
 0x157   : >> { %1051 = vmatprep.subr.bf16.mxu1 (!%p879_p6), %v1050_v62  ;;  %v566_v10 = vld [vmem:[%s1783_s1 + $0xb8] sm:$0xff] (!%p879_p6)  ;;  %v563_v13 = vld [vmem:[%s1783_s1 + $0xa0] sm:$0xff] (!%p879_p6)  ;;  %v565_v15 = vld [vmem:[%s1783_s1 + $0xb0] sm:$0xff] (!%p879_p6) }
 0x158   : >> { %v1054_v12 = vpack.c.bf16 %v566_v10, %v562_v9  ;;  %v1024_v16 = vpack.c.bf16 %v563_v13, %v559_v11  ;;  %v568_v17 = vld [vmem:[%s1783_s1 + $0xc8] sm:$0xff]  ;;  %v570_v19 = vld [vmem:[%s1783_s1 + $0xd8] sm:$0xff]  ;;  %v1056_v20 = vpack.c.bf16 %v565_v15, %v561_v14  ;;  %v567_v23 = vld [vmem:[%s1783_s1 + $0xc0] sm:$0xff]  ;;  %v1135_v15 = vmov 1966171168  }
 0x159   : >> { %1021 = vmatpush1.bf16.msra.mxu0 %v1020_v3  ;;  %v572_v18 = vld [vmem:[%s1783_s1 + $0xe8] sm:$0xff]  ;;  %v574_v22 = vld [vmem:[%s1783_s1 + $0xf8] sm:$0xff]  ;;  %v571_v24 = vld [vmem:[%s1783_s1 + $0xe0] sm:$0xff] }
 0x15a   : >> { %1053 = vmatpush1.bf16.msra.mxu1 %v1052_v7  ;;  %1023 = vmatprep.subr.bf16.mxu0 %v1022_v8  ;;  %v1026_v21 = vpack.c.bf16 %v572_v18, %v568_v17  ;;  %v1058_v25 = vpack.c.bf16 %v574_v22, %v570_v19  ;;  %v569_v26 = vld [vmem:[%s1783_s1 + $0xd0] sm:$0xff]  ;;  %v576_v28 = vld [vmem:[%s1783_s1 + $0x108] sm:$0xff]  ;;  %v578_v30 = vld [vmem:[%s1783_s1 + $0x118] sm:$0xff]  ;;  %v1028_v32 = vpack.c.bf16 %v571_v24, %v567_v23  ;;  %v758_v17 = vlaneseq }
 0x15b   : >> { %1055 = vmatprep.subr.bf16.mxu1 %v1054_v12  ;;  %v573_v27 = vld [vmem:[%s1783_s1 + $0xf0] sm:$0xff]  ;;  %v580_v29 = vld [vmem:[%s1783_s1 + $0x128] sm:$0xff]  ;;  %v582_v31 = vld [vmem:[%s1783_s1 + $0x138] sm:$0xff] }
 0x15c   : >> { %v1060_v33 = vpack.c.bf16 %v573_v27, %v569_v26  ;;  %v1030_v34 = vpack.c.bf16 %v580_v29, %v576_v28  ;;  %v575_v35 = vld [vmem:[%s1783_s1 + $0x100] sm:$0xff]  ;;  %v577_v37 = vld [vmem:[%s1783_s1 + $0x110] sm:$0xff]  ;;  %v1062_v38 = vpack.c.bf16 %v582_v31, %v578_v30  ;;  %v584_v40 = vld [vmem:[%s1783_s1 + $0x148] sm:$0xff]  ;;  %v759_v19 = vshrl.u32 %v758_v17, 7 }
 0x15d   : >> { %1025 = vmatpush1.bf16.msra.mxu0 %v1024_v16  ;;  %v579_v36 = vld [vmem:[%s1783_s1 + $0x120] sm:$0xff]  ;;  %v581_v39 = vld [vmem:[%s1783_s1 + $0x130] sm:$0xff]  ;;  %v588_v41 = vld [vmem:[%s1783_s1 + $0x168] sm:$0xff]  ;;  %v756_v16 = vunpack.c.l.s4 %v1135_v15 }
 0x15e   : >> { %1057 = vmatpush1.bf16.msra.mxu1 %v1056_v20  ;;  %1027 = vmatprep.subr.bf16.mxu0 %v1026_v21  ;;  %v586_v42 = vld [vmem:[%s1783_s1 + $0x158] sm:$0xff]  ;;  %v1032_v44 = vpack.c.bf16 %v579_v36, %v575_v35  ;;  %v1064_v45 = vpack.c.bf16 %v581_v39, %v577_v37  ;;  %v1034_v46 = vpack.c.bf16 %v588_v41, %v584_v40  ;;  %v583_v47 = vld [vmem:[%s1783_s1 + $0x140] sm:$0xff]  ;;  %v585_v49 = vld [vmem:[%s1783_s1 + $0x150] sm:$0xff] }
 0x15f   : >> { %1059 = vmatprep.subr.bf16.mxu1 %v1058_v25  ;;  %v590_v43 = vld [vmem:[%s1783_s1 + $0x178] sm:$0xff]  ;;  %v587_v48 = vld [vmem:[%s1783_s1 + $0x160] sm:$0xff]  ;;  %v589_v51 = vld [vmem:[%s1783_s1 + $0x170] sm:$0xff]  ;;  %v757_v18 = vunpack.c.0.s8 %v756_v16 }
 0x160   : >> { %v1066_v50 = vpack.c.bf16 %v590_v43, %v586_v42  ;;  %v592_v52 = vld [vmem:[%s1783_s1 + $0x188] sm:$0xff]  ;;  %v594_v54 = vld [vmem:[%s1783_s1 + $0x198] sm:$0xff]  ;;  %v1036_v56 = vpack.c.bf16 %v587_v48, %v583_v47  ;;  %v1068_v57 = vpack.c.bf16 %v589_v51, %v585_v49  ;;  %v591_v59 = vld [vmem:[%s1783_s1 + $0x180] sm:$0xff] }
 0x161   : >> { %1029 = vmatpush1.bf16.msra.mxu0 %v1028_v32  ;;  %v596_v53 = vld [vmem:[%s1783_s1 + $0x1a8] sm:$0xff]  ;;  %v598_v55 = vld [vmem:[%s1783_s1 + $0x1b8] sm:$0xff]  ;;  %v595_v60 = vld [vmem:[%s1783_s1 + $0x1a0] sm:$0xff]  ;;  %v760_v21 = vsub.s32 %v757_v18, %v759_v19 }
 0x162   : >> { %1061 = vmatpush1.bf16.msra.mxu1 %v1060_v33  ;;  %1031 = vmatprep.subr.bf16.mxu0 %v1030_v34  ;;  %v1038_v58 = vpack.c.bf16 %v596_v53, %v592_v52  ;;  %v593_v61 = vld [vmem:[%s1783_s1 + $0x190] sm:$0xff]  ;;  %v1070_v62 = vpack.c.bf16 %v598_v55, %v594_v54  ;;  %v600_v0 = vld [vmem:[%s1783_s1 + $0x1c8] sm:$0xff]  ;;  %v602_v3 = vld [vmem:[%s1783_s1 + $0x1d8] sm:$0xff]  ;;  %v1040_v5 = vpack.c.bf16 %v595_v60, %v591_v59 }
 0x163   : >> { %1063 = vmatprep.subr.bf16.mxu1 %v1062_v38  ;;  %v597_v63 = vld [vmem:[%s1783_s1 + $0x1b0] sm:$0xff]  ;;  %v604_v2 = vld [vmem:[%s1783_s1 + $0x1e8] sm:$0xff]  ;;  %v606_v4 = vld [vmem:[%s1783_s1 + $0x1f8] sm:$0xff] }
 0x164   : >> { %v1072_v6 = vpack.c.bf16 %v597_v63, %v593_v61  ;;  %v1042_v7 = vpack.c.bf16 %v604_v2, %v600_v0  ;;  %v599_v8 = vld [vmem:[%s1783_s1 + $0x1c0] sm:$0xff]  ;;  %v1074_v10 = vpack.c.bf16 %v606_v4, %v602_v3  ;;  %v601_v11 = vld [vmem:[%s1783_s1 + $0x1d0] sm:$0xff] }
 0x165   : >> { %1033 = vmatpush1.bf16.msra.mxu0 %v1032_v44  ;;  %v603_v9 = vld [vmem:[%s1783_s1 + $0x1e0] sm:$0xff]  ;;  %v605_v12 = vld [vmem:[%s1783_s1 + $0x1f0] sm:$0xff] }
 0x166   : >> { %1065 = vmatpush1.bf16.msra.mxu1 %v1064_v45  ;;  %1035 = vmatprep.subr.bf16.mxu0 %v1034_v46  ;;  %v1044_v13 = vpack.c.bf16 %v603_v9, %v599_v8  ;;  %v1076_v14 = vpack.c.bf16 %v605_v12, %v601_v11  ;;  %v542_v29 = vld [vmem:[%s541_s19] ss:$8 sm:$0xf]  ;;  %v799_v43 = vld [vmem:[#allocation3] sm:$0x1] }
 0x167   : >> { %1067 = vmatprep.subr.bf16.mxu1 %v1066_v50 }
 0x169   : >> { %1037 = vmatpush1.bf16.msra.mxu0 %v1036_v56 }
 0x16a   : >> { %1069 = vmatpush1.bf16.msra.mxu1 %v1068_v57  ;;  %1039 = vmatprep.subr.bf16.mxu0 %v1038_v58 }
 0x16b   : >> { %1071 = vmatprep.subr.bf16.mxu1 %v1070_v62 }
 0x16d   : >> { %1041 = vmatpush1.bf16.msra.mxu0 %v1040_v5 }
 0x16e   : >> { %1073 = vmatpush1.bf16.msra.mxu1 %v1072_v6  ;;  %1043 = vmatprep.subr.bf16.mxu0 %v1042_v7 }
 0x16f   : >> { %1075 = vmatprep.subr.bf16.mxu1 %v1074_v10 }
 0x171   : >> { %1045 = vmatpush1.bf16.msra.mxu0 %v1044_v13 }
 0x172   : >> { %1077 = vmatpush1.bf16.msra.mxu1 %v1076_v14 }
 0x174   : >> { %672 = vmatmul.mubr.f32.vlgmr.msra.gmra.mrb[0].mxu0 %v1184_v1 }
 0x175   : >> { %743 = vmatmul.mubr.f32.vlgmr.msra.gmra.mrb[0].mxu1 %v1184_v1 }
 0x247   : >> { %v673_v20 = vpop.f32.mrb[0].mxu0 }
 0x248   : >> { %v744_v22 = vpop.f32.mrb[0].mxu1  ;;  %v675_v23 = vpop.f32.mrb[1].mxu0 }
 0x249   : >> { %v753_v24 = vcombine.low %v673_v20, %v675_v23  ;;  %v746_v25 = vpop.f32.mrb[1].mxu1 }
 0x24a   : >> { %v754_v26 = vcombine.low %v744_v22, %v746_v25 }
 0x24b   : >> { %v761_v27 = vrot.slane %v753_v24, %v760_v21 }
 0x24c   : >> { %v768_v1 = vrot.slane %v754_v26, %v760_v21 }
 0x24e   : >> { %v769_v28 = vcombine.low %v761_v27, %v768_v1 }
 0x250   : >> { %v776_v30 = vrot.slane %v769_v28, %v760_v21 }
 0x252   : >> { %v778_v31 = vadd.f32 %v776_v30, %v542_v29 }
 0x254   : >> { %v779_v32 = vmul.f32 0.5, %v778_v31  ;;  %v784_v33 = vrot.slane %v778_v31, 1  ;;  %v790_v35 = vrot.slane %v778_v31, 2  ;;  %v793_v36 = vrot.slane %v778_v31, 3 }
 0x256   : >> { %1107 = vtanh.f32 %v779_v32  ;;  %v786_v34 = vmul.f32 0.5, %v784_v33  ;;  %v795_v37 = vmul.f32 0.5, %v793_v36 }
 0x258   : >> { %1109 = vtanh.f32 %v786_v34 }
 0x259   : >> { %1111 = vtanh.f32 %v790_v35 }
 0x25a   : >> { %1113 = vtanh.f32 %v795_v37 }
 0x260   : >> { %v1108_v38 = vpop.eup %1107 }
 0x261   : >> { %v781_v39 = vmul.f32 0.5, %v1108_v38 }
 0x262   : >> { %v1110_v40 = vpop.eup %1109 }
 0x263   : >> { %v782_v41 = vadd.f32 0.5, %v781_v39  ;;  %v788_v42 = vmul.f32 0.5, %v1110_v40  ;;  %v1112_v45 = vpop.eup %1111 }
 0x264   : >> { %v1114_v49 = vpop.eup %1113 }
 0x265   : >> { %v789_v44 = vadd.f32 0.5, %v788_v42  ;;  %v801_v47 = vmul.f32 %v1112_v45, %v782_v41  ;;  %v797_v50 = vmul.f32 0.5, %v1114_v49 }
 0x267   : >> { %v800_v46 = vmul.f32 %v799_v43, %v789_v44  ;;  %v798_v51 = vadd.f32 0.5, %v797_v50 }
 0x269   : >> { %v802_v48 = vadd.f32 %v801_v47, %v800_v46 }
 0x26b   : >> { %1115 = vtanh.f32 %v802_v48  ;;  %805 = vst [vmem:[#allocation3] sm:$0x1] %v802_v48 }
 0x275   : >> { %v1116_v52 = vpop.eup %1115 }
 0x276   : >> { %v804_v53 = vmul.f32 %v1116_v52, %v798_v51 }
 0x278   : >> { %806 = vst [vmem:[#allocation2] sm:$0x1] %v804_v53 }
 0x279 PF: >> { %s205_s25 = sadd.s32 1, %s1131_s25  }
 0x27a   : >> { %p202_p7 = scmp.ge.s32.totalorder %s205_s25, 9  }
 0x27d   : > { %204 = sbr.rel (!%p202_p7) target bundleno = 16 (0x10), region = 83 }
 0x284 PF: > { %s14_s15 = sadd.s32 1, %s1127_s15  }
 0x285   : > { %p11_p8 = scmp.ge.s32.totalorder %s14_s15, 4  }
 0x287   :  { %13 = sbr.rel (!%p11_p8) target bundleno = 1 (0x1), region = 94 }

</bundles_post_ra>
